<compile_context>
chip_gen: v5e
topology: v5e:2x2
jax: 0.10.0
libtpu: 0.0.40
codegen_flags: <defaults>
</compile_context>

<pallas_src>
from functools import partial

import jax
import jax.numpy as jnp
from jax.experimental import pallas as pl
from jax.experimental.pallas import tpu as pltpu

LANE = 128


# ----------------------------------------------------------------------------- helpers
def _round_up(n, m):
    return ((n + m - 1) // m) * m


def _pad_channels(x, c_target):
    c = x.shape[-1]
    if c == c_target:
        return x
    return jnp.pad(x, ((0, 0),) * (x.ndim - 1) + ((0, c_target - c),))


def _pad_vec(v, c_target):
    return jnp.pad(v.astype(jnp.float32), (0, c_target - v.shape[0])).reshape(1, c_target)


def _pick_tile_rows(ho, wo, tile_rows):
    if tile_rows is not None:
        return max(1, min(int(tile_rows), ho))
    th = max(1, 2048 // max(wo, 1))          # ~2k rows in the matmul M dim per step
    if th >= 8:
        th -= th % 8
    return max(1, min(th, ho))


def _build_windows(src, th, n_tiles, k_rows):
    """(N, R, Wwin, C) -> (N, n_tiles, th + k_rows - 1, Wwin, C) overlapping row windows."""
    need = n_tiles * th + k_rows - 1
    if src.shape[1] < need:
        src = jnp.pad(src, ((0, 0), (0, need - src.shape[1]), (0, 0), (0, 0)))
    wins = [src[:, i * th:i * th + th + k_rows - 1] for i in range(n_tiles)]
    return jnp.stack(wins, axis=1)


def _space_to_depth2(x):
    """(N, H, W, C) -> (N, ceil(H/2), ceil(W/2), 4C); channel group = 2*row_phase + col_phase."""
    n, h, w, c = x.shape
    hp, wp = h + (h % 2), w + (w % 2)
    x = jnp.pad(x, ((0, 0), (0, hp - h), (0, wp - w), (0, 0)))
    x = x.reshape(n, hp // 2, 2, wp // 2, 2, c)
    x = jnp.transpose(x, (0, 1, 3, 2, 4, 5))
    return x.reshape(n, hp // 2, wp // 2, 4 * c)


# --------------------------------------------------------------------- weight preparation
# (In a full network these would be precomputed once, not per forward call.)
def _taps_3x3(w, cp_in, cp_out):
    """(Cout, Cin, 3, 3) torch conv weight -> (9, cp_in, cp_out) bf16 tap matrices."""
    co, ci = w.shape[0], w.shape[1]
    wt = jnp.zeros((9, cp_in, cp_out), jnp.float32)
    for kh in range(3):
        for kw in range(3):
            wt = wt.at[kh * 3 + kw, :ci, :co].set(jnp.transpose(w[:, :, kh, kw]))
    return wt.astype(jnp.bfloat16)


def _taps_3x3_stride2(w, cp_in, cp_out):
    """3x3/stride-2 conv == 2x2/stride-1 conv on the space-to-depth(2) input.

    (Cout, Cin, 3, 3) -> (4, 4*cp_in, cp_out) bf16; input channel group (2p+q)
    holds the (row-phase p, col-phase q) plane. Taps falling outside the 3x3
    footprint get zero weights.
    """
    co, ci = w.shape[0], w.shape[1]
    wt = jnp.zeros((4, 4 * cp_in, cp_out), jnp.float32)
    for dh in range(2):
        for dw in range(2):
            for p in range(2):
                for q in range(2):
                    kh, kw = 2 * dh + p, 2 * dw + q
                    if kh > 2 or kw > 2:
                        continue
                    base = (2 * p + q) * cp_in
                    wt = wt.at[dh * 2 + dw, base:base + ci, :co].set(
                        jnp.transpose(w[:, :, kh, kw]))
    return wt.astype(jnp.bfloat16)


def _shortcut_matrix(w, cp_in, cp_out):
    """(Cout, Cin, 1, 1) -> (cp_in, cp_out) bf16."""
    co, ci = w.shape[0], w.shape[1]
    m = jnp.zeros((cp_in, cp_out), jnp.float32)
    m = m.at[:ci, :co].set(jnp.transpose(w[:, :, 0, 0]))
    return m.astype(jnp.bfloat16)


# --------------------------------------------------------------------------- the kernel
def _make_conv_prelu_kernel(taps_h, taps_w, th, wo, has_shortcut):
    """Generic stride-1 KHxKW conv (shifted accumulated matmuls) + per-channel PReLU,
    optionally fused with a 1x1 'shortcut' matmul and residual add."""

    def kernel(*refs):
        if has_shortcut:
            xw_ref, wt_ref, alpha_ref, xs_ref, wsc_ref, out_ref = refs
        else:
            xw_ref, wt_ref, alpha_ref, out_ref = refs
        cout = out_ref.shape[-1]

        acc = jnp.zeros((th * wo, cout), jnp.float32)
        for dh in range(taps_h):                    # static, unrolled tap loop
            for dw in range(taps_w):
                patch = xw_ref[dh:dh + th, dw:dw + wo, :]          # (th, wo, Cin_t) bf16
                patch = patch.reshape(th * wo, patch.shape[-1])
                acc = acc + jnp.dot(patch, wt_ref[dh * taps_w + dw],
                                    preferred_element_type=jnp.float32)

        alpha = alpha_ref[...]                      # (1, cout) f32, loaded once per tile
        y = jnp.where(acc > 0.0, acc, acc * alpha)  # PReLU

        if has_shortcut:                            # fused 1x1 shortcut conv + add
            xs = xs_ref[...].reshape(th * wo, xs_ref.shape[-1])
            y = y + jnp.dot(xs, wsc_ref[...], preferred_element_type=jnp.float32)

        out_ref[...] = y.reshape(th, wo, cout).astype(out_ref.dtype)

    return kernel


def _conv_stage(xw, wt, alpha, out_dtype, th, wo, ho, taps_h, taps_w, xs=None, wsc=None):
    """Run one fused conv(+PReLU[+shortcut]) stage, tiled over (batch, row tiles)."""
    n, n_tiles, rh, wwin, cin_t = xw.shape
    cout = wt.shape[-1]
    has_sc = xs is not None

    in_specs = [
        pl.BlockSpec((None, None, rh, wwin, cin_t), lambda b, i: (b, i, 0, 0, 0)),
        pl.BlockSpec((taps_h * taps_w, cin_t, cout), lambda b, i: (0, 0, 0)),
        pl.BlockSpec((1, cout), lambda b, i: (0, 0)),
    ]
    args = [xw, wt, alpha]
    if has_sc:
        csc = xs.shape[-1]
        in_specs += [
            pl.BlockSpec((None, th, wo, csc), lambda b, i: (b, i, 0, 0)),
            pl.BlockSpec((csc, cout), lambda b, i: (0, 0)),
        ]
        args += [xs, wsc]

    out_itemsize = 2 if out_dtype == jnp.bfloat16 else 4
    m_total = n * n_tiles * th * wo
    flops = 2 * m_total * cin_t * cout * taps_h * taps_w
    bytes_acc = xw.size * 2 + wt.size * 2 + alpha.size * 4 + m_total * cout * out_itemsize
    if has_sc:
        flops += 2 * m_total * xs.shape[-1] * cout
        bytes_acc += xs.size * 2 + wsc.size * 2

    out = pl.pallas_call(
        _make_conv_prelu_kernel(taps_h, taps_w, th, wo, has_sc),
        out_shape=jax.ShapeDtypeStruct((n, n_tiles * th, wo, cout), out_dtype),
        grid=(n, n_tiles),
        in_specs=in_specs,
        out_specs=pl.BlockSpec((None, th, wo, cout), lambda b, i: (b, i, 0, 0)),
        compiler_params=pltpu.CompilerParams(
            dimension_semantics=("parallel", "parallel"),
            vmem_limit_bytes=32 * 1024 * 1024),
        cost_estimate=pl.CostEstimate(flops=int(flops), transcendentals=0,
                                      bytes_accessed=int(bytes_acc)),
    )(*args)
    return out[:, :ho]


# ------------------------------------------------------------------------- forward pass
@partial(jax.jit, static_argnames=("stride", "shortcut", "tile_rows"))
def encoder_block(x_nchw, params, *, stride=1, shortcut=True, tile_rows=None):
    """Forward of EncoderBlock. Input/output NCHW, matching the PyTorch module."""
    N, Cin, H, W = x_nchw.shape
    Cout = params["w1"].shape[0]
    cpi = _round_up(Cin, LANE)
    cpo = _round_up(Cout, LANE)

    # Layout prep (NHWC, lane-dense padded channels, bf16). In a full network the
    # activations would stay NHWC and weights would be pre-matrixized once.
    x_nhwc = jnp.transpose(x_nchw, (0, 2, 3, 1))
    x_bf = _pad_channels(x_nhwc, cpi).astype(jnp.bfloat16)

    # ---- stage 1: conv1 3x3 / stride 1 / pad 1 + PReLU1 -------------------------------
    ho1, wo1 = H, W
    th1 = _pick_tile_rows(ho1, wo1, tile_rows)
    nt1 = -(-ho1 // th1)
    xw1 = _build_windows(jnp.pad(x_bf, ((0, 0), (1, 1), (1, 1), (0, 0))), th1, nt1, 3)
    h1 = _conv_stage(xw1, _taps_3x3(params["w1"], cpi, cpo),
                     _pad_vec(params["alpha1"], cpo),
                     jnp.bfloat16, th1, wo1, ho1, 3, 3)        # (N, H, W, cpo) bf16

    # ---- stage 2: conv2 3x3 / stride s / pad 1 + PReLU2 (+ fused 1x1/s shortcut + add)
    if stride == 1:
        ho2, wo2, kh2, kw2 = H, W, 3, 3
        src2 = jnp.pad(h1, ((0, 0), (1, 1), (1, 1), (0, 0)))
        wt2 = _taps_3x3(params["w2"], cpo, cpo)
        xs = x_bf
    elif stride == 2:
        ho2, wo2 = (H - 1) // 2 + 1, (W - 1) // 2 + 1
        kh2 = kw2 = 2
        src2 = _space_to_depth2(jnp.pad(h1, ((0, 0), (1, 1), (1, 1), (0, 0))))
        wt2 = _taps_3x3_stride2(params["w2"], cpo, cpo)
        xs = x_bf[:, ::2, ::2, :][:, :ho2, :wo2]
    else:
        # TODO(synk): general stride via the same space-to-depth rewrite (s*s phases).
        raise NotImplementedError("stride must be 1 or 2")

    th2 = _pick_tile_rows(ho2, wo2, tile_rows)
    nt2 = -(-ho2 // th2)
    xw2 = _build_windows(src2, th2, nt2, kh2)
    a2 = _pad_vec(params["alpha2"], cpo)

    if shortcut:
        if xs.shape[1] < nt2 * th2:
            xs = jnp.pad(xs, ((0, 0), (0, nt2 * th2 - xs.shape[1]), (0, 0), (0, 0)))
        wsc = _shortcut_matrix(params["w_sc"], cpi, cpo)
        y = _conv_stage(xw2, wt2, a2, jnp.float32, th2, wo2, ho2, kh2, kw2, xs=xs, wsc=wsc)
    else:
        y = _conv_stage(xw2, wt2, a2, jnp.float32, th2, wo2, ho2, kh2, kw2)

    return jnp.transpose(y[..., :Cout], (0, 3, 1, 2))          # back to NCHW


# ------------------------------------------------------------------------------ params
def init_encoder_block_params(key, in_channels, out_channels, shortcut=True):
    k1, k2, k3, k4, k5 = jax.random.split(key, 5)

    def kaiming(k, shape, fan_in):
        bound = float(1.0 / (fan_in ** 0.5))
        return jax.random.uniform(k, shape, jnp.float32, -bound, bound)

    p = dict(
        w1=kaiming(k1, (out_channels, in_channels, 3, 3), in_channels * 9),
        w2=kaiming(k2, (out_channels, out_channels, 3, 3), out_channels * 9),
        alpha1=jax.random.uniform(k4, (out_channels,), jnp.float32, 0.05, 0.45),
        alpha2=jax.random.uniform(k5, (out_channels,), jnp.float32, 0.05, 0.45),
    )
    if shortcut:
        p["w_sc"] = kaiming(k3, (out_channels, in_channels, 1, 1), in_channels)
    return p


# --------------------------------------------------------------------------- reference
def _reference(x_nchw, params, *, stride, shortcut=True):
    """Plain-JAX reference with the same bf16 quantization points as the kernel path."""
    f32 = jnp.float32
    xb = x_nchw.astype(jnp.bfloat16).astype(f32)
    w1 = params["w1"].astype(jnp.bfloat16).astype(f32)
    w2 = params["w2"].astype(jnp.bfloat16).astype(f32)

    def conv(v, w, s, p):
        return jax.lax.conv_general_dilated(
            v, w, window_strides=(s, s), padding=[(p, p), (p, p)],
            dimension_numbers=("NCHW", "OIHW", "NCHW"))

    def prelu(v, a):
        a = a.reshape(1, -1, 1, 1).astype(f32)
        return jnp.where(v > 0, v, a * v)

    h = prelu(conv(xb, w1, 1, 1), params["alpha1"])
    h = h.astype(jnp.bfloat16).astype(f32)     # matches the bf16 intermediate of the kernels
    y = prelu(conv(h, w2, stride, 1), params["alpha2"])
    if shortcut:
        wsc = params["w_sc"].astype(jnp.bfloat16).astype(f32)
        y = y + conv(xb, wsc, stride, 0)
    return y


if __name__ == "__main__":
    key = jax.random.PRNGKey(0)
    kx, kp = jax.random.split(key)

    N, Cin, H, W = 2, 4, 16, 16
    Cout = 8
    x = jax.random.normal(kx, (N, Cin, H, W), dtype=jnp.float32)
    params = init_encoder_block_params(kp, Cin, Cout)

    for stride in (2, 1):
        out = jax.block_until_ready(
            encoder_block(x, params, stride=stride, shortcut=True, tile_rows=8))
        ref = jax.block_until_ready(
            _reference(x, params, stride=stride, shortcut=True))
        assert out.shape == ref.shape, (out.shape, ref.shape)
        err = float(jnp.max(jnp.abs(out - ref)))
        assert err < 1e-2, err

    print("KERNEL_OK")
</pallas_src>

<mosaic_0001>
module attributes {stable_mosaic.version = 11 : i64} {
  func.func @kernel(%arg0: i32, %arg1: i32, %arg2: memref<1x1x10x18x128xbf16, #tpu.memory_space<vmem>>, %arg3: memref<9x128x128xbf16, #tpu.memory_space<vmem>>, %arg4: memref<1x128xf32, #tpu.memory_space<vmem>>, %arg5: memref<1x8x16x128xbf16, #tpu.memory_space<vmem>>) attributes {dimension_semantics = [#tpu.dimension_semantics<parallel>, #tpu.dimension_semantics<parallel>], iteration_bounds = array<i64: 2, 2>, scalar_prefetch = 0 : i64, scratch_operands = 0 : i64, tpu.core_type = #tpu.core_type<tc>, window_params = [{transform_indices = @transform_0, window_bounds = array<i64: 1, 1, 10, 18, 128>}, {pipeline_mode = #tpu.pipeline_mode<synchronous>, transform_indices = @transform_1, window_bounds = array<i64: 9, 128, 128>}, {pipeline_mode = #tpu.pipeline_mode<synchronous>, transform_indices = @transform_2, window_bounds = array<i64: 1, 128>}, {transform_indices = @transform_3, window_bounds = array<i64: 1, 8, 16, 128>}]} {
    %cst = arith.constant 0.000000e+00 : f32
    %0 = vector.broadcast %cst : f32 to vector<128x128xf32>
    %c0 = arith.constant 0 : index
    %c0_0 = arith.constant 0 : index
    %c0_1 = arith.constant 0 : index
    %c0_2 = arith.constant 0 : index
    %c0_3 = arith.constant 0 : index
    %1 = vector.load %arg2[%c0, %c0_0, %c0_1, %c0_2, %c0_3] : memref<1x1x10x18x128xbf16, #tpu.memory_space<vmem>>, vector<1x1x8x16x128xbf16>
    %2 = vector.shape_cast %1 : vector<1x1x8x16x128xbf16> to vector<8x16x128xbf16>
    %3 = vector.shape_cast %2 : vector<8x16x128xbf16> to vector<128x128xbf16>
    %c0_4 = arith.constant 0 : index
    %c0_5 = arith.constant 0 : index
    %c0_6 = arith.constant 0 : index
    %4 = vector.load %arg3[%c0_4, %c0_5, %c0_6] : memref<9x128x128xbf16, #tpu.memory_space<vmem>>, vector<1x128x128xbf16>
    %5 = vector.shape_cast %4 : vector<1x128x128xbf16> to vector<128x128xbf16>
    %cst_7 = arith.constant dense<0.000000e+00> : vector<128x128xf32>
    %6 = tpu.matmul %3, %5, %cst_7 {dimension_numbers = #tpu.dot_dimension_numbers<[1], [0], [0], [1], [0, 0, 1, 1], [], []>} : vector<128x128xbf16>, vector<128x128xbf16>, vector<128x128xf32> -> vector<128x128xf32>
    %7 = arith.addf %0, %6 : vector<128x128xf32>
    %c0_8 = arith.constant 0 : index
    %c0_9 = arith.constant 0 : index
    %c0_10 = arith.constant 0 : index
    %c1 = arith.constant 1 : index
    %c0_11 = arith.constant 0 : index
    %8 = vector.load %arg2[%c0_8, %c0_9, %c0_10, %c1, %c0_11] : memref<1x1x10x18x128xbf16, #tpu.memory_space<vmem>>, vector<1x1x8x16x128xbf16>
    %9 = vector.shape_cast %8 : vector<1x1x8x16x128xbf16> to vector<8x16x128xbf16>
    %10 = vector.shape_cast %9 : vector<8x16x128xbf16> to vector<128x128xbf16>
    %c1_12 = arith.constant 1 : index
    %c0_13 = arith.constant 0 : index
    %c0_14 = arith.constant 0 : index
    %11 = vector.load %arg3[%c1_12, %c0_13, %c0_14] : memref<9x128x128xbf16, #tpu.memory_space<vmem>>, vector<1x128x128xbf16>
    %12 = vector.shape_cast %11 : vector<1x128x128xbf16> to vector<128x128xbf16>
    %cst_15 = arith.constant dense<0.000000e+00> : vector<128x128xf32>
    %13 = tpu.matmul %10, %12, %cst_15 {dimension_numbers = #tpu.dot_dimension_numbers<[1], [0], [0], [1], [0, 0, 1, 1], [], []>} : vector<128x128xbf16>, vector<128x128xbf16>, vector<128x128xf32> -> vector<128x128xf32>
    %14 = arith.addf %7, %13 : vector<128x128xf32>
    %c0_16 = arith.constant 0 : index
    %c0_17 = arith.constant 0 : index
    %c0_18 = arith.constant 0 : index
    %c2 = arith.constant 2 : index
    %c0_19 = arith.constant 0 : index
    %15 = vector.load %arg2[%c0_16, %c0_17, %c0_18, %c2, %c0_19] : memref<1x1x10x18x128xbf16, #tpu.memory_space<vmem>>, vector<1x1x8x16x128xbf16>
    %16 = vector.shape_cast %15 : vector<1x1x8x16x128xbf16> to vector<8x16x128xbf16>
    %17 = vector.shape_cast %16 : vector<8x16x128xbf16> to vector<128x128xbf16>
    %c2_20 = arith.constant 2 : index
    %c0_21 = arith.constant 0 : index
    %c0_22 = arith.constant 0 : index
    %18 = vector.load %arg3[%c2_20, %c0_21, %c0_22] : memref<9x128x128xbf16, #tpu.memory_space<vmem>>, vector<1x128x128xbf16>
    %19 = vector.shape_cast %18 : vector<1x128x128xbf16> to vector<128x128xbf16>
    %cst_23 = arith.constant dense<0.000000e+00> : vector<128x128xf32>
    %20 = tpu.matmul %17, %19, %cst_23 {dimension_numbers = #tpu.dot_dimension_numbers<[1], [0], [0], [1], [0, 0, 1, 1], [], []>} : vector<128x128xbf16>, vector<128x128xbf16>, vector<128x128xf32> -> vector<128x128xf32>
    %21 = arith.addf %14, %20 : vector<128x128xf32>
    %c0_24 = arith.constant 0 : index
    %c0_25 = arith.constant 0 : index
    %c1_26 = arith.constant 1 : index
    %c0_27 = arith.constant 0 : index
    %c0_28 = arith.constant 0 : index
    %22 = vector.load %arg2[%c0_24, %c0_25, %c1_26, %c0_27, %c0_28] : memref<1x1x10x18x128xbf16, #tpu.memory_space<vmem>>, vector<1x1x8x16x128xbf16>
    %23 = vector.shape_cast %22 : vector<1x1x8x16x128xbf16> to vector<8x16x128xbf16>
    %24 = vector.shape_cast %23 : vector<8x16x128xbf16> to vector<128x128xbf16>
    %c3 = arith.constant 3 : index
    %c0_29 = arith.constant 0 : index
    %c0_30 = arith.constant 0 : index
    %25 = vector.load %arg3[%c3, %c0_29, %c0_30] : memref<9x128x128xbf16, #tpu.memory_space<vmem>>, vector<1x128x128xbf16>
    %26 = vector.shape_cast %25 : vector<1x128x128xbf16> to vector<128x128xbf16>
    %cst_31 = arith.constant dense<0.000000e+00> : vector<128x128xf32>
    %27 = tpu.matmul %24, %26, %cst_31 {dimension_numbers = #tpu.dot_dimension_numbers<[1], [0], [0], [1], [0, 0, 1, 1], [], []>} : vector<128x128xbf16>, vector<128x128xbf16>, vector<128x128xf32> -> vector<128x128xf32>
    %28 = arith.addf %21, %27 : vector<128x128xf32>
    %c0_32 = arith.constant 0 : index
    %c0_33 = arith.constant 0 : index
    %c1_34 = arith.constant 1 : index
    %c1_35 = arith.constant 1 : index
    %c0_36 = arith.constant 0 : index
    %29 = vector.load %arg2[%c0_32, %c0_33, %c1_34, %c1_35, %c0_36] : memref<1x1x10x18x128xbf16, #tpu.memory_space<vmem>>, vector<1x1x8x16x128xbf16>
    %30 = vector.shape_cast %29 : vector<1x1x8x16x128xbf16> to vector<8x16x128xbf16>
    %31 = vector.shape_cast %30 : vector<8x16x128xbf16> to vector<128x128xbf16>
    %c4 = arith.constant 4 : index
    %c0_37 = arith.constant 0 : index
    %c0_38 = arith.constant 0 : index
    %32 = vector.load %arg3[%c4, %c0_37, %c0_38] : memref<9x128x128xbf16, #tpu.memory_space<vmem>>, vector<1x128x128xbf16>
    %33 = vector.shape_cast %32 : vector<1x128x128xbf16> to vector<128x128xbf16>
    %cst_39 = arith.constant dense<0.000000e+00> : vector<128x128xf32>
    %34 = tpu.matmul %31, %33, %cst_39 {dimension_numbers = #tpu.dot_dimension_numbers<[1], [0], [0], [1], [0, 0, 1, 1], [], []>} : vector<128x128xbf16>, vector<128x128xbf16>, vector<128x128xf32> -> vector<128x128xf32>
    %35 = arith.addf %28, %34 : vector<128x128xf32>
    %c0_40 = arith.constant 0 : index
    %c0_41 = arith.constant 0 : index
    %c1_42 = arith.constant 1 : index
    %c2_43 = arith.constant 2 : index
    %c0_44 = arith.constant 0 : index
    %36 = vector.load %arg2[%c0_40, %c0_41, %c1_42, %c2_43, %c0_44] : memref<1x1x10x18x128xbf16, #tpu.memory_space<vmem>>, vector<1x1x8x16x128xbf16>
    %37 = vector.shape_cast %36 : vector<1x1x8x16x128xbf16> to vector<8x16x128xbf16>
    %38 = vector.shape_cast %37 : vector<8x16x128xbf16> to vector<128x128xbf16>
    %c5 = arith.constant 5 : index
    %c0_45 = arith.constant 0 : index
    %c0_46 = arith.constant 0 : index
    %39 = vector.load %arg3[%c5, %c0_45, %c0_46] : memref<9x128x128xbf16, #tpu.memory_space<vmem>>, vector<1x128x128xbf16>
    %40 = vector.shape_cast %39 : vector<1x128x128xbf16> to vector<128x128xbf16>
    %cst_47 = arith.constant dense<0.000000e+00> : vector<128x128xf32>
    %41 = tpu.matmul %38, %40, %cst_47 {dimension_numbers = #tpu.dot_dimension_numbers<[1], [0], [0], [1], [0, 0, 1, 1], [], []>} : vector<128x128xbf16>, vector<128x128xbf16>, vector<128x128xf32> -> vector<128x128xf32>
    %42 = arith.addf %35, %41 : vector<128x128xf32>
    %c0_48 = arith.constant 0 : index
    %c0_49 = arith.constant 0 : index
    %c2_50 = arith.constant 2 : index
    %c0_51 = arith.constant 0 : index
    %c0_52 = arith.constant 0 : index
    %43 = vector.load %arg2[%c0_48, %c0_49, %c2_50, %c0_51, %c0_52] : memref<1x1x10x18x128xbf16, #tpu.memory_space<vmem>>, vector<1x1x8x16x128xbf16>
    %44 = vector.shape_cast %43 : vector<1x1x8x16x128xbf16> to vector<8x16x128xbf16>
    %45 = vector.shape_cast %44 : vector<8x16x128xbf16> to vector<128x128xbf16>
    %c6 = arith.constant 6 : index
    %c0_53 = arith.constant 0 : index
    %c0_54 = arith.constant 0 : index
    %46 = vector.load %arg3[%c6, %c0_53, %c0_54] : memref<9x128x128xbf16, #tpu.memory_space<vmem>>, vector<1x128x128xbf16>
    %47 = vector.shape_cast %46 : vector<1x128x128xbf16> to vector<128x128xbf16>
    %cst_55 = arith.constant dense<0.000000e+00> : vector<128x128xf32>
    %48 = tpu.matmul %45, %47, %cst_55 {dimension_numbers = #tpu.dot_dimension_numbers<[1], [0], [0], [1], [0, 0, 1, 1], [], []>} : vector<128x128xbf16>, vector<128x128xbf16>, vector<128x128xf32> -> vector<128x128xf32>
    %49 = arith.addf %42, %48 : vector<128x128xf32>
    %c0_56 = arith.constant 0 : index
    %c0_57 = arith.constant 0 : index
    %c2_58 = arith.constant 2 : index
    %c1_59 = arith.constant 1 : index
    %c0_60 = arith.constant 0 : index
    %50 = vector.load %arg2[%c0_56, %c0_57, %c2_58, %c1_59, %c0_60] : memref<1x1x10x18x128xbf16, #tpu.memory_space<vmem>>, vector<1x1x8x16x128xbf16>
    %51 = vector.shape_cast %50 : vector<1x1x8x16x128xbf16> to vector<8x16x128xbf16>
    %52 = vector.shape_cast %51 : vector<8x16x128xbf16> to vector<128x128xbf16>
    %c7 = arith.constant 7 : index
    %c0_61 = arith.constant 0 : index
    %c0_62 = arith.constant 0 : index
    %53 = vector.load %arg3[%c7, %c0_61, %c0_62] : memref<9x128x128xbf16, #tpu.memory_space<vmem>>, vector<1x128x128xbf16>
    %54 = vector.shape_cast %53 : vector<1x128x128xbf16> to vector<128x128xbf16>
    %cst_63 = arith.constant dense<0.000000e+00> : vector<128x128xf32>
    %55 = tpu.matmul %52, %54, %cst_63 {dimension_numbers = #tpu.dot_dimension_numbers<[1], [0], [0], [1], [0, 0, 1, 1], [], []>} : vector<128x128xbf16>, vector<128x128xbf16>, vector<128x128xf32> -> vector<128x128xf32>
    %56 = arith.addf %49, %55 : vector<128x128xf32>
    %c0_64 = arith.constant 0 : index
    %c0_65 = arith.constant 0 : index
    %c2_66 = arith.constant 2 : index
    %c2_67 = arith.constant 2 : index
    %c0_68 = arith.constant 0 : index
    %57 = vector.load %arg2[%c0_64, %c0_65, %c2_66, %c2_67, %c0_68] : memref<1x1x10x18x128xbf16, #tpu.memory_space<vmem>>, vector<1x1x8x16x128xbf16>
    %58 = vector.shape_cast %57 : vector<1x1x8x16x128xbf16> to vector<8x16x128xbf16>
    %59 = vector.shape_cast %58 : vector<8x16x128xbf16> to vector<128x128xbf16>
    %c8 = arith.constant 8 : index
    %c0_69 = arith.constant 0 : index
    %c0_70 = arith.constant 0 : index
    %60 = vector.load %arg3[%c8, %c0_69, %c0_70] : memref<9x128x128xbf16, #tpu.memory_space<vmem>>, vector<1x128x128xbf16>
    %61 = vector.shape_cast %60 : vector<1x128x128xbf16> to vector<128x128xbf16>
    %cst_71 = arith.constant dense<0.000000e+00> : vector<128x128xf32>
    %62 = tpu.matmul %59, %61, %cst_71 {dimension_numbers = #tpu.dot_dimension_numbers<[1], [0], [0], [1], [0, 0, 1, 1], [], []>} : vector<128x128xbf16>, vector<128x128xbf16>, vector<128x128xf32> -> vector<128x128xf32>
    %63 = arith.addf %56, %62 : vector<128x128xf32>
    %c0_72 = arith.constant 0 : index
    %c0_73 = arith.constant 0 : index
    %64 = vector.load %arg4[%c0_72, %c0_73] : memref<1x128xf32, #tpu.memory_space<vmem>>, vector<1x128xf32>
    %cst_74 = arith.constant 0.000000e+00 : f32
    %65 = vector.broadcast %cst_74 : f32 to vector<128x128xf32>
    %66 = arith.cmpf ogt, %63, %65 : vector<128x128xf32>
    %67 = vector.broadcast %64 : vector<1x128xf32> to vector<128x128xf32>
    %68 = arith.mulf %63, %67 : vector<128x128xf32>
    %69 = arith.select %66, %63, %68 : vector<128x128xi1>, vector<128x128xf32>
    %70 = vector.shape_cast %69 : vector<128x128xf32> to vector<8x16x128xf32>
    %71 = arith.truncf %70 : vector<8x16x128xf32> to vector<8x16x128xbf16>
    %c0_75 = arith.constant 0 : index
    %c0_76 = arith.constant 0 : index
    %c0_77 = arith.constant 0 : index
    %c0_78 = arith.constant 0 : index
    %72 = vector.load %arg5[%c0_75, %c0_76, %c0_77, %c0_78] : memref<1x8x16x128xbf16, #tpu.memory_space<vmem>>, vector<1x8x16x128xbf16>
    %73 = vector.shape_cast %72 : vector<1x8x16x128xbf16> to vector<8x16x128xbf16>
    %74 = vector.shape_cast %71 : vector<8x16x128xbf16> to vector<1x8x16x128xbf16>
    tpu.vector_store %arg5[%c0_75, %c0_76, %c0_77, %c0_78], %74 {strides = array<i32>} : memref<1x8x16x128xbf16, #tpu.memory_space<vmem>>, vector<1x8x16x128xbf16>,
    return
  }
  func.func @transform_0(%arg0: i32, %arg1: i32) -> (i32, i32, i32, i32, i32) {
    %c0_i32 = arith.constant 0 : i32
    %c0_i32_0 = arith.constant 0 : i32
    %c0_i32_1 = arith.constant 0 : i32
    %c0_i32_2 = arith.constant 0 : i32
    return %arg0, %arg1, %c0_i32, %c0_i32_0, %c0_i32_1 : i32, i32, i32, i32, i32
  }
  func.func @transform_1(%arg0: i32, %arg1: i32) -> (i32, i32, i32) {
    %c0_i32 = arith.constant 0 : i32
    %c0_i32_0 = arith.constant 0 : i32
    %c0_i32_1 = arith.constant 0 : i32
    %c0_i32_2 = arith.constant 0 : i32
    return %c0_i32, %c0_i32_0, %c0_i32_1 : i32, i32, i32
  }
  func.func @transform_2(%arg0: i32, %arg1: i32) -> (i32, i32) {
    %c0_i32 = arith.constant 0 : i32
    %c0_i32_0 = arith.constant 0 : i32
    %c0_i32_1 = arith.constant 0 : i32
    return %c0_i32, %c0_i32_0 : i32, i32
  }
  func.func @transform_3(%arg0: i32, %arg1: i32) -> (i32, i32, i32, i32) {
    %c0_i32 = arith.constant 0 : i32
    %c0_i32_0 = arith.constant 0 : i32
    %c0_i32_1 = arith.constant 0 : i32
    return %arg0, %arg1, %c0_i32, %c0_i32_0 : i32, i32, i32, i32
  }
}

module attributes {stable_mosaic.version = 11 : i64} {
  func.func @kernel(%arg0: i32, %arg1: i32, %arg2: memref<1x1x9x9x512xbf16, #tpu.memory_space<vmem>>, %arg3: memref<4x512x128xbf16, #tpu.memory_space<vmem>>, %arg4: memref<1x128xf32, #tpu.memory_space<vmem>>, %arg5: memref<1x8x8x128xbf16, #tpu.memory_space<vmem>>, %arg6: memref<128x128xbf16, #tpu.memory_space<vmem>>, %arg7: memref<1x8x8x128xf32, #tpu.memory_space<vmem>>) attributes {dimension_semantics = [#tpu.dimension_semantics<parallel>, #tpu.dimension_semantics<parallel>], iteration_bounds = array<i64: 2, 1>, scalar_prefetch = 0 : i64, scratch_operands = 0 : i64, tpu.core_type = #tpu.core_type<tc>, window_params = [{transform_indices = @transform_0, window_bounds = array<i64: 1, 1, 9, 9, 512>}, {pipeline_mode = #tpu.pipeline_mode<synchronous>, transform_indices = @transform_1, window_bounds = array<i64: 4, 512, 128>}, {pipeline_mode = #tpu.pipeline_mode<synchronous>, transform_indices = @transform_2, window_bounds = array<i64: 1, 128>}, {transform_indices = @transform_3, window_bounds = array<i64: 1, 8, 8, 128>}, {pipeline_mode = #tpu.pipeline_mode<synchronous>, transform_indices = @transform_4, window_bounds = array<i64: 128, 128>}, {transform_indices = @transform_5, window_bounds = array<i64: 1, 8, 8, 128>}]} {
    %cst = arith.constant 0.000000e+00 : f32
    %0 = vector.broadcast %cst : f32 to vector<64x128xf32>
    %c0 = arith.constant 0 : index
    %c0_0 = arith.constant 0 : index
    %c0_1 = arith.constant 0 : index
    %c0_2 = arith.constant 0 : index
    %c0_3 = arith.constant 0 : index
    %1 = vector.load %arg2[%c0, %c0_0, %c0_1, %c0_2, %c0_3] : memref<1x1x9x9x512xbf16, #tpu.memory_space<vmem>>, vector<1x1x8x8x512xbf16>
    %2 = vector.shape_cast %1 : vector<1x1x8x8x512xbf16> to vector<8x8x512xbf16>
    %3 = vector.shape_cast %2 : vector<8x8x512xbf16> to vector<64x512xbf16>
    %c0_4 = arith.constant 0 : index
    %c0_5 = arith.constant 0 : index
    %c0_6 = arith.constant 0 : index
    %4 = vector.load %arg3[%c0_4, %c0_5, %c0_6] : memref<4x512x128xbf16, #tpu.memory_space<vmem>>, vector<1x512x128xbf16>
    %5 = vector.shape_cast %4 : vector<1x512x128xbf16> to vector<512x128xbf16>
    %cst_7 = arith.constant dense<0.000000e+00> : vector<64x128xf32>
    %6 = tpu.matmul %3, %5, %cst_7 {dimension_numbers = #tpu.dot_dimension_numbers<[1], [0], [0], [1], [0, 0, 1, 1], [], []>} : vector<64x512xbf16>, vector<512x128xbf16>, vector<64x128xf32> -> vector<64x128xf32>
    %7 = arith.addf %0, %6 : vector<64x128xf32>
    %c0_8 = arith.constant 0 : index
    %c0_9 = arith.constant 0 : index
    %c0_10 = arith.constant 0 : index
    %c1 = arith.constant 1 : index
    %c0_11 = arith.constant 0 : index
    %8 = vector.load %arg2[%c0_8, %c0_9, %c0_10, %c1, %c0_11] : memref<1x1x9x9x512xbf16, #tpu.memory_space<vmem>>, vector<1x1x8x8x512xbf16>
    %9 = vector.shape_cast %8 : vector<1x1x8x8x512xbf16> to vector<8x8x512xbf16>
    %10 = vector.shape_cast %9 : vector<8x8x512xbf16> to vector<64x512xbf16>
    %c1_12 = arith.constant 1 : index
    %c0_13 = arith.constant 0 : index
    %c0_14 = arith.constant 0 : index
    %11 = vector.load %arg3[%c1_12, %c0_13, %c0_14] : memref<4x512x128xbf16, #tpu.memory_space<vmem>>, vector<1x512x128xbf16>
    %12 = vector.shape_cast %11 : vector<1x512x128xbf16> to vector<512x128xbf16>
    %cst_15 = arith.constant dense<0.000000e+00> : vector<64x128xf32>
    %13 = tpu.matmul %10, %12, %cst_15 {dimension_numbers = #tpu.dot_dimension_numbers<[1], [0], [0], [1], [0, 0, 1, 1], [], []>} : vector<64x512xbf16>, vector<512x128xbf16>, vector<64x128xf32> -> vector<64x128xf32>
    %14 = arith.addf %7, %13 : vector<64x128xf32>
    %c0_16 = arith.constant 0 : index
    %c0_17 = arith.constant 0 : index
    %c1_18 = arith.constant 1 : index
    %c0_19 = arith.constant 0 : index
    %c0_20 = arith.constant 0 : index
    %15 = vector.load %arg2[%c0_16, %c0_17, %c1_18, %c0_19, %c0_20] : memref<1x1x9x9x512xbf16, #tpu.memory_space<vmem>>, vector<1x1x8x8x512xbf16>
    %16 = vector.shape_cast %15 : vector<1x1x8x8x512xbf16> to vector<8x8x512xbf16>
    %17 = vector.shape_cast %16 : vector<8x8x512xbf16> to vector<64x512xbf16>
    %c2 = arith.constant 2 : index
    %c0_21 = arith.constant 0 : index
    %c0_22 = arith.constant 0 : index
    %18 = vector.load %arg3[%c2, %c0_21, %c0_22] : memref<4x512x128xbf16, #tpu.memory_space<vmem>>, vector<1x512x128xbf16>
    %19 = vector.shape_cast %18 : vector<1x512x128xbf16> to vector<512x128xbf16>
    %cst_23 = arith.constant dense<0.000000e+00> : vector<64x128xf32>
    %20 = tpu.matmul %17, %19, %cst_23 {dimension_numbers = #tpu.dot_dimension_numbers<[1], [0], [0], [1], [0, 0, 1, 1], [], []>} : vector<64x512xbf16>, vector<512x128xbf16>, vector<64x128xf32> -> vector<64x128xf32>
    %21 = arith.addf %14, %20 : vector<64x128xf32>
    %c0_24 = arith.constant 0 : index
    %c0_25 = arith.constant 0 : index
    %c1_26 = arith.constant 1 : index
    %c1_27 = arith.constant 1 : index
    %c0_28 = arith.constant 0 : index
    %22 = vector.load %arg2[%c0_24, %c0_25, %c1_26, %c1_27, %c0_28] : memref<1x1x9x9x512xbf16, #tpu.memory_space<vmem>>, vector<1x1x8x8x512xbf16>
    %23 = vector.shape_cast %22 : vector<1x1x8x8x512xbf16> to vector<8x8x512xbf16>
    %24 = vector.shape_cast %23 : vector<8x8x512xbf16> to vector<64x512xbf16>
    %c3 = arith.constant 3 : index
    %c0_29 = arith.constant 0 : index
    %c0_30 = arith.constant 0 : index
    %25 = vector.load %arg3[%c3, %c0_29, %c0_30] : memref<4x512x128xbf16, #tpu.memory_space<vmem>>, vector<1x512x128xbf16>
    %26 = vector.shape_cast %25 : vector<1x512x128xbf16> to vector<512x128xbf16>
    %cst_31 = arith.constant dense<0.000000e+00> : vector<64x128xf32>
    %27 = tpu.matmul %24, %26, %cst_31 {dimension_numbers = #tpu.dot_dimension_numbers<[1], [0], [0], [1], [0, 0, 1, 1], [], []>} : vector<64x512xbf16>, vector<512x128xbf16>, vector<64x128xf32> -> vector<64x128xf32>
    %28 = arith.addf %21, %27 : vector<64x128xf32>
    %c0_32 = arith.constant 0 : index
    %c0_33 = arith.constant 0 : index
    %29 = vector.load %arg4[%c0_32, %c0_33] : memref<1x128xf32, #tpu.memory_space<vmem>>, vector<1x128xf32>
    %cst_34 = arith.constant 0.000000e+00 : f32
    %30 = vector.broadcast %cst_34 : f32 to vector<64x128xf32>
    %31 = arith.cmpf ogt, %28, %30 : vector<64x128xf32>
    %32 = vector.broadcast %29 : vector<1x128xf32> to vector<64x128xf32>
    %33 = arith.mulf %28, %32 : vector<64x128xf32>
    %34 = arith.select %31, %28, %33 : vector<64x128xi1>, vector<64x128xf32>
    %c0_35 = arith.constant 0 : index
    %c0_36 = arith.constant 0 : index
    %c0_37 = arith.constant 0 : index
    %c0_38 = arith.constant 0 : index
    %35 = vector.load %arg5[%c0_35, %c0_36, %c0_37, %c0_38] : memref<1x8x8x128xbf16, #tpu.memory_space<vmem>>, vector<1x8x8x128xbf16>
    %36 = vector.shape_cast %35 : vector<1x8x8x128xbf16> to vector<8x8x128xbf16>
    %37 = vector.shape_cast %36 : vector<8x8x128xbf16> to vector<64x128xbf16>
    %c0_39 = arith.constant 0 : index
    %c0_40 = arith.constant 0 : index
    %38 = vector.load %arg6[%c0_39, %c0_40] : memref<128x128xbf16, #tpu.memory_space<vmem>>, vector<128x128xbf16>
    %cst_41 = arith.constant dense<0.000000e+00> : vector<64x128xf32>
    %39 = tpu.matmul %37, %38, %cst_41 {dimension_numbers = #tpu.dot_dimension_numbers<[1], [0], [0], [1], [0, 0, 1, 1], [], []>} : vector<64x128xbf16>, vector<128x128xbf16>, vector<64x128xf32> -> vector<64x128xf32>
    %40 = arith.addf %34, %39 : vector<64x128xf32>
    %41 = vector.shape_cast %40 : vector<64x128xf32> to vector<8x8x128xf32>
    %c0_42 = arith.constant 0 : index
    %c0_43 = arith.constant 0 : index
    %c0_44 = arith.constant 0 : index
    %c0_45 = arith.constant 0 : index
    %42 = vector.load %arg7[%c0_42, %c0_43, %c0_44, %c0_45] : memref<1x8x8x128xf32, #tpu.memory_space<vmem>>, vector<1x8x8x128xf32>
    %43 = vector.shape_cast %42 : vector<1x8x8x128xf32> to vector<8x8x128xf32>
    %44 = vector.shape_cast %41 : vector<8x8x128xf32> to vector<1x8x8x128xf32>
    tpu.vector_store %arg7[%c0_42, %c0_43, %c0_44, %c0_45], %44 {strides = array<i32>} : memref<1x8x8x128xf32, #tpu.memory_space<vmem>>, vector<1x8x8x128xf32>,
    return
  }
  func.func @transform_0(%arg0: i32, %arg1: i32) -> (i32, i32, i32, i32, i32) {
    %c0_i32 = arith.constant 0 : i32
    %c0_i32_0 = arith.constant 0 : i32
    %c0_i32_1 = arith.constant 0 : i32
    %c0_i32_2 = arith.constant 0 : i32
    return %arg0, %arg1, %c0_i32, %c0_i32_0, %c0_i32_1 : i32, i32, i32, i32, i32
  }
  func.func @transform_1(%arg0: i32, %arg1: i32) -> (i32, i32, i32) {
    %c0_i32 = arith.constant 0 : i32
    %c0_i32_0 = arith.constant 0 : i32
    %c0_i32_1 = arith.constant 0 : i32
    %c0_i32_2 = arith.constant 0 : i32
    return %c0_i32, %c0_i32_0, %c0_i32_1 : i32, i32, i32
  }
  func.func @transform_2(%arg0: i32, %arg1: i32) -> (i32, i32) {
    %c0_i32 = arith.constant 0 : i32
    %c0_i32_0 = arith.constant 0 : i32
    %c0_i32_1 = arith.constant 0 : i32
    return %c0_i32, %c0_i32_0 : i32, i32
  }
  func.func @transform_3(%arg0: i32, %arg1: i32) -> (i32, i32, i32, i32) {
    %c0_i32 = arith.constant 0 : i32
    %c0_i32_0 = arith.constant 0 : i32
    %c0_i32_1 = arith.constant 0 : i32
    return %arg0, %arg1, %c0_i32, %c0_i32_0 : i32, i32, i32, i32
  }
  func.func @transform_4(%arg0: i32, %arg1: i32) -> (i32, i32) {
    %c0_i32 = arith.constant 0 : i32
    %c0_i32_0 = arith.constant 0 : i32
    %c0_i32_1 = arith.constant 0 : i32
    return %c0_i32, %c0_i32_0 : i32, i32
  }
  func.func @transform_5(%arg0: i32, %arg1: i32) -> (i32, i32, i32, i32) {
    %c0_i32 = arith.constant 0 : i32
    %c0_i32_0 = arith.constant 0 : i32
    %c0_i32_1 = arith.constant 0 : i32
    return %arg0, %arg1, %c0_i32, %c0_i32_0 : i32, i32, i32, i32
  }
}

</mosaic_0001>

<bundles_post_ra>
// kernel: encoder_block.2
= control target key start
LH: loop header
LB: loop body
LE: loop exit
PB: predicated region body
PF: predicated region fallthrough
CT: control target
= control target key end

     0   :  { %s3726_s12 = smov 0   ;;  %s3728_s13 = smov 0   ;;  %s4672_s0 = inlined_call_operand.vmem [shape: bf16[2,2,10,18,128], index: 0, kind: input, shape index: {}]   ;;  %s4673_s1 = inlined_call_operand.vmem [shape: bf16[9,128,128], index: 1, kind: input, shape index: {}]   ;;  %s4674_s2 = inlined_call_operand.vmem [shape: f32[1,128], index: 2, kind: input, shape index: {}]   ;;  %s4675_s3 = inlined_call_operand.vmem [shape: bf16[2,16,16,128], index: 3, kind: output, shape index: {}]  }
   0x1   :  { %s3730_s14 = smov 0   ;;  %s3732_s15 = smov 0  }
   0x2   :  { %s3734_s16 = smov 0  }
   0x3 LB: > { %s22_s17 = sadd.s32 1, %s3696_s14  ;;  %s25_s18 = sadd.s32 1, %s3700_s15  ;;  %s3704_s16 = sphi %s3734_s16, %s13_s16   ;;  %s3700_s15 = sphi %s3732_s15, %s4683_s15   ;;  %s3696_s14 = sphi %s3730_s14, %s4682_s14   ;;  %s3692_s13 = sphi %s3728_s13, %s4681_s13   ;;  %s3688_s12 = sphi %s3726_s12, %s4680_s12  }
   0x4   : > { %p23_p0 = scmp.ge.s32.totalorder %s22_s17, 2  ;;  %p2814_p1 = scmp.ge.s32.totalorder %s3704_s16, 1 }
   0x5   : > { %p157_p2 = scmp.lt.s32.totalorder %s3704_s16, 5 }
   0x6   : > { %s4685_s17 = smov (%p23_p0, %s22_s17), 0  ;;  %s4687_s18 = smov (!%p23_p0, %s25_s18), %s3700_s15 }
   0x7   : > { %p158_p3 = pnand %p2814_p1, %p157_p2  ;;  %p27_p4 = scmp.ge.s32.totalorder %s4687_s18, 2 }
   0x8   : > { %p190_p5 = scmp.lt.s32.totalorder (!%p158_p3), %s3692_s13, 1  ;;  %p192_p6 = scmp.lt.s32.totalorder (!%p158_p3), %s3688_s12, 1 }
   0x9   : > { %s4689_s18 = smov (%p27_p4, %s4687_s18), 0  ;;  %161 = sbr.rel (%p158_p3) target bundleno = 470 (0x1d6), region = 32 }
   0xe   : > { %v3477_v0 = vld [vmem:[%s4673_s1 + $0x78] sm:$0xff]  ;;  %v3476_v1 = vld [vmem:[%s4673_s1 + $0x70] sm:$0xff]  ;;  %s4691_s13 = smov (!%p190_p5, %s3692_s13), 1  ;;  %v3475_v2 = vld [vmem:[%s4673_s1 + $0x68] sm:$0xff]  ;;  %vm250_vm0 = vsmask.f32 3328 }
   0xf   : > { %3597 = vmatpush.bf16.msra.mxu1 %v3477_v0  ;;  %3598 = vmatpush.bf16.msra.mxu2 %v3477_v0  ;;  %s193_s23 = scalar_select %p192_p6, %s3688_s12, 1  ;;  %v3474_v3 = vld [vmem:[%s4673_s1 + $0x60] sm:$0xff]  ;;  %vm251_vm1 = vsmask.f32 7440  ;;  %v3473_v21 = vld [vmem:[%s4673_s1 + $0x58] sm:$0xff]  ;;  %v3472_v40 = vld [vmem:[%s4673_s1 + $0x50] sm:$0xff] }
  0x10   : > { %3599 = vmatpush.bf16.msra.mxu3 %v3477_v0  ;;  %542 = vmatpush.bf16.msra.mxu0 %v3477_v0  ;;  %s3622_s24 = smul.u32 60, %s4691_s13  ;;  %vm3807_vm2 = vmor %vm250_vm0, %vm251_vm1  ;;  %v3471_v59 = vld [vmem:[%s4673_s1 + $0x48] sm:$0xff]  ;;  %vm760_vm3 = vcmask 1042432   ;;  %vm761_vm4 = vcmask 1046532  }
  0x11   : > { %s3621_s25 = smul.u32 30, %s193_s23  ;;  %vm3992_vm5 = vmor %vm760_vm3, %vm761_vm4 }
  0x13   : > { %3600 = vmatpush.bf16.msra.mxu1 %v3476_v1  ;;  %3601 = vmatpush.bf16.msra.mxu2 %v3476_v1  ;;  %s196_s28 = sadd.s32 %s3622_s24, %s3621_s25 }
  0x14   : > { %3602 = vmatpush.bf16.msra.mxu3 %v3476_v1  ;;  %543 = vmatpush.bf16.msra.mxu0 %v3476_v1  ;;  %s2815_s29 = sshll.u32 %s196_s28, 2 }
  0x15   : > { %s3778_s7 = scalar_lea.vmem %s4672_s0, %s2815_s29 }
  0x16   : > { %v214_v4 = vld [vmem:[%s3778_s7 + $0x18] sm:$0xf]  ;;  %v3782_v5 = vld [vmem:[%s3778_s7 + $0x1c] sm:$0xf]  ;;  %v3785_v6 = vld [vmem:[%s3778_s7 + $0x20] sm:$0x1] }
  0x17   : > { %3603 = vmatpush.bf16.msra.mxu1 %v3475_v2  ;;  %3604 = vmatpush.bf16.msra.mxu2 %v3475_v2  ;;  %v302_v7 = vshrl.u32 %v214_v4, 16  ;;  %v305_v8 = vshll.u32 %v214_v4, 16  ;;  %v311_v9 = vshll.u32 %v3782_v5, 16  ;;  %v315_v10 = vshrl.u32 %v3782_v5, 16  ;;  %v218_v11 = vld [vmem:[%s3778_s7 + $0x30] sm:$0xf] }
  0x18   : > { %3605 = vmatpush.bf16.msra.mxu3 %v3475_v2  ;;  %544 = vmatpush.bf16.msra.mxu0 %v3475_v2  ;;  %v321_v12 = vshll.u32 %v3785_v6, 16  ;;  %v3792_v13 = vld [vmem:[%s3778_s7 + $0x34] sm:$0xf]  ;;  %v3795_v14 = vld [vmem:[%s3778_s7 + $0x38] sm:$0x1]  ;;  %v350_v15 = vshrl.u32 %v218_v11, 16 }
  0x19   : > { %v304_v16 = vrot.slane %v302_v7, 4  ;;  %v307_v17 = vrot.slane %v305_v8, 5  ;;  %v313_v18 = vrot.slane %v311_v9, 5  ;;  %v317_v19 = vrot.slane %v315_v10, 4  ;;  %v222_v20 = vld [vmem:[%s3778_s7 + $0x48] sm:$0xf] }
  0x1a   : > { %v323_v22 = vrot.slane %v321_v12, 5  ;;  %v352_v23 = vrot.slane %v350_v15, 4  ;;  %v353_v24 = vshll.u32 %v218_v11, 16  ;;  %v359_v25 = vshll.u32 %v3792_v13, 16  ;;  %v223_v30 = vld [vmem:[%s3778_s7 + $0x4c] sm:$0xf] }
  0x1b   : > { %3606 = vmatpush.bf16.msra.mxu1 %v3474_v3  ;;  %3607 = vmatpush.bf16.msra.mxu2 %v3474_v3  ;;  %v308_v26 = vor.u32 %v307_v17, %v304_v16  ;;  %v318_v27 = vor.u32 %v317_v19, %v313_v18  ;;  %v363_v28 = vshrl.u32 %v3792_v13, 16  ;;  %v369_v29 = vshll.u32 %v3795_v14, 16  ;;  %v248_v42 = vld [vmem:[%s3778_s7 + $0x50] sm:$0x1]  ;;  %v210_v50 = vld [vmem:[%s3778_s7] sm:$0xf] }
  0x1c   : > { %3608 = vmatpush.bf16.msra.mxu3 %v3474_v3  ;;  %545 = vmatpush.bf16.msra.mxu0 %v3474_v3  ;;  %v355_v32 = vrot.slane %v353_v24, 5  ;;  %v361_v33 = vrot.slane %v359_v25, 5  ;;  %v398_v34 = vshrl.u32 %v222_v20, 16  ;;  %v401_v35 = vshll.u32 %v222_v20, 16  ;;  %v3832_v63 = vld [vmem:[%s3778_s7 + $0x4] sm:$0xf] }
  0x1d   : > { %v309_v36 = vrot.slane %v308_v26, 4  ;;  %v319_v37 = vrot.slane %v318_v27, 4  ;;  %v365_v38 = vrot.slane %v363_v28, 4  ;;  %v371_v39 = vrot.slane %v369_v29, 5  ;;  %v3839_v7 = vld [vmem:[%s3778_s7 + $0x8] sm:$0x1] }
  0x1e   : > { %v356_v41 = vor.u32 %v355_v32, %v352_v23  ;;  %v400_v43 = vrot.slane %v398_v34, 4  ;;  %v403_v44 = vrot.slane %v401_v35, 5  ;;  %v407_v45 = vshll.u32 %v223_v30, 16  ;;  %v216_v8 = vld [vmem:[%s3778_s7 + $0x24] sm:$0xf]  ;;  %v3469_v34 = vld [vmem:[%s4673_s1 + $0x38] sm:$0xff] }
  0x1f   : > { %3609 = vmatpush.bf16.msra.mxu1 %v3473_v21  ;;  %3610 = vmatpush.bf16.msra.mxu2 %v3473_v21  ;;  %v314_v46 = vsel %vm3807_vm2, %v309_v36, %v313_v18  ;;  %v324_v47 = vsel %vm3807_vm2, %v319_v37, %v323_v22  ;;  %v366_v48 = vor.u32 %v365_v38, %v361_v33  ;;  %v411_v49 = vshrl.u32 %v223_v30, 16  ;;  %v3847_v19 = vld [vmem:[%s3778_s7 + $0x28] sm:$0xf]  ;;  %v3470_v20 = vld [vmem:[%s4673_s1 + $0x40] sm:$0xff]  ;;  %v3855_v24 = vld [vmem:[%s3778_s7 + $0x2c] sm:$0x1] }
  0x20   : > { %3611 = vmatpush.bf16.msra.mxu3 %v3473_v21  ;;  %546 = vmatpush.bf16.msra.mxu0 %v3473_v21  ;;  %v3820_v51 = vunpack.c.l.b16 %v314_v46  ;;  %v3822_v52 = vunpack.c.l.b16 %v324_v47  ;;  %v357_v53 = vrot.slane %v356_v41, 4  ;;  %v404_v54 = vor.u32 %v403_v44, %v400_v43  ;;  %v220_v30 = vld [vmem:[%s3778_s7 + $0x3c] sm:$0xf]  ;;  %v3876_v47 = vld [vmem:[%s3778_s7 + $0x40] sm:$0xf] }
  0x21   : > { %v367_v55 = vrot.slane %v366_v48, 4  ;;  %v409_v56 = vrot.slane %v407_v45, 5  ;;  %v413_v57 = vrot.slane %v411_v49, 4  ;;  %v417_v58 = vshll.u32 %v248_v42, 16  ;;  %v3501_v38 = vld [vmem:[%s4673_s1 + $0xf8] sm:$0xff] }
  0x22   : > { %v480_v60 = vpack.c.b16 %v3822_v52, %v3820_v51  ;;  %v362_v61 = vsel %vm3807_vm2, %v357_v53, %v361_v33  ;;  %v405_v62 = vrot.slane %v404_v54, 4  ;;  %v254_v0 = vshrl.u32 %v210_v50, 16  ;;  %v3485_v33 = vld [vmem:[%s4673_s1 + $0xb8] sm:$0xff]  ;;  %v3508_v51 = vld [vmem:[%s4673_s1 + $0x130] sm:$0xff] }
  0x23   : > { %3612 = vmatpush.bf16.msra.mxu1 %v3472_v40  ;;  %3613 = vmatpush.bf16.msra.mxu2 %v3472_v40  ;;  %v372_v1 = vsel %vm3807_vm2, %v367_v55, %v371_v39  ;;  %v3836_v2 = vunpack.c.l.b16 %v362_v61  ;;  %v414_v3 = vor.u32 %v413_v57, %v409_v56  ;;  %v419_v4 = vrot.slane %v417_v58, 5  ;;  %v3509_v45 = vld [vmem:[%s4673_s1 + $0x138] sm:$0xff]  ;;  %v3468_v58 = vld [vmem:[%s4673_s1 + $0x30] sm:$0xff] }
  0x24   : > { %3614 = vmatpush.bf16.msra.mxu3 %v3472_v40  ;;  %547 = vmatpush.bf16.msra.mxu0 %v3472_v40  ;;  %v471_v9 = vunpack.c.l.b16 %v372_v1  ;;  %v410_v10 = vsel %vm3807_vm2, %v405_v62, %v409_v56  ;;  %v256_v11 = vrot.slane %v254_v0, 4  ;;  %v257_v12 = vshll.u32 %v210_v50, 16  ;;  %v3484_v50 = vld [vmem:[%s4673_s1 + $0xb0] sm:$0xff]  ;;  %v3882_v56 = vld [vmem:[%s3778_s7 + $0x44] sm:$0x1] }
  0x25   : > { %v415_v15 = vrot.slane %v414_v3, 4  ;;  %v474_v16 = vunpack.c.l.b16 %v410_v10  ;;  %v263_v17 = vshll.u32 %v3832_v63, 16  ;;  %v267_v18 = vshrl.u32 %v3832_v63, 16  ;;  %v224_v0 = vld [vmem:[%s3778_s7 + $0x54] sm:$0xf] }
  0x26   : > { %v482_v21 = vpack.c.b16 %v471_v9, %v3836_v2  ;;  %v259_v22 = vrot.slane %v257_v12, 5  ;;  %v273_v23 = vshll.u32 %v3839_v7, 16  ;;  %v326_v25 = vshrl.u32 %v216_v8, 16  ;;  %v3500_v9 = vld [vmem:[%s4673_s1 + $0xf0] sm:$0xff] }
  0x27   : > { %3615 = vmatpush.bf16.msra.mxu1 %v3471_v59  ;;  %3616 = vmatpush.bf16.msra.mxu2 %v3471_v59  ;;  %v420_v26 = vsel %vm3807_vm2, %v415_v15, %v419_v4  ;;  %v265_v27 = vrot.slane %v263_v17, 5  ;;  %v269_v28 = vrot.slane %v267_v18, 4  ;;  %v329_v29 = vshll.u32 %v216_v8, 16  ;;  %v3910_v17 = vld [vmem:[%s3778_s7 + $0x58] sm:$0xf] }
  0x28   : > { %3617 = vmatpush.bf16.msra.mxu3 %v3471_v59  ;;  %548 = vmatpush.bf16.msra.mxu0 %v3471_v59  ;;  %v475_v32 = vunpack.c.l.b16 %v420_v26  ;;  %v260_v35 = vor.u32 %v259_v22, %v256_v11  ;;  %v275_v36 = vrot.slane %v273_v23, 5  ;;  %v328_v37 = vrot.slane %v326_v25, 4  ;;  %v3483_v11 = vld [vmem:[%s4673_s1 + $0xa8] sm:$0xff]  ;;  %v3918_v26 = vld [vmem:[%s3778_s7 + $0x5c] sm:$0x1] }
  0x29   : > { %v270_v39 = vor.u32 %v269_v28, %v265_v27  ;;  %v331_v40 = vrot.slane %v329_v29, 5  ;;  %v335_v41 = vshll.u32 %v3847_v19, 16  ;;  %v339_v42 = vshrl.u32 %v3847_v19, 16 }
  0x2a   : > { %v484_v43 = vpack.c.b16 %v475_v32, %v474_v16  ;;  %v261_v44 = vrot.slane %v260_v35, 4  ;;  %v345_v46 = vshll.u32 %v3855_v24, 16  ;;  %v374_v48 = vshrl.u32 %v220_v30, 16 }
  0x2b   : > { %3618 = vmatpush.bf16.msra.mxu1 %v3470_v20  ;;  %3619 = vmatpush.bf16.msra.mxu2 %v3470_v20  ;;  %v271_v49 = vrot.slane %v270_v39, 4  ;;  %v332_v53 = vor.u32 %v331_v40, %v328_v37  ;;  %v337_v54 = vrot.slane %v335_v41, 5  ;;  %v341_v55 = vrot.slane %v339_v42, 4  ;;  %v3935_v42 = vld [vmem:[%s3778_s7 + $0x10] sm:$0xf] }
  0x2c   : > { %3620 = vmatpush.bf16.msra.mxu3 %v3470_v20  ;;  %549 = vmatpush.bf16.msra.mxu0 %v3470_v20  ;;  %v266_v57 = vsel %vm3807_vm2, %v261_v44, %v265_v27  ;;  %v347_v59 = vrot.slane %v345_v46, 5  ;;  %v376_v61 = vrot.slane %v374_v48, 4  ;;  %v377_v62 = vshll.u32 %v220_v30, 16  ;;  %v212_v27 = vld [vmem:[%s3778_s7 + $0xc] sm:$0xf]  ;;  %v3482_v44 = vld [vmem:[%s4673_s1 + $0xa0] sm:$0xff] }
  0x2d   : > { %v276_v1 = vsel %vm3807_vm2, %v271_v49, %v275_v36  ;;  %v462_v2 = vunpack.c.l.b16 %v266_v57  ;;  %v333_v3 = vrot.slane %v332_v53, 4  ;;  %v342_v4 = vor.u32 %v341_v55, %v337_v54  ;;  %v3948_v53 = vld [vmem:[%s3778_s7 + $0x14] sm:$0x1] }
  0x2e   : > { %560 = vmatmul.bf16.vlgmr.msra.gmra.mxu1 %v480_v60  ;;  %570 = vmatmul.bf16.vlgmr.msra.gmra.mxu2 %v482_v21  ;;  %v463_v8 = vunpack.c.l.b16 %v276_v1  ;;  %v379_v52 = vrot.slane %v377_v62, 5  ;;  %v383_v60 = vshll.u32 %v3876_v47, 16  ;;  %v387_v10 = vshrl.u32 %v3876_v47, 16  ;;  %v3467_v21 = vld [vmem:[%s4673_s1 + $0x28] sm:$0xff]  ;;  %v3498_v1 = vld [vmem:[%s4673_s1 + $0xe0] sm:$0xff] }
  0x2f   : > { %916 = vmatpush.bf16.msrb.mxu2 %v3485_v33  ;;  %687 = vmatpush.bf16.msrb.mxu1 %v3469_v34  ;;  %v338_v12 = vsel %vm3807_vm2, %v333_v3, %v337_v54  ;;  %v343_v15 = vrot.slane %v342_v4, 4  ;;  %v393_v16 = vshll.u32 %v3882_v56, 16  ;;  %v422_v18 = vshrl.u32 %v224_v0, 16  ;;  %v3499_v33 = vld [vmem:[%s4673_s1 + $0xe8] sm:$0xff] }
  0x30   : > { %580 = vmatmul.bf16.vlgmr.msra.gmra.mxu3 %v484_v43  ;;  %1489 = vmatpush.bf16.msrb.mxu0 %v3509_v45  ;;  %v478_v20 = vpack.c.b16 %v463_v8, %v462_v2  ;;  %v3915_v22 = vunpack.c.l.b16 %v338_v12  ;;  %v380_v23 = vor.u32 %v379_v52, %v376_v61  ;;  %v385_v25 = vrot.slane %v383_v60, 5  ;;  %v3466_v45 = vld [vmem:[%s4673_s1 + $0x20] sm:$0xff]  ;;  %v3481_v8 = vld [vmem:[%s4673_s1 + $0x98] sm:$0xff] }
  0x31   : > { %1111 = vmatpush.bf16.msrb.mxu3 %v3501_v38  ;;  %v348_v28 = vsel %vm3807_vm2, %v343_v15, %v347_v59  ;;  %v389_v29 = vrot.slane %v387_v10, 4  ;;  %v395_v30 = vrot.slane %v393_v16, 5  ;;  %v424_v32 = vrot.slane %v422_v18, 4  ;;  %v3507_v38 = vld [vmem:[%s4673_s1 + $0x128] sm:$0xff]  ;;  %v3506_v2 = vld [vmem:[%s4673_s1 + $0x120] sm:$0xff]  ;;  %v3465_v10 = vld [vmem:[%s4673_s1 + $0x18] sm:$0xff] }
  0x32   : > { %550 = vmatmul.bf16.vlgmr.msra.gmra.mxu0 %v478_v20  ;;  %v3926_v34 = vunpack.c.l.b16 %v348_v28  ;;  %v381_v35 = vrot.slane %v380_v23, 4  ;;  %v425_v36 = vshll.u32 %v224_v0, 16  ;;  %v431_v37 = vshll.u32 %v3910_v17, 16  ;;  %v736_v15 = vld [vmem:[%s3778_s7] sm:$0xe] }
  0x33   : > { %917 = vmatpush.bf16.msrb.mxu2 %v3484_v50  ;;  %688 = vmatpush.bf16.msrb.mxu1 %v3468_v58  ;;  %v390_v39 = vor.u32 %v389_v29, %v385_v25  ;;  %v435_v40 = vshrl.u32 %v3910_v17, 16  ;;  %v441_v41 = vshll.u32 %v3918_v26, 16  ;;  %v278_v43 = vshrl.u32 %v212_v27, 16 }
  0x34   : > { %1490 = vmatpush.bf16.msrb.mxu0 %v3508_v51  ;;  %v481_v46 = vpack.c.b16 %v3926_v34, %v3915_v22  ;;  %v386_v48 = vsel %vm3807_vm2, %v381_v35, %v385_v25  ;;  %v427_v49 = vrot.slane %v425_v36, 5  ;;  %v433_v50 = vrot.slane %v431_v37, 5  ;;  %v3084_v25 = vld [vmem:[%s3778_s7 + $0xc] sm:$0xf]  ;;  %v3480_v37 = vld [vmem:[%s4673_s1 + $0x90] sm:$0xff] }
  0x35   : > { %1112 = vmatpush.bf16.msrb.mxu3 %v3500_v9  ;;  %v391_v54 = vrot.slane %v390_v39, 4  ;;  %v472_v55 = vunpack.c.l.b16 %v386_v48  ;;  %v437_v57 = vrot.slane %v435_v40, 4  ;;  %v443_v58 = vrot.slane %v441_v41, 5  ;;  %v3464_v41 = vld [vmem:[%s4673_s1 + $0x10] sm:$0xff] }
  0x36   : > { %v428_v59 = vor.u32 %v427_v49, %v424_v32  ;;  %v280_v61 = vrot.slane %v278_v43, 4  ;;  %v281_v62 = vshll.u32 %v212_v27, 16  ;;  %v287_v0 = vshll.u32 %v3935_v42, 16  ;;  %v3972_v27 = vld [vmem:[%s3778_s7 + $0x10] sm:$0xf] }
  0x37   : > { %918 = vmatpush.bf16.msrb.mxu2 %v3483_v11  ;;  %689 = vmatpush.bf16.msrb.mxu1 %v3467_v21  ;;  %v396_v3 = vsel %vm3807_vm2, %v391_v54, %v395_v30  ;;  %v438_v4 = vor.u32 %v437_v57, %v433_v50  ;;  %v291_v9 = vshrl.u32 %v3935_v42, 16  ;;  %v297_v51 = vshll.u32 %v3948_v53, 16  ;;  %v3497_v30 = vld [vmem:[%s4673_s1 + $0xd8] sm:$0xff]  ;;  %v4000_v49 = vld [vmem:[%s3778_s7 + $0x14] sm:$0x1] }
  0x38   : > { %1491 = vmatpush.bf16.msrb.mxu0 %v3507_v38  ;;  %v473_v52 = vunpack.c.l.b16 %v396_v3  ;;  %v429_v60 = vrot.slane %v428_v59, 4  ;;  %v283_v11 = vrot.slane %v281_v62, 5  ;;  %v289_v12 = vrot.slane %v287_v0, 5  ;;  %v3504_v57 = vld [vmem:[%s4673_s1 + $0x110] sm:$0xff] }
  0x39   : > { %1113 = vmatpush.bf16.msrb.mxu3 %v3499_v33  ;;  %v439_v16 = vrot.slane %v438_v4, 4  ;;  %v293_v18 = vrot.slane %v291_v9, 4  ;;  %v299_v20 = vrot.slane %v297_v51, 5  ;;  %v3505_v33 = vld [vmem:[%s4673_s1 + $0x118] sm:$0xff]  ;;  %v2932_v34 = vrot.slane %v736_v15, 9 }
  0x3a   : > { %v483_v21 = vpack.c.b16 %v473_v52, %v472_v55  ;;  %v434_v22 = vsel %vm3807_vm2, %v429_v60, %v433_v50  ;;  %v284_v23 = vor.u32 %v283_v11, %v280_v61  ;;  %v765_v38 = vrot.slane %v3832_v63, 5  ;;  %v3496_v55 = vld [vmem:[%s4673_s1 + $0xd0] sm:$0xff]  ;;  %v3479_v61 = vld [vmem:[%s4673_s1 + $0x88] sm:$0xff]  ;;  %v3478_v11 = vld [vmem:[%s4673_s1 + $0x80] sm:$0xff] }
  0x3b   : > { %919 = vmatpush.bf16.msrb.mxu2 %v3482_v44  ;;  %690 = vmatpush.bf16.msrb.mxu1 %v3466_v45  ;;  %v444_v28 = vsel %vm3807_vm2, %v439_v16, %v443_v58  ;;  %v476_v29 = vunpack.c.l.b16 %v434_v22  ;;  %v294_v32 = vor.u32 %v293_v18, %v289_v12  ;;  %v768_v39 = vrot.slane %v3839_v7, 5  ;;  %v3495_v52 = vld [vmem:[%s4673_s1 + $0xc8] sm:$0xff]  ;;  %v3533_v18 = vld [vmem:[%s4673_s1 + $0x1b8] sm:$0xff] }
  0x3c   : > { %1492 = vmatpush.bf16.msrb.mxu0 %v3506_v2  ;;  %v477_v35 = vunpack.c.l.b16 %v444_v28  ;;  %v285_v36 = vrot.slane %v284_v23, 4  ;;  %v1201_v44 = vshrl.u32 %v3084_v25, 16  ;;  %v1204_v45 = vshll.u32 %v3084_v25, 16  ;;  %v3503_v60 = vld [vmem:[%s4673_s1 + $0x108] sm:$0xff]  ;;  %v3087_v23 = vld [vmem:[%s3778_s7 + $0x18] sm:$0xf] }
  0x3d   : > { %1114 = vmatpush.bf16.msrb.mxu3 %v3498_v1  ;;  %v295_v40 = vrot.slane %v294_v32, 4  ;;  %v1210_v48 = vshll.u32 %v3972_v27, 16  ;;  %v766_v62 = vsel %vm3992_vm5, %v2932_v34, %v765_v38  ;;  %v3463_v1 = vld [vmem:[%s4673_s1 + $0x8] sm:$0xff]  ;;  %v1214_v4 = vshrl.u32 %v3972_v27, 16  ;;  %v4039_v25 = vld [vmem:[%s3778_s7 + $0x1c] sm:$0xf] }
  0x3e   : > { %565 = vmatmul.bf16.gmra.mxu1 %v481_v46  ;;  %575 = vmatmul.bf16.gmra.mxu2 %v483_v21  ;;  %v485_v63 = vpack.c.b16 %v477_v35, %v476_v29  ;;  %v290_v7 = vsel %vm3807_vm2, %v285_v36, %v289_v12  ;;  %v767_v46 = vrot.slane %v765_v38, 4  ;;  %v1203_v58 = vrot.slane %v1201_v44, 4  ;;  %v3462_v12 = vld [vmem:[%s4673_s1] sm:$0xff]  ;;  %v3517_v28 = vld [vmem:[%s4673_s1 + $0x178] sm:$0xff]  ;;  %v737_v36 = vld [vmem:[%s3778_s7 + $0xc] sm:$0xe] }
  0x3f   : > { %920 = vmatpush.bf16.msrb.mxu2 %v3481_v8  ;;  %691 = vmatpush.bf16.msrb.mxu1 %v3465_v10  ;;  %v300_v50 = vsel %vm3807_vm2, %v295_v40, %v299_v20  ;;  %v464_v54 = vunpack.c.l.b16 %v290_v7  ;;  %v1206_v0 = vrot.slane %v1204_v45, 5  ;;  %v1212_v3 = vrot.slane %v1210_v48, 5  ;;  %v3494_v29 = vld [vmem:[%s4673_s1 + $0xc0] sm:$0xff]  ;;  %v3549_v35 = vld [vmem:[%s4673_s1 + $0x238] sm:$0xff]  ;;  %v3532_v7 = vld [vmem:[%s4673_s1 + $0x1b0] sm:$0xff] }
  0x40   : > { %1493 = vmatpush.bf16.msrb.mxu0 %v3505_v33  ;;  %585 = vmatmul.bf16.gmra.mxu3 %v485_v63  ;;  %v465_v59 = vunpack.c.l.b16 %v300_v50  ;;  %v769_v2 = vsel %vm3992_vm5, %v767_v46, %v768_v39  ;;  %v1220_v8 = vshll.u32 %v4000_v49, 16  ;;  %v1216_v10 = vrot.slane %v1214_v4, 4  ;;  %v3541_v33 = vld [vmem:[%s4673_s1 + $0x1f8] sm:$0xff]  ;;  %v3454_v40 = vld [vmem:[%s3778_s7] sm:$0xff]  ;;  %v3516_v46 = vld [vmem:[%s4673_s1 + $0x170] sm:$0xff] }
  0x41   : > { %1115 = vmatpush.bf16.msrb.mxu3 %v3497_v30  ;;  %v1207_v51 = vor.u32 %v1206_v0, %v1203_v58  ;;  %v836_v15 = vunpack.c.l.b16 %v766_v62  ;;  %v837_v16 = vunpack.c.l.b16 %v769_v2  ;;  %v3502_v30 = vld [vmem:[%s4673_s1 + $0x100] sm:$0xff]  ;;  %v1228_v38 = vshll.u32 %v3087_v23, 16  ;;  %v738_v50 = vld [vmem:[%s3778_s7 + $0x18] sm:$0xe]  ;;  %v3548_v0 = vld [vmem:[%s4673_s1 + $0x230] sm:$0xff] }
  0x42   : > { %v479_v9 = vpack.c.b16 %v465_v59, %v464_v54  ;;  %v1217_v21 = vor.u32 %v1216_v10, %v1212_v3  ;;  %v1222_v22 = vrot.slane %v1220_v8, 5  ;;  %v1234_v39 = vshll.u32 %v4039_v25, 16 }
  0x43   : > { %921 = vmatpush.bf16.msrb.mxu2 %v3480_v37  ;;  %692 = vmatpush.bf16.msrb.mxu1 %v3464_v41  ;;  %v1208_v20 = vrot.slane %v1207_v51, 4  ;;  %v852_v34 = vpack.c.b16 %v837_v16, %v836_v15  ;;  %v1225_v37 = vshrl.u32 %v3087_v23, 16  ;;  %v1238_v45 = vshrl.u32 %v4039_v25, 16  ;;  %v4087_v51 = vld [vmem:[%s3778_s7 + $0x20] sm:$0x1]  ;;  %v3531_v15 = vld [vmem:[%s4673_s1 + $0x1a8] sm:$0xff] }
  0x44   : > { %1494 = vmatpush.bf16.msrb.mxu0 %v3504_v57  ;;  %v1218_v32 = vrot.slane %v1217_v21, 4  ;;  %v779_v48 = vrot.slane %v3782_v5, 5  ;;  %v772_v63 = vrot.slane %v3935_v42, 5  ;;  %v2933_v54 = vrot.slane %v737_v36, 9  ;;  %v3486_v5 = vld [vmem:[%s3778_s7 + $0xc] sm:$0xff] }
  0x45   : > { %1116 = vmatpush.bf16.msrb.mxu3 %v3496_v55  ;;  %555 = vmatmul.bf16.gmra.mxu0 %v479_v9  ;;  %v1213_v41 = vsel %vm3807_vm2, %v1208_v20, %v1212_v3  ;;  %v2934_v55 = vrot.slane %v738_v50, 9  ;;  %v782_v58 = vrot.slane %v3785_v6, 5  ;;  %v1227_v42 = vrot.slane %v1225_v37, 4  ;;  %v3540_v6 = vld [vmem:[%s4673_s1 + $0x1f0] sm:$0xff]  ;;  %v3090_v21 = vld [vmem:[%s3778_s7 + $0x24] sm:$0xf] }
  0x46   : > { %v1223_v44 = vsel %vm3807_vm2, %v1218_v32, %v1222_v22  ;;  %v781_v57 = vrot.slane %v779_v48, 4  ;;  %v1409_v59 = vunpack.c.l.b16 %v1213_v41  ;;  %v1230_v62 = vrot.slane %v1228_v38, 5  ;;  %v3539_v23 = vld [vmem:[%s4673_s1 + $0x1e8] sm:$0xff] }
  0x47   : > { %922 = vmatpush.bf16.msrb.mxu2 %v3479_v61  ;;  %693 = vmatpush.bf16.msrb.mxu1 %v3463_v1  ;;  %v1410_v61 = vunpack.c.l.b16 %v1223_v44  ;;  %v1236_v1 = vrot.slane %v1234_v39, 5  ;;  %v1240_v2 = vrot.slane %v1238_v45, 4  ;;  %v780_v3 = vsel %vm3992_vm5, %v2934_v55, %v779_v48  ;;  %v3455_v41 = vld [vmem:[%s3778_s7 + $0xc] sm:$0xff] }
  0x48   : > { %1495 = vmatpush.bf16.msrb.mxu0 %v3503_v60  ;;  %v783_v4 = vsel %vm3992_vm5, %v781_v57, %v782_v58  ;;  %v774_v8 = vrot.slane %v772_v63, 4  ;;  %v775_v9 = vrot.slane %v3948_v53, 5  ;;  %v1244_v53 = vshll.u32 %v4087_v51, 16  ;;  %v3487_v57 = vld [vmem:[%s3778_s7 + $0x18] sm:$0xff] }
  0x49   : > { %1117 = vmatpush.bf16.msrb.mxu3 %v3495_v52  ;;  %v840_v52 = vunpack.c.l.b16 %v780_v3  ;;  %v841_v60 = vunpack.c.l.b16 %v783_v4  ;;  %v1425_v10 = vpack.c.b16 %v1410_v61, %v1409_v59  ;;  %v1241_v16 = vor.u32 %v1240_v2, %v1236_v1 }
  0x4a   : > { %v776_v20 = vsel %vm3992_vm5, %v774_v8, %v775_v9  ;;  %v1249_v36 = vshrl.u32 %v3090_v21, 16  ;;  %v1252_v38 = vshll.u32 %v3090_v21, 16  ;;  %v786_v48 = vrot.slane %v3847_v19, 5  ;;  %v3530_v8 = vld [vmem:[%s4673_s1 + $0x1a0] sm:$0xff]  ;;  %v3456_v21 = vld [vmem:[%s3778_s7 + $0x18] sm:$0xff] }
  0x4b   : > { %923 = vmatpush.bf16.msrb.mxu2 %v3478_v11  ;;  %694 = vmatpush.bf16.msrb.mxu1 %v3462_v12  ;;  %v1231_v11 = vor.u32 %v1230_v62, %v1227_v42  ;;  %v4089_v12 = vpack.c.b16 %v841_v60, %v840_v52  ;;  %v839_v32 = vunpack.c.l.b16 %v776_v20  ;;  %v789_v55 = vrot.slane %v3855_v24, 5 }
  0x4c   : > { %1496 = vmatpush.bf16.msrb.mxu0 %v3502_v30  ;;  %v1254_v59 = vrot.slane %v1252_v38, 5 }
  0x4d   : > { %1118 = vmatpush.bf16.msrb.mxu3 %v3494_v29  ;;  %v1232_v22 = vrot.slane %v1231_v11, 4  ;;  %v3547_v29 = vld [vmem:[%s4673_s1 + $0x228] sm:$0xff]  ;;  %v3514_v11 = vld [vmem:[%s4673_s1 + $0x160] sm:$0xff] }
  0x4e   : > { %695 = vmatmul.bf16.vlgmr.msrb.gmra.mxu1 %v3454_v40  ;;  %924 = vmatmul.bf16.vlgmr.msrb.gmra.mxu2 %v852_v34  ;;  %v1246_v34 = vrot.slane %v1244_v53, 5  ;;  %v4147_v53 = vld [vmem:[%s3778_s7 + $0x34] sm:$0xf] }
  0x4f   : > { %1934 = vmatpush.bf16.msra.mxu2 %v3533_v18  ;;  %1739 = vmatpush.bf16.msra.mxu1 %v3517_v28  ;;  %v773_v18 = vsel %vm3992_vm5, %v2933_v54, %v772_v63  ;;  %v3515_v28 = vld [vmem:[%s4673_s1 + $0x168] sm:$0xff]  ;;  %v1237_v37 = vsel %vm3807_vm2, %v1232_v22, %v1236_v1  ;;  %v1251_v63 = vrot.slane %v1249_v36, 4  ;;  %v788_v54 = vrot.slane %v786_v48, 4 }
  0x50   : > { %2562 = vmatpush.bf16.msra.mxu0 %v3549_v35  ;;  %1119 = vmatmul.bf16.vlgmr.msrb.gmra.mxu3 %v3486_v5  ;;  %v838_v30 = vunpack.c.l.b16 %v773_v18  ;;  %v4110_v35 = vld [vmem:[%s3778_s7 + $0x28] sm:$0xf]  ;;  %v4124_v5 = vld [vmem:[%s3778_s7 + $0x2c] sm:$0x1] }
  0x51   : > { %2312 = vmatpush.bf16.msra.mxu3 %v3541_v33  ;;  %v1242_v33 = vrot.slane %v1241_v16, 4  ;;  %v1258_v39 = vshll.u32 %v4110_v35, 16  ;;  %v1262_v40 = vshrl.u32 %v4110_v35, 16  ;;  %v790_v19 = vsel %vm3992_vm5, %v788_v54, %v789_v55  ;;  %v3093_v16 = vld [vmem:[%s3778_s7 + $0x30] sm:$0xf] }
  0x52   : > { %v853_v44 = vpack.c.b16 %v839_v32, %v838_v30  ;;  %v843_v1 = vunpack.c.l.b16 %v790_v19  ;;  %v1268_v24 = vshll.u32 %v4124_v5, 16  ;;  %v1273_v22 = vshrl.u32 %v3093_v16, 16  ;;  %v3488_v30 = vld [vmem:[%s3778_s7 + $0x24] sm:$0xff]  ;;  %v3096_v55 = vld [vmem:[%s3778_s7 + $0x3c] sm:$0xf] }
  0x53   : > { %1935 = vmatpush.bf16.msra.mxu2 %v3532_v7  ;;  %1740 = vmatpush.bf16.msra.mxu1 %v3516_v46  ;;  %v1247_v45 = vsel %vm3807_vm2, %v1242_v33, %v1246_v34  ;;  %v739_v7 = vld [vmem:[%s3778_s7 + $0x24] sm:$0xe]  ;;  %v1411_v46 = vunpack.c.l.b16 %v1237_v37  ;;  %v1260_v61 = vrot.slane %v1258_v39, 5  ;;  %v1264_v42 = vrot.slane %v1262_v40, 4  ;;  %v4159_v39 = vld [vmem:[%s3778_s7 + $0x38] sm:$0x1] }
  0x54   : > { %2563 = vmatpush.bf16.msra.mxu0 %v3548_v0  ;;  %v2935_v50 = vrot.slane %v739_v7, 9  ;;  %v1412_v58 = vunpack.c.l.b16 %v1247_v45  ;;  %v1270_v60 = vrot.slane %v1268_v24, 5  ;;  %v1275_v34 = vrot.slane %v1273_v22, 4  ;;  %v3545_v7 = vld [vmem:[%s4673_s1 + $0x218] sm:$0xff]  ;;  %v740_v24 = vld [vmem:[%s3778_s7 + $0x30] sm:$0xe] }
  0x55   : > { %2313 = vmatpush.bf16.msra.mxu3 %v3540_v6  ;;  %1497 = vmatmul.bf16.vlgmr.msrb.gmra.mxu0 %v1425_v10  ;;  %v1255_v6 = vor.u32 %v1254_v59, %v1251_v63  ;;  %v1265_v3 = vor.u32 %v1264_v42, %v1260_v61  ;;  %v3538_v10 = vld [vmem:[%s4673_s1 + $0x1e0] sm:$0xff]  ;;  %v3513_v63 = vld [vmem:[%s4673_s1 + $0x158] sm:$0xff]  ;;  %v1300_v59 = vshll.u32 %v3096_v55, 16 }
  0x56   : > { %v787_v62 = vsel %vm3992_vm5, %v2935_v50, %v786_v48  ;;  %v1426_v2 = vpack.c.b16 %v1412_v58, %v1411_v46  ;;  %v1292_v48 = vshll.u32 %v4159_v39, 16  ;;  %v1297_v58 = vshrl.u32 %v3096_v55, 16 }
  0x57   : > { %1936 = vmatpush.bf16.msra.mxu2 %v3531_v15  ;;  %1741 = vmatpush.bf16.msra.mxu1 %v3515_v28  ;;  %v842_v0 = vunpack.c.l.b16 %v787_v62  ;;  %v1256_v9 = vrot.slane %v1255_v6, 4  ;;  %v1266_v52 = vrot.slane %v1265_v3, 4  ;;  %v3546_v15 = vld [vmem:[%s4673_s1 + $0x220] sm:$0xff]  ;;  %v1282_v28 = vshll.u32 %v4147_v53, 16 }
  0x58   : > { %2564 = vmatpush.bf16.msra.mxu0 %v3547_v29  ;;  %v1286_v29 = vshrl.u32 %v4147_v53, 16  ;;  %v1294_v54 = vrot.slane %v1292_v48, 5 }
  0x59   : > { %2314 = vmatpush.bf16.msra.mxu3 %v3539_v23  ;;  %v4131_v4 = vpack.c.b16 %v843_v1, %v842_v0  ;;  %v1261_v18 = vsel %vm3807_vm2, %v1256_v9, %v1260_v61  ;;  %v1271_v20 = vsel %vm3807_vm2, %v1266_v52, %v1270_v60  ;;  %v1276_v23 = vshll.u32 %v3093_v16, 16  ;;  %v3457_v61 = vld [vmem:[%s3778_s7 + $0x24] sm:$0xff] }
  0x5a   : > { %v1413_v32 = vunpack.c.l.b16 %v1261_v18  ;;  %v1414_v33 = vunpack.c.l.b16 %v1271_v20  ;;  %v1284_v37 = vrot.slane %v1282_v28, 5  ;;  %v1288_v38 = vrot.slane %v1286_v29, 4  ;;  %v4191_v16 = vld [vmem:[%s3778_s7 + $0x44] sm:$0x1]  ;;  %v3528_v20 = vld [vmem:[%s4673_s1 + $0x190] sm:$0xff] }
  0x5b   : > { %1937 = vmatpush.bf16.msra.mxu2 %v3530_v8  ;;  %1742 = vmatpush.bf16.msra.mxu1 %v3514_v11  ;;  %v1278_v36 = vrot.slane %v1276_v23, 5  ;;  %v793_v1 = vrot.slane %v3792_v13, 5  ;;  %v1299_v8 = vrot.slane %v1297_v58, 4  ;;  %v1302_v9 = vrot.slane %v1300_v59, 5  ;;  %v3536_v28 = vld [vmem:[%s4673_s1 + $0x1d0] sm:$0xff] }
  0x5c   : > { %2565 = vmatpush.bf16.msra.mxu0 %v3546_v15  ;;  %v1427_v40 = vpack.c.b16 %v1414_v33, %v1413_v32  ;;  %v1289_v45 = vor.u32 %v1288_v38, %v1284_v37  ;;  %v796_v15 = vrot.slane %v3795_v14, 5  ;;  %v3512_v29 = vld [vmem:[%s4673_s1 + $0x150] sm:$0xff]  ;;  %v4212_v38 = vld [vmem:[%s3778_s7 + $0x4c] sm:$0xf] }
  0x5d   : > { %2315 = vmatpush.bf16.msra.mxu3 %v3538_v10  ;;  %v2936_v10 = vrot.slane %v740_v24, 9  ;;  %v795_v11 = vrot.slane %v793_v1, 4  ;;  %v1303_v13 = vor.u32 %v1302_v9, %v1299_v8  ;;  %v4226_v24 = vld [vmem:[%s3778_s7 + $0x50] sm:$0x1] }
  0x5e   : > { %700 = vmatmul.bf16.gmra.mxu1 %v3455_v41  ;;  %929 = vmatmul.bf16.gmra.mxu2 %v853_v44  ;;  %v3529_v41 = vld [vmem:[%s4673_s1 + $0x198] sm:$0xff]  ;;  %v1279_v44 = vor.u32 %v1278_v36, %v1275_v34  ;;  %v1290_v50 = vrot.slane %v1289_v45, 4  ;;  %v3458_v45 = vld [vmem:[%s3778_s7 + $0x30] sm:$0xff]  ;;  %v1340_v8 = vshll.u32 %v4226_v24, 16 }
  0x5f   : > { %1938 = vmatpush.bf16.msra.mxu2 %v3529_v41  ;;  %1743 = vmatpush.bf16.msra.mxu1 %v3513_v63  ;;  %v794_v22 = vsel %vm3992_vm5, %v2936_v10, %v793_v1  ;;  %v797_v14 = vsel %vm3992_vm5, %v795_v11, %v796_v15  ;;  %v1304_v23 = vrot.slane %v1303_v13, 4  ;;  %v1330_v63 = vshll.u32 %v4212_v38, 16  ;;  %v3511_v10 = vld [vmem:[%s4673_s1 + $0x148] sm:$0xff] }
  0x60   : > { %1124 = vmatmul.bf16.gmra.mxu3 %v3487_v57  ;;  %v1280_v46 = vrot.slane %v1279_v44, 4  ;;  %v4176_v57 = vld [vmem:[%s3778_s7 + $0x40] sm:$0xf]  ;;  %2566 = vmatpush.bf16.msra.mxu0 %v3545_v7  ;;  %v1295_v62 = vsel %vm3807_vm2, %v1290_v50, %v1294_v54  ;;  %v844_v32 = vunpack.c.l.b16 %v794_v22  ;;  %v845_v33 = vunpack.c.l.b16 %v797_v14  ;;  %v741_v50 = vld [vmem:[%s3778_s7 + $0x3c] sm:$0xe] }
  0x61   : > { %v1306_v19 = vshll.u32 %v4176_v57, 16  ;;  %v1310_v0 = vshrl.u32 %v4176_v57, 16  ;;  %v1416_v3 = vunpack.c.l.b16 %v1295_v62  ;;  %v1334_v7 = vshrl.u32 %v4212_v38, 16  ;;  %v3490_v54 = vld [vmem:[%s3778_s7 + $0x3c] sm:$0xff] }
  0x62   : > { %v1285_v42 = vsel %vm3807_vm2, %v1280_v46, %v1284_v37  ;;  %v3099_v37 = vld [vmem:[%s3778_s7 + $0x48] sm:$0xf]  ;;  %v856_v48 = vpack.c.b16 %v845_v33, %v844_v32  ;;  %v800_v46 = vrot.slane %v3876_v47, 5  ;;  %v803_v1 = vrot.slane %v3882_v56, 5 }
  0x63   : > { %v1415_v6 = vunpack.c.l.b16 %v1285_v42  ;;  %v1308_v52 = vrot.slane %v1306_v19, 5  ;;  %v1312_v60 = vrot.slane %v1310_v0, 4  ;;  %1939 = vmatpush.bf16.msra.mxu2 %v3528_v20  ;;  %1744 = vmatpush.bf16.msra.mxu1 %v3512_v29  ;;  %v1321_v41 = vshrl.u32 %v3099_v37, 16  ;;  %v3102_v20 = vld [vmem:[%s3778_s7 + $0x54] sm:$0xf] }
  0x64   : > { %v1324_v44 = vshll.u32 %v3099_v37, 16  ;;  %v1332_v42 = vrot.slane %v1330_v63, 5  ;;  %v1336_v62 = vrot.slane %v1334_v7, 4  ;;  %v2937_v19 = vrot.slane %v741_v50, 9  ;;  %v742_v37 = vld [vmem:[%s3778_s7 + $0x48] sm:$0xe] }
  0x65   : > { %1502 = vmatmul.bf16.gmra.mxu0 %v1426_v2  ;;  %v3489_v2 = vld [vmem:[%s3778_s7 + $0x30] sm:$0xff]  ;;  %v1428_v18 = vpack.c.b16 %v1416_v3, %v1415_v6  ;;  %v1323_v59 = vrot.slane %v1321_v41, 4  ;;  %v802_v0 = vrot.slane %v800_v46, 4  ;;  %v3527_v6 = vld [vmem:[%s4673_s1 + $0x188] sm:$0xff]  ;;  %v1342_v13 = vrot.slane %v1340_v8, 5 }
  0x66   : > { %v1337_v3 = vor.u32 %v1336_v62, %v1332_v42  ;;  %v801_v9 = vsel %vm3992_vm5, %v2937_v19, %v800_v46  ;;  %v1345_v14 = vshrl.u32 %v3102_v20, 16  ;;  %v2938_v7 = vrot.slane %v742_v37, 9  ;;  %v3665_v50 = vld [vmem:[%s3778_s7 + $0x50] sm:$0x1]  ;;  %v3526_v62 = vld [vmem:[%s4673_s1 + $0x180] sm:$0xff] }
  0x67   : > { %v804_v56 = vsel %vm3992_vm5, %v802_v0, %v803_v1  ;;  %1940 = vmatpush.bf16.msra.mxu2 %v3527_v6  ;;  %v846_v11 = vunpack.c.l.b16 %v801_v9  ;;  %1745 = vmatpush.bf16.msra.mxu1 %v3511_v10 }
  0x68   : > { %v847_v15 = vunpack.c.l.b16 %v804_v56  ;;  %v3105_v56 = vld [vmem:[%s3778_s7 + $0x60] sm:$0xf] }
  0x69   : > { %v1369_v10 = vshrl.u32 %v3105_v56, 16 }
  0x6a   : > { %v857_v29 = vpack.c.b16 %v847_v15, %v846_v11  ;;  %v1372_v11 = vshll.u32 %v3105_v56, 16  ;;  %v3460_v15 = vld [vmem:[%s3778_s7 + $0x48] sm:$0xff] }
  0x6b   : > { %1941 = vmatpush.bf16.msra.mxu2 %v3526_v62 }
  0x6e   : > { %705 = vmatmul.bf16.gmra.mxu1 %v3456_v21  ;;  %934 = vmatmul.bf16.gmra.mxu2 %v4089_v12  ;;  %v3537_v12 = vld [vmem:[%s4673_s1 + $0x1d8] sm:$0xff]  ;;  %v1313_v21 = vor.u32 %v1312_v60, %v1308_v52  ;;  %v3535_v60 = vld [vmem:[%s4673_s1 + $0x1c8] sm:$0xff] }
  0x6f   : > { %2316 = vmatpush.bf16.msra.mxu3 %v3537_v12 }
  0x70   : > { %1129 = vmatmul.bf16.gmra.mxu3 %v3488_v30  ;;  %v3544_v30 = vld [vmem:[%s4673_s1 + $0x210] sm:$0xff]  ;;  %v1314_v34 = vrot.slane %v1313_v21, 4  ;;  %v4244_v21 = vld [vmem:[%s3778_s7 + $0x58] sm:$0xf] }
  0x71   : > { %2567 = vmatpush.bf16.msra.mxu0 %v3544_v30  ;;  %v1354_v32 = vshll.u32 %v4244_v21, 16  ;;  %v1358_v33 = vshrl.u32 %v4244_v21, 16 }
  0x73   : > { %2317 = vmatpush.bf16.msra.mxu3 %v3536_v28  ;;  %v3459_v28 = vld [vmem:[%s3778_s7 + $0x3c] sm:$0xff]  ;;  %v1360_v63 = vrot.slane %v1358_v33, 4  ;;  %v1371_v33 = vrot.slane %v1369_v10, 4 }
  0x75   : > { %1507 = vmatmul.bf16.gmra.mxu0 %v1427_v40  ;;  %v1309_v40 = vsel %vm3807_vm2, %v1304_v23, %v1308_v52  ;;  %v1348_v23 = vshll.u32 %v3102_v20, 16 }
  0x76   : > { %v1417_v55 = vunpack.c.l.b16 %v1309_v40  ;;  %v3491_v40 = vld [vmem:[%s3778_s7 + $0x48] sm:$0xff] }
  0x77   : > { %2318 = vmatpush.bf16.msra.mxu3 %v3535_v60 }
  0x7e   : > { %710 = vmatmul.bf16.gmra.mxu1 %v3457_v61  ;;  %939 = vmatmul.bf16.gmra.mxu2 %v4131_v4  ;;  %v1316_v4 = vshll.u32 %v4191_v16, 16  ;;  %v1326_v61 = vrot.slane %v1324_v44, 5 }
  0x80   : > { %1134 = vmatmul.bf16.gmra.mxu3 %v3489_v2  ;;  %v1318_v36 = vrot.slane %v1316_v4, 5  ;;  %v1327_v47 = vor.u32 %v1326_v61, %v1323_v59  ;;  %v3543_v4 = vld [vmem:[%s4673_s1 + $0x208] sm:$0xff] }
  0x81   : > { %2568 = vmatpush.bf16.msra.mxu0 %v3543_v4 }
  0x82   : > { %v1319_v12 = vsel %vm3807_vm2, %v1314_v34, %v1318_v36  ;;  %v1328_v52 = vrot.slane %v1327_v47, 4  ;;  %v3664_v34 = vld [vmem:[%s3778_s7 + $0x4c] sm:$0xf]  ;;  %v3510_v47 = vld [vmem:[%s4673_s1 + $0x140] sm:$0xff] }
  0x83   : > { %v1418_v58 = vunpack.c.l.b16 %v1319_v12  ;;  %v807_v36 = vrot.slane %v3664_v34, 5  ;;  %v1356_v12 = vrot.slane %v1354_v32, 5  ;;  %1746 = vmatpush.bf16.msra.mxu1 %v3510_v47  ;;  %v1374_v34 = vrot.slane %v1372_v11, 5 }
  0x84   : > { %v1333_v22 = vsel %vm3807_vm2, %v1328_v52, %v1332_v42  ;;  %v4279_v52 = vld [vmem:[%s3778_s7 + $0x64] sm:$0xf] }
  0x85   : > { %1512 = vmatmul.bf16.gmra.mxu0 %v1428_v18  ;;  %v1429_v2 = vpack.c.b16 %v1418_v58, %v1417_v55  ;;  %v1338_v18 = vrot.slane %v1337_v3, 4  ;;  %v1419_v41 = vunpack.c.l.b16 %v1333_v22  ;;  %v809_v46 = vrot.slane %v807_v36, 4  ;;  %v4261_v55 = vld [vmem:[%s3778_s7 + $0x5c] sm:$0x1]  ;;  %v3542_v22 = vld [vmem:[%s4673_s1 + $0x200] sm:$0xff] }
  0x86   : > { %v1361_v61 = vor.u32 %v1360_v63, %v1356_v12  ;;  %v1364_v42 = vshll.u32 %v4261_v55, 16  ;;  %v808_v19 = vsel %vm3992_vm5, %v2938_v7, %v807_v36  ;;  %v1378_v20 = vshll.u32 %v4279_v52, 16  ;;  %2569 = vmatpush.bf16.msra.mxu0 %v3542_v22  ;;  %v3316_v7 = vld [vmem:[%s3778_s7 + $0x18] sm:$0xf] }
  0x87   : > { %v1343_v30 = vsel %vm3807_vm2, %v1338_v18, %v1342_v13  ;;  %v848_v6 = vunpack.c.l.b16 %v808_v19  ;;  %v1382_v4 = vshrl.u32 %v4279_v52, 16  ;;  %v1375_v63 = vor.u32 %v1374_v34, %v1371_v33  ;;  %v3493_v34 = vld [vmem:[%s3778_s7 + $0x60] sm:$0xff] }
  0x88   : > { %v1420_v44 = vunpack.c.l.b16 %v1343_v30  ;;  %v1362_v8 = vrot.slane %v1361_v61, 4  ;;  %v1366_v9 = vrot.slane %v1364_v42, 5  ;;  %v1380_v36 = vrot.slane %v1378_v20, 5 }
  0x89   : > { %v1384_v37 = vrot.slane %v1382_v4, 4  ;;  %v2024_v42 = vshrl.u32 %v3316_v7, 16  ;;  %v2027_v62 = vshll.u32 %v3316_v7, 16 }
  0x8a   : > { %v1430_v58 = vpack.c.b16 %v1420_v44, %v1419_v41  ;;  %v1367_v13 = vsel %vm3807_vm2, %v1362_v8, %v1366_v9  ;;  %v817_v44 = vrot.slane %v3918_v26, 5 }
  0x8b   : > { %v1422_v32 = vunpack.c.l.b16 %v1367_v13  ;;  %v2026_v9 = vrot.slane %v2024_v42, 4  ;;  %v2029_v56 = vrot.slane %v2027_v62, 5  ;;  %v3461_v13 = vld [vmem:[%s3778_s7 + $0x54] sm:$0xff]  ;;  %v3319_v42 = vld [vmem:[%s3778_s7 + $0x24] sm:$0xf] }
  0x8c   : > { %v4345_v62 = vld [vmem:[%s3778_s7 + $0x28] sm:$0xf] }
  0x8e   : > { %715 = vmatmul.bf16.gmra.mxu1 %v3458_v45  ;;  %944 = vmatmul.bf16.gmra.mxu2 %v856_v48  ;;  %v1347_v45 = vrot.slane %v1345_v14, 4  ;;  %v1350_v48 = vrot.slane %v1348_v23, 5  ;;  %v814_v23 = vrot.slane %v3910_v17, 5 }
  0x90   : > { %1139 = vmatmul.bf16.gmra.mxu3 %v3490_v54  ;;  %v810_v54 = vrot.slane %v3665_v50, 5  ;;  %v1351_v59 = vor.u32 %v1350_v48, %v1347_v45  ;;  %v816_v41 = vrot.slane %v814_v23, 4  ;;  %v4298_v45 = vld [vmem:[%s3778_s7 + $0x68] sm:$0x1] }
  0x92   : > { %v811_v0 = vsel %vm3992_vm5, %v809_v46, %v810_v54  ;;  %v1352_v1 = vrot.slane %v1351_v59, 4  ;;  %v4306_v46 = vld [vmem:[%s3778_s7 + $0x1c] sm:$0xf]  ;;  %v1385_v54 = vor.u32 %v1384_v37, %v1380_v36  ;;  %v818_v61 = vsel %vm3992_vm5, %v816_v41, %v817_v44 }
  0x93   : > { %v849_v3 = vunpack.c.l.b16 %v811_v0  ;;  %v2033_v19 = vshll.u32 %v4306_v46, 16  ;;  %v2037_v0 = vshrl.u32 %v4306_v46, 16  ;;  %v851_v47 = vunpack.c.l.b16 %v818_v61 }
  0x94   : > { %v1357_v60 = vsel %vm3807_vm2, %v1352_v1, %v1356_v12  ;;  %v1376_v1 = vrot.slane %v1375_v63, 4  ;;  %v2411_v61 = vrot.slane %v4306_v46, 5 }
  0x95   : > { %1517 = vmatmul.bf16.gmra.mxu0 %v1429_v2  ;;  %v3534_v2 = vld [vmem:[%s4673_s1 + $0x1c0] sm:$0xff]  ;;  %v858_v18 = vpack.c.b16 %v849_v3, %v848_v6  ;;  %v1421_v30 = vunpack.c.l.b16 %v1357_v60  ;;  %v1386_v6 = vrot.slane %v1385_v54, 4  ;;  %v2035_v60 = vrot.slane %v2033_v19, 5 }
  0x96   : > { %2319 = vmatpush.bf16.msra.mxu3 %v3534_v2  ;;  %v2039_v10 = vrot.slane %v2037_v0, 4  ;;  %v1381_v4 = vsel %vm3807_vm2, %v1376_v1, %v1380_v36  ;;  %v1591_v36 = vrot.slane %v4000_v49, 5 }
  0x97   : > { %v1431_v48 = vpack.c.b16 %v1422_v32, %v1421_v30  ;;  %v2030_v30 = vor.u32 %v2029_v56, %v2026_v9  ;;  %v1423_v37 = vunpack.c.l.b16 %v1381_v4  ;;  %v2057_v9 = vshll.u32 %v4345_v62, 16 }
  0x98   : > { %v2040_v32 = vor.u32 %v2039_v10, %v2035_v60  ;;  %v2061_v56 = vshrl.u32 %v4345_v62, 16 }
  0x9a   : > { %v2041_v63 = vrot.slane %v2040_v32, 4 }
  0x9e   : > { %720 = vmatmul.bf16.gmra.mxu1 %v3459_v28  ;;  %949 = vmatmul.bf16.gmra.mxu2 %v857_v29  ;;  %v743_v28 = vld [vmem:[%s3778_s7 + $0x54] sm:$0xe] }
  0x9f   : > { %v3492_v29 = vld [vmem:[%s3778_s7 + $0x54] sm:$0xff] }
  0xa0   : > { %1144 = vmatmul.bf16.gmra.mxu3 %v3491_v40  ;;  %v2939_v40 = vrot.slane %v743_v28, 9  ;;  %v1588_v28 = vrot.slane %v3972_v27, 5 }
  0xa2   : > { %v815_v26 = vsel %vm3992_vm5, %v2939_v40, %v814_v23  ;;  %v1590_v44 = vrot.slane %v1588_v28, 4 }
  0xa3   : > { %v850_v2 = vunpack.c.l.b16 %v815_v26 }
  0xa4   : > { %v1592_v0 = vsel %vm3992_vm5, %v1590_v44, %v1591_v36  ;;  %v3518_v36 = vld [vmem:[%s3778_s7 + $0x18] sm:$0xff] }
  0xa5   : > { %1522 = vmatmul.bf16.gmra.mxu0 %v1430_v58  ;;  %v1388_v58 = vshll.u32 %v4298_v45, 16  ;;  %v859_v20 = vpack.c.b16 %v851_v47, %v850_v2  ;;  %v3157_v44 = vld [vmem:[%s3778_s7 + $0x18] sm:$0xe] }
  0xa7   : > { %v1390_v3 = vrot.slane %v1388_v58, 5  ;;  %v3388_v58 = vld [vmem:[%s3778_s7 + $0x18] sm:$0xe] }
  0xa8   : > { %v3396_v46 = vrot.slane %v3388_v58, 9 }
  0xa9   : > { %v1391_v22 = vsel %vm3807_vm2, %v1386_v6, %v1390_v3  ;;  %v2048_v6 = vshrl.u32 %v3319_v42, 16  ;;  %v2051_v3 = vshll.u32 %v3319_v42, 16 }
  0xaa   : > { %v1424_v40 = vunpack.c.l.b16 %v1391_v22 }
  0xab   : > { %v4291_v14 = vpop.f32.mrf.mxu1  ;;  %v2053_v32 = vrot.slane %v2051_v3, 5 }
  0xac   : > { %v1432_v27 = vpack.c.b16 %v1424_v40, %v1423_v37 }
  0xae   : > { %725 = vmatmul.bf16.gmra.mxu1 %v3460_v15  ;;  %954 = vmatmul.bf16.gmra.mxu2 %v858_v18  ;;  %v3318_v15 = vld [vmem:[%s3778_s7 + $0x20] sm:$0x1] }
  0xaf   : > { %v4300_v17 = vpop.f32.mrf.mxu0  ;;  %v2043_v33 = vshll.u32 %v3318_v15, 16  ;;  %v2414_v4 = vrot.slane %v3318_v15, 5 }
  0xb0   : > { %1149 = vmatmul.bf16.gmra.mxu3 %v3492_v29  ;;  %v3156_v29 = vld [vmem:[%s3778_s7 + $0xc] sm:$0xe] }
  0xb1   : > { %v4302_v12 = vpop.f32.mrf.mxu2  ;;  %v3164_v41 = vrot.slane %v3156_v29, 9  ;;  %v2045_v7 = vrot.slane %v2043_v33, 5  ;;  %v2059_v33 = vrot.slane %v2057_v9, 5 }
  0xb3   : > { %v4308_v50 = vpop.f32.mrf.mxu3  ;;  %v4311_v59 = vpop.f32.mrf.mxu1  ;;  %v1589_v49 = vsel %vm3992_vm5, %v3164_v41, %v1588_v28  ;;  %v2046_v47 = vsel %vm3807_vm2, %v2041_v63, %v2045_v7  ;;  %v2412_v28 = vsel %vm3992_vm5, %v3396_v46, %v2411_v61  ;;  %v3321_v63 = vld [vmem:[%s3778_s7 + $0x2c] sm:$0x1] }
  0xb4   : > { %v1659_v10 = vunpack.c.l.b16 %v1589_v49  ;;  %v2482_v58 = vunpack.c.l.b16 %v2412_v28  ;;  %v2418_v28 = vrot.slane %v4345_v62, 5 }
  0xb5   : > { %1527 = vmatmul.bf16.gmra.mxu0 %v1431_v48  ;;  %v2031_v48 = vrot.slane %v2030_v30, 4  ;;  %v2050_v30 = vrot.slane %v2048_v6, 4  ;;  %v1598_v6 = vrot.slane %v4087_v51, 5 }
  0xb7   : > { %v4319_v8 = vpop.f32.mrf.mxu0  ;;  %v2036_v2 = vsel %vm3807_vm2, %v2031_v48, %v2035_v60  ;;  %v2233_v60 = vunpack.c.l.b16 %v2046_v47  ;;  %v1595_v48 = vrot.slane %v4039_v25, 5  ;;  %v2054_v49 = vor.u32 %v2053_v32, %v2050_v30  ;;  %v3322_v25 = vld [vmem:[%s3778_s7 + $0x30] sm:$0xf] }
  0xb8   : > { %v2232_v22 = vunpack.c.l.b16 %v2036_v2  ;;  %v3165_v2 = vrot.slane %v3157_v44, 9  ;;  %v2067_v47 = vshll.u32 %v3321_v63, 16  ;;  %v2072_v32 = vshrl.u32 %v3322_v25, 16 }
  0xb9   : > { %v4321_v11 = vpop.f32.mrf.mxu2  ;;  %v1597_v46 = vrot.slane %v1595_v48, 4 }
  0xbb   : > { %v4324_v18 = vpop.f32.mrf.mxu3  ;;  %v4331_v23 = vpop.f32.mrf.mxu1  ;;  %v1599_v51 = vsel %vm3992_vm5, %v1597_v46, %v1598_v6 }
  0xbe   : > { %730 = vmatmul.bf16.gmra.mxu1 %v3461_v13  ;;  %959 = vmatmul.bf16.gmra.mxu2 %v859_v20  ;;  %v1660_v13 = vunpack.c.l.b16 %v1592_v0  ;;  %v2413_v20 = vrot.slane %v2411_v61, 4  ;;  %v2248_v61 = vpack.c.b16 %v2233_v60, %v2232_v22  ;;  %v2069_v22 = vrot.slane %v2067_v47, 5  ;;  %v3389_v60 = vld [vmem:[%s3778_s7 + $0x24] sm:$0xe] }
  0xc0   : > { %1154 = vmatmul.bf16.gmra.mxu3 %v3493_v34  ;;  %v2063_v34 = vrot.slane %v2061_v56, 4  ;;  %v1675_v40 = vpack.c.b16 %v1660_v13, %v1659_v10  ;;  %v2415_v41 = vsel %vm3992_vm5, %v2413_v20, %v2414_v4  ;;  %v2055_v56 = vrot.slane %v2054_v49, 4  ;;  %v4379_v10 = vld [vmem:[%s3778_s7 + $0x34] sm:$0xf] }
  0xc1   : > { %v4337_v54 = vpop.f32.mrf.mxu2  ;;  %v2483_v42 = vunpack.c.l.b16 %v2415_v41  ;;  %v1596_v4 = vsel %vm3992_vm5, %v3165_v2, %v1595_v48  ;;  %v2081_v41 = vshll.u32 %v4379_v10, 16  ;;  %v2421_v49 = vrot.slane %v3321_v63, 5 }
  0xc2   : > { %v4340_v26 = vpop.f32.mrf.mxu0  ;;  %v2064_v0 = vor.u32 %v2063_v34, %v2059_v33  ;;  %v2075_v34 = vshll.u32 %v3322_v25, 16  ;;  %v1661_v48 = vunpack.c.l.b16 %v1596_v4  ;;  %v2060_v62 = vsel %vm3807_vm2, %v2055_v56, %v2059_v33  ;;  %v3519_v4 = vld [vmem:[%s3778_s7 + $0x24] sm:$0xff] }
  0xc3   : > { %v4347_v19 = vpop.f32.mrf.mxu1  ;;  %v4353_v1 = vpop.f32.mrf.mxu3  ;;  %v2498_v3 = vpack.c.b16 %v2483_v42, %v2482_v58  ;;  %v1662_v58 = vunpack.c.l.b16 %v1599_v51  ;;  %v2420_v42 = vrot.slane %v2418_v28, 4  ;;  %v2083_v47 = vrot.slane %v2081_v41, 5 }
  0xc4   : > { %v2234_v25 = vunpack.c.l.b16 %v2060_v62 }
  0xc5   : > { %1532 = vmatmul.bf16.gmra.mxu0 %v1432_v27  ;;  %v2422_v63 = vsel %vm3992_vm5, %v2420_v42, %v2421_v49  ;;  %v2425_v49 = vrot.slane %v4379_v10, 5 }
  0xc9   : > { %v4363_v29 = vpop.f32.mrf.mxu2 }
  0xca   : > { %v4365_v37 = vpop.f32.mrf.mxu0 }
  0xcb   : > { %v696_v15 = vpop.f32.mrf.mxu1  ;;  %v4373_v7 = vpop.f32.mrf.mxu3 }
  0xcc   : > { %v697_v27 = vadd.f32 %v696_v15, %v4300_v17  ;;  %v2065_v17 = vrot.slane %v2064_v0, 4  ;;  %v2085_v15 = vshrl.u32 %v4379_v10, 16  ;;  %v2077_v0 = vrot.slane %v2075_v34, 5 }
  0xce   : > { %1747 = vmatmul.bf16.vlgmr.msra.gmra.mxu1 %v1675_v40  ;;  %1942 = vmatmul.bf16.vlgmr.msra.gmra.mxu2 %v3518_v36  ;;  %v2087_v46 = vrot.slane %v2085_v15, 4 }
  0xd0   : > { %2320 = vmatmul.bf16.vlgmr.msra.gmra.mxu3 %v2248_v61  ;;  %v2070_v61 = vsel %vm3807_vm2, %v2065_v17, %v2069_v22  ;;  %v2088_v34 = vor.u32 %v2087_v46, %v2083_v47 }
  0xd1   : > { %v925_v9 = vpop.f32.mrf.mxu2 }
  0xd2   : > { %v1498_v13 = vpop.f32.mrf.mxu0  ;;  %v965_v20 = vadd.f32 %v925_v9, %v697_v27  ;;  %v3397_v27 = vrot.slane %v3389_v60, 9  ;;  %v4397_v9 = vld [vmem:[%s3778_s7 + $0x38] sm:$0x1]  ;;  %v1602_v60 = vrot.slane %v4110_v35, 5  ;;  %v1605_v35 = vrot.slane %v4124_v5, 5 }
  0xd3   : > { %v698_v30 = vpop.f32.mrf.mxu1  ;;  %v1120_v40 = vpop.f32.mrf.mxu3  ;;  %v2428_v10 = vrot.slane %v4397_v9, 5 }
  0xd4   : > { %v699_v36 = vadd.f32 %v698_v30, %v4319_v8  ;;  %v1160_v44 = vadd.f32 %v1120_v40, %v965_v20  ;;  %v2074_v8 = vrot.slane %v2072_v32, 4  ;;  %v1676_v20 = vpack.c.b16 %v1662_v58, %v1661_v48 }
  0xd5   : > { %2570 = vmatmul.bf16.vlgmr.msra.gmra.mxu0 %v2498_v3  ;;  %v2235_v3 = vunpack.c.l.b16 %v2070_v61  ;;  %v2419_v17 = vsel %vm3992_vm5, %v3397_v27, %v2418_v28  ;;  %v2091_v40 = vshll.u32 %v4397_v9, 16  ;;  %v2485_v28 = vunpack.c.l.b16 %v2422_v63  ;;  %v3390_v61 = vld [vmem:[%s3778_s7 + $0x30] sm:$0xe] }
  0xd6   : > { %v4394_v2 = vadd.f32 %v1498_v13, %v1160_v44  ;;  %v3158_v13 = vld [vmem:[%s3778_s7 + $0x24] sm:$0xe]  ;;  %v2078_v30 = vor.u32 %v2077_v0, %v2074_v8  ;;  %v2484_v15 = vunpack.c.l.b16 %v2419_v17  ;;  %v1604_v48 = vrot.slane %v1602_v60, 4  ;;  %v3325_v8 = vld [vmem:[%s3778_s7 + $0x3c] sm:$0xf] }
  0xd7   : > { %v2249_v41 = vpack.c.b16 %v2235_v3, %v2234_v25  ;;  %v3166_v44 = vrot.slane %v3158_v13, 9  ;;  %v2089_v27 = vrot.slane %v2088_v34, 4  ;;  %v2093_v58 = vrot.slane %v2091_v40, 5  ;;  %v4417_v3 = vld [vmem:[%s3778_s7 + $0x40] sm:$0xf] }
  0xd8   : > { %v2079_v62 = vrot.slane %v2078_v30, 4  ;;  %v2099_v13 = vshll.u32 %v3325_v8, 16  ;;  %v2427_v30 = vrot.slane %v2425_v49, 4 }
  0xd9   : > { %v927_v6 = vpop.f32.mrf.mxu2  ;;  %v1603_v25 = vsel %vm3992_vm5, %v3166_v44, %v1602_v60  ;;  %v2094_v63 = vsel %vm3807_vm2, %v2089_v27, %v2093_v58 }
  0xda   : > { %v1500_v33 = vpop.f32.mrf.mxu0  ;;  %v966_v56 = vadd.f32 %v927_v6, %v699_v36  ;;  %v2429_v44 = vsel %vm3992_vm5, %v2427_v30, %v2428_v10  ;;  %v4446_v30 = vld [vmem:[%s3778_s7 + $0x4c] sm:$0xf] }
  0xdb   : > { %v701_v22 = vpop.f32.mrf.mxu1  ;;  %v1122_v51 = vpop.f32.mrf.mxu3 }
  0xdc   : > { %v702_v32 = vadd.f32 %v701_v22, %v4340_v26  ;;  %v1161_v36 = vadd.f32 %v1122_v51, %v966_v56  ;;  %v2499_v26 = vpack.c.b16 %v2485_v28, %v2484_v15  ;;  %v1606_v56 = vsel %vm3992_vm5, %v1604_v48, %v1605_v35 }
  0xdd   : > { %v2096_v22 = vshrl.u32 %v3325_v8, 16  ;;  %v2105_v51 = vshll.u32 %v4417_v3, 16  ;;  %v1664_v34 = vunpack.c.l.b16 %v1606_v56  ;;  %v2101_v15 = vrot.slane %v2099_v13, 5  ;;  %v4439_v8 = vld [vmem:[%s3778_s7 + $0x44] sm:$0x1] }
  0xde   : > { %1752 = vmatmul.bf16.gmra.mxu1 %v1676_v20  ;;  %1947 = vmatmul.bf16.gmra.mxu2 %v3519_v4  ;;  %v4412_v0 = vadd.f32 %v1500_v33, %v1161_v36  ;;  %v2084_v20 = vsel %vm3807_vm2, %v2079_v62, %v2083_v47  ;;  %v3398_v4 = vrot.slane %v3390_v61, 9  ;;  %v1663_v47 = vunpack.c.l.b16 %v1603_v25  ;;  %v3520_v61 = vld [vmem:[%s3778_s7 + $0x30] sm:$0xff] }
  0xdf   : > { %v2236_v9 = vunpack.c.l.b16 %v2084_v20  ;;  %v2107_v48 = vrot.slane %v2105_v51, 5  ;;  %v2487_v56 = vunpack.c.l.b16 %v2429_v44 }
  0xe0   : > { %2325 = vmatmul.bf16.gmra.mxu3 %v2249_v41  ;;  %v2426_v36 = vsel %vm3992_vm5, %v3398_v4, %v2425_v49  ;;  %v2098_v41 = vrot.slane %v2096_v22, 4  ;;  %v1677_v58 = vpack.c.b16 %v1664_v34, %v1663_v47  ;;  %v3328_v22 = vld [vmem:[%s3778_s7 + $0x48] sm:$0xf]  ;;  %v3391_v34 = vld [vmem:[%s3778_s7 + $0x3c] sm:$0xe] }
  0xe1   : > { %v930_v42 = vpop.f32.mrf.mxu2  ;;  %v2486_v49 = vunpack.c.l.b16 %v2426_v36  ;;  %v2123_v44 = vshll.u32 %v3328_v22, 16 }
  0xe2   : > { %v1503_v46 = vpop.f32.mrf.mxu0  ;;  %v967_v6 = vadd.f32 %v930_v42, %v702_v32  ;;  %v2109_v32 = vshrl.u32 %v4417_v3, 16  ;;  %v1609_v42 = vrot.slane %v4147_v53, 5  ;;  %v2102_v20 = vor.u32 %v2101_v15, %v2098_v41 }
  0xe3   : > { %v703_v5 = vpop.f32.mrf.mxu1  ;;  %v1125_v17 = vpop.f32.mrf.mxu3  ;;  %v2500_v13 = vpack.c.b16 %v2487_v56, %v2486_v49  ;;  %v2432_v41 = vrot.slane %v4417_v3, 5  ;;  %v2120_v15 = vshrl.u32 %v3328_v22, 16  ;;  %v2125_v56 = vrot.slane %v2123_v44, 5 }
  0xe4   : > { %v704_v33 = vadd.f32 %v703_v5, %v4365_v37  ;;  %v1162_v60 = vadd.f32 %v1125_v17, %v967_v6  ;;  %v2237_v37 = vunpack.c.l.b16 %v2094_v63  ;;  %v2111_v35 = vrot.slane %v2109_v32, 4 }
  0xe5   : > { %2575 = vmatmul.bf16.gmra.mxu0 %v2499_v26  ;;  %v3159_v26 = vld [vmem:[%s3778_s7 + $0x30] sm:$0xe]  ;;  %v1611_v53 = vrot.slane %v1609_v42, 4  ;;  %v1612_v63 = vrot.slane %v4159_v39, 5 }
  0xe6   : > { %v4429_v40 = vadd.f32 %v1503_v46, %v1162_v60  ;;  %v2250_v5 = vpack.c.b16 %v2237_v37, %v2236_v9  ;;  %v3167_v10 = vrot.slane %v3159_v26, 9  ;;  %v2112_v17 = vor.u32 %v2111_v35, %v2107_v48 }
  0xe7   : > { %v2103_v60 = vrot.slane %v2102_v20, 4  ;;  %v1613_v39 = vsel %vm3992_vm5, %v1611_v53, %v1612_v63  ;;  %v2129_v35 = vshll.u32 %v4446_v30, 16 }
  0xe8   : > { %v1610_v51 = vsel %vm3992_vm5, %v3167_v10, %v1609_v42  ;;  %v2113_v32 = vrot.slane %v2112_v17, 4  ;;  %v4467_v10 = vld [vmem:[%s3778_s7 + $0x50] sm:$0x1] }
  0xe9   : > { %v932_v28 = vpop.f32.mrf.mxu2  ;;  %v1665_v42 = vunpack.c.l.b16 %v1610_v51  ;;  %v2108_v49 = vsel %vm3807_vm2, %v2103_v60, %v2107_v48  ;;  %v2131_v20 = vrot.slane %v2129_v35, 5  ;;  %v3521_v60 = vld [vmem:[%s3778_s7 + $0x3c] sm:$0xff] }
  0xea   : > { %v1505_v62 = vpop.f32.mrf.mxu0  ;;  %v968_v27 = vadd.f32 %v932_v28, %v704_v33  ;;  %v2115_v33 = vshll.u32 %v4439_v8, 16 }
  0xeb   : > { %v706_v46 = vpop.f32.mrf.mxu1  ;;  %v1127_v6 = vpop.f32.mrf.mxu3 }
  0xec   : > { %v707_v25 = vadd.f32 %v706_v46, %v4291_v14  ;;  %v1163_v4 = vadd.f32 %v1127_v6, %v968_v27  ;;  %v2117_v47 = vrot.slane %v2115_v33, 5  ;;  %v2133_v27 = vshrl.u32 %v4446_v30, 16 }
  0xed   : > { %v1666_v46 = vunpack.c.l.b16 %v1613_v39  ;;  %v2434_v6 = vrot.slane %v2432_v41, 4  ;;  %v2238_v33 = vunpack.c.l.b16 %v2108_v49  ;;  %v3331_v49 = vld [vmem:[%s3778_s7 + $0x54] sm:$0xf] }
  0xee   : > { %1757 = vmatmul.bf16.gmra.mxu1 %v1677_v58  ;;  %1952 = vmatmul.bf16.gmra.mxu2 %v3520_v61  ;;  %v4451_v9 = vadd.f32 %v1505_v62, %v1163_v4  ;;  %v3399_v62 = vrot.slane %v3391_v34, 9  ;;  %v2118_v3 = vsel %vm3807_vm2, %v2113_v32, %v2117_v47  ;;  %v3160_v32 = vld [vmem:[%s3778_s7 + $0x3c] sm:$0xe] }
  0xef   : > { %v2239_v53 = vunpack.c.l.b16 %v2118_v3  ;;  %v3168_v35 = vrot.slane %v3160_v32, 9 }
  0xf0   : > { %2330 = vmatmul.bf16.gmra.mxu3 %v2250_v5  ;;  %v2122_v5 = vrot.slane %v2120_v15, 4  ;;  %v2433_v48 = vsel %vm3992_vm5, %v3399_v62, %v2432_v41 }
  0xf1   : > { %v935_v14 = vpop.f32.mrf.mxu2  ;;  %v2251_v15 = vpack.c.b16 %v2239_v53, %v2238_v33 }
  0xf2   : > { %v1508_v37 = vpop.f32.mrf.mxu0  ;;  %v969_v36 = vadd.f32 %v935_v14, %v707_v25  ;;  %v2435_v25 = vrot.slane %v4439_v8, 5  ;;  %v1616_v14 = vrot.slane %v4176_v57, 5  ;;  %v2126_v47 = vor.u32 %v2125_v56, %v2122_v5  ;;  %v4487_v56 = vld [vmem:[%s3778_s7 + $0x58] sm:$0xf] }
  0xf3   : > { %v708_v28 = vpop.f32.mrf.mxu1  ;;  %v1130_v58 = vpop.f32.mrf.mxu3 }
  0xf4   : > { %v709_v61 = vadd.f32 %v708_v28, %v4311_v59  ;;  %v1164_v26 = vadd.f32 %v1130_v58, %v969_v36  ;;  %v2135_v59 = vrot.slane %v2133_v27, 4  ;;  %v2436_v8 = vsel %vm3992_vm5, %v2434_v6, %v2435_v25 }
  0xf5   : > { %2580 = vmatmul.bf16.gmra.mxu0 %v2500_v13  ;;  %v1678_v13 = vpack.c.b16 %v1666_v46, %v1665_v42  ;;  %v2488_v28 = vunpack.c.l.b16 %v2433_v48  ;;  %v2489_v44 = vunpack.c.l.b16 %v2436_v8  ;;  %v1618_v57 = vrot.slane %v1616_v14, 4 }
  0xf6   : > { %v4464_v4 = vadd.f32 %v1508_v37, %v1164_v26  ;;  %v2136_v34 = vor.u32 %v2135_v59, %v2131_v20  ;;  %v2139_v37 = vshll.u32 %v4467_v10, 16  ;;  %v1619_v27 = vrot.slane %v4191_v16, 5  ;;  %v3392_v26 = vld [vmem:[%s3778_s7 + $0x48] sm:$0xe] }
  0xf7   : > { %v2127_v58 = vrot.slane %v2126_v47, 4  ;;  %v2439_v42 = vrot.slane %v4446_v30, 5  ;;  %v1617_v5 = vsel %vm3992_vm5, %v3168_v35, %v1616_v14  ;;  %v3400_v33 = vrot.slane %v3392_v26, 9  ;;  %v3161_v26 = vld [vmem:[%s3778_s7 + $0x48] sm:$0xe] }
  0xf8   : > { %v2141_v62 = vrot.slane %v2139_v37, 5  ;;  %v1620_v59 = vsel %vm3992_vm5, %v1618_v57, %v1619_v27  ;;  %v2147_v8 = vshll.u32 %v3331_v49, 16  ;;  %v2153_v14 = vshll.u32 %v4487_v56, 16  ;;  %v3522_v27 = vld [vmem:[%s3778_s7 + $0x48] sm:$0xff] }
  0xf9   : > { %v937_v17 = vpop.f32.mrf.mxu2  ;;  %v2132_v30 = vsel %vm3807_vm2, %v2127_v58, %v2131_v20  ;;  %v1667_v20 = vunpack.c.l.b16 %v1617_v5  ;;  %v1668_v32 = vunpack.c.l.b16 %v1620_v59  ;;  %v1623_v58 = vrot.slane %v4212_v38, 5 }
  0xfa   : > { %v1510_v63 = vpop.f32.mrf.mxu0  ;;  %v970_v22 = vadd.f32 %v937_v17, %v709_v61  ;;  %v2137_v61 = vrot.slane %v2136_v34, 4  ;;  %v2240_v34 = vunpack.c.l.b16 %v2132_v30  ;;  %v3169_v59 = vrot.slane %v3161_v26, 9 }
  0xfb   : > { %v711_v51 = vpop.f32.mrf.mxu1  ;;  %v1132_v36 = vpop.f32.mrf.mxu3  ;;  %v1679_v57 = vpack.c.b16 %v1668_v32, %v1667_v20  ;;  %v1625_v30 = vrot.slane %v1623_v58, 4  ;;  %v1626_v38 = vrot.slane %v4226_v24, 5  ;;  %v2446_v32 = vrot.slane %v4487_v56, 5 }
  0xfc   : > { %v712_v39 = vadd.f32 %v711_v51, %v4331_v23  ;;  %v1165_v41 = vadd.f32 %v1132_v36, %v970_v22  ;;  %v2501_v23 = vpack.c.b16 %v2489_v44, %v2488_v28  ;;  %v2142_v17 = vsel %vm3807_vm2, %v2137_v61, %v2141_v62  ;;  %v4508_v61 = vld [vmem:[%s3778_s7 + $0x5c] sm:$0x1] }
  0xfd   : > { %v2442_v22 = vrot.slane %v4467_v10, 5  ;;  %v2157_v51 = vshrl.u32 %v4487_v56, 16  ;;  %v2440_v10 = vsel %vm3992_vm5, %v3400_v33, %v2439_v42  ;;  %v1624_v20 = vsel %vm3992_vm5, %v3169_v59, %v1623_v58 }
  0xfe   : > { %1762 = vmatmul.bf16.gmra.mxu1 %v1678_v13  ;;  %1957 = vmatmul.bf16.gmra.mxu2 %v3521_v60  ;;  %v4482_v3 = vadd.f32 %v1510_v63, %v1165_v41  ;;  %v2441_v63 = vrot.slane %v2439_v42, 4  ;;  %v2144_v13 = vshrl.u32 %v3331_v49, 16  ;;  %v2149_v41 = vrot.slane %v2147_v8, 5 }
  0xff   : > { %v2159_v28 = vrot.slane %v2157_v51, 4  ;;  %v1627_v24 = vsel %vm3992_vm5, %v1625_v30, %v1626_v38  ;;  %v2449_v58 = vrot.slane %v4508_v61, 5  ;;  %v3523_v38 = vld [vmem:[%s3778_s7 + $0x54] sm:$0xff] }
 0x100   : > { %2335 = vmatmul.bf16.gmra.mxu3 %v2251_v15  ;;  %v2443_v37 = vsel %vm3992_vm5, %v2441_v63, %v2442_v22  ;;  %v2155_v15 = vrot.slane %v2153_v14, 5 }
 0x101   : > { %v940_v46 = vpop.f32.mrf.mxu2  ;;  %v2491_v49 = vunpack.c.l.b16 %v2443_v37 }
 0x102   : > { %v1513_v6 = vpop.f32.mrf.mxu0  ;;  %v971_v25 = vadd.f32 %v940_v46, %v712_v39  ;;  %v2146_v39 = vrot.slane %v2144_v13, 4  ;;  %v2490_v46 = vunpack.c.l.b16 %v2440_v10  ;;  %v2160_v5 = vor.u32 %v2159_v28, %v2155_v15 }
 0x103   : > { %v713_v16 = vpop.f32.mrf.mxu1  ;;  %v1135_v53 = vpop.f32.mrf.mxu3  ;;  %v1669_v28 = vunpack.c.l.b16 %v1624_v20 }
 0x104   : > { %v714_v48 = vadd.f32 %v713_v16, %v4347_v19  ;;  %v1166_v60 = vadd.f32 %v1135_v53, %v971_v25  ;;  %v2241_v19 = vunpack.c.l.b16 %v2142_v17  ;;  %v2150_v25 = vor.u32 %v2149_v41, %v2146_v39  ;;  %v3334_v53 = vld [vmem:[%s3778_s7 + $0x60] sm:$0xf] }
 0x105   : > { %2585 = vmatmul.bf16.gmra.mxu0 %v2501_v23  ;;  %v2163_v16 = vshll.u32 %v4508_v61, 16  ;;  %v2502_v33 = vpack.c.b16 %v2491_v49, %v2490_v46  ;;  %v2161_v22 = vrot.slane %v2160_v5, 4  ;;  %v2171_v10 = vshll.u32 %v3334_v53, 16 }
 0x106   : > { %v4499_v47 = vadd.f32 %v1513_v6, %v1166_v60  ;;  %v2252_v23 = vpack.c.b16 %v2241_v19, %v2240_v34  ;;  %v2151_v63 = vrot.slane %v2150_v25, 4  ;;  %v4516_v60 = vld [vmem:[%s3778_s7 + $0x64] sm:$0xf]  ;;  %v2168_v19 = vshrl.u32 %v3334_v53, 16 }
 0x107   : > { %v2165_v13 = vrot.slane %v2163_v16, 5  ;;  %v2181_v39 = vshrl.u32 %v4516_v60, 16  ;;  %v2173_v26 = vrot.slane %v2171_v10, 5 }
 0x109   : > { %v942_v36 = vpop.f32.mrf.mxu2  ;;  %v2166_v56 = vsel %vm3807_vm2, %v2161_v22, %v2165_v13  ;;  %v2183_v49 = vrot.slane %v2181_v39, 4  ;;  %v2453_v39 = vrot.slane %v4516_v60, 5 }
 0x10a   : > { %v1515_v44 = vpop.f32.mrf.mxu0  ;;  %v972_v35 = vadd.f32 %v942_v36, %v714_v48  ;;  %v2177_v36 = vshll.u32 %v4516_v60, 16  ;;  %v2243_v5 = vunpack.c.l.b16 %v2166_v56 }
 0x10b   : > { %v716_v62 = vpop.f32.mrf.mxu1  ;;  %v1137_v42 = vpop.f32.mrf.mxu3 }
 0x10c   : > { %v1167_v6 = vadd.f32 %v1137_v42, %v972_v35  ;;  %v717_v17 = vadd.f32 %v716_v62, %v4302_v12  ;;  %v3393_v12 = vld [vmem:[%s3778_s7 + $0x54] sm:$0xe]  ;;  %v2170_v62 = vrot.slane %v2168_v19, 4  ;;  %v2179_v46 = vrot.slane %v2177_v36, 5  ;;  %v3394_v36 = vld [vmem:[%s3778_s7 + $0x60] sm:$0xe] }
 0x10d   : > { %v3401_v35 = vrot.slane %v3393_v12, 9 }
 0x10e   : > { %1767 = vmatmul.bf16.gmra.mxu1 %v1679_v57  ;;  %1962 = vmatmul.bf16.gmra.mxu2 %v3522_v27  ;;  %v4518_v8 = vadd.f32 %v1515_v44, %v1167_v6  ;;  %v1670_v44 = vunpack.c.l.b16 %v1627_v24  ;;  %v2156_v57 = vsel %vm3807_vm2, %v2151_v63, %v2155_v15  ;;  %v2448_v27 = vrot.slane %v2446_v32, 4  ;;  %v3336_v15 = vld [vmem:[%s3778_s7 + $0x68] sm:$0x1]  ;;  %v3162_v63 = vld [vmem:[%s3778_s7 + $0x54] sm:$0xe] }
 0x10f   : > { %v2242_v25 = vunpack.c.l.b16 %v2156_v57  ;;  %v2447_v61 = vsel %vm3992_vm5, %v3401_v35, %v2446_v32  ;;  %v2174_v53 = vor.u32 %v2173_v26, %v2170_v62  ;;  %v2184_v22 = vor.u32 %v2183_v49, %v2179_v46 }
 0x110   : > { %2340 = vmatmul.bf16.gmra.mxu3 %v2252_v23  ;;  %v1680_v30 = vpack.c.b16 %v1670_v44, %v1669_v28  ;;  %v2187_v13 = vshll.u32 %v3336_v15, 16  ;;  %v2492_v20 = vunpack.c.l.b16 %v2447_v61  ;;  %v3170_v12 = vrot.slane %v3162_v63, 9  ;;  %v3337_v44 = vld [vmem:[%s3778_s7 + $0x6c] sm:$0xf] }
 0x111   : > { %v945_v48 = vpop.f32.mrf.mxu2  ;;  %v2175_v19 = vrot.slane %v2174_v53, 4  ;;  %v2185_v10 = vrot.slane %v2184_v22, 4  ;;  %v3402_v62 = vrot.slane %v3394_v36, 9  ;;  %v2455_v49 = vrot.slane %v2453_v39, 4 }
 0x112   : > { %v1518_v14 = vpop.f32.mrf.mxu0  ;;  %v973_v51 = vadd.f32 %v945_v48, %v717_v17  ;;  %v2450_v17 = vsel %vm3992_vm5, %v2448_v27, %v2449_v58  ;;  %v4552_v27 = vld [vmem:[%s3778_s7 + $0x70] sm:$0xf] }
 0x113   : > { %v718_v34 = vpop.f32.mrf.mxu1  ;;  %v1140_v37 = vpop.f32.mrf.mxu3  ;;  %v2493_v24 = vunpack.c.l.b16 %v2450_v17  ;;  %v2180_v60 = vsel %vm3807_vm2, %v2175_v19, %v2179_v46  ;;  %v3163_v19 = vld [vmem:[%s3778_s7 + $0x60] sm:$0xe] }
 0x114   : > { %v1168_v41 = vadd.f32 %v1140_v37, %v973_v51  ;;  %v719_v23 = vadd.f32 %v718_v34, %v4321_v11  ;;  %v1630_v11 = vrot.slane %v4244_v21, 5  ;;  %v2253_v51 = vpack.c.b16 %v2243_v5, %v2242_v25 }
 0x115   : > { %2590 = vmatmul.bf16.gmra.mxu0 %v2502_v33  ;;  %v1633_v34 = vrot.slane %v4261_v55, 5  ;;  %v2189_v37 = vrot.slane %v2187_v13, 5  ;;  %v2192_v25 = vshrl.u32 %v3337_v44, 16  ;;  %v2244_v17 = vunpack.c.l.b16 %v2180_v60 }
 0x116   : > { %v4533_v42 = vadd.f32 %v1518_v14, %v1168_v41  ;;  %v1632_v32 = vrot.slane %v1630_v11, 4  ;;  %v2503_v41 = vpack.c.b16 %v2493_v24, %v2492_v20  ;;  %v1631_v55 = vsel %vm3992_vm5, %v3170_v12, %v1630_v11  ;;  %v3524_v12 = vld [vmem:[%s3778_s7 + $0x60] sm:$0xff] }
 0x117   : > { %v2194_v63 = vrot.slane %v2192_v25, 4 }
 0x119   : > { %v947_v6 = vpop.f32.mrf.mxu2 }
 0x11a   : > { %v1520_v16 = vpop.f32.mrf.mxu0  ;;  %v974_v59 = vadd.f32 %v947_v6, %v719_v23  ;;  %v2190_v23 = vsel %vm3807_vm2, %v2185_v10, %v2189_v37  ;;  %v2456_v6 = vrot.slane %v3336_v15, 5  ;;  %v2454_v15 = vsel %vm3992_vm5, %v3402_v62, %v2453_v39 }
 0x11b   : > { %v721_v33 = vpop.f32.mrf.mxu1  ;;  %v1142_v48 = vpop.f32.mrf.mxu3  ;;  %v2245_v11 = vunpack.c.l.b16 %v2190_v23  ;;  %v2494_v37 = vunpack.c.l.b16 %v2454_v15 }
 0x11c   : > { %v1169_v14 = vadd.f32 %v1142_v48, %v974_v59  ;;  %v722_v21 = vadd.f32 %v721_v33, %v4337_v54  ;;  %v1634_v54 = vsel %vm3992_vm5, %v1632_v32, %v1633_v34  ;;  %v2201_v59 = vshll.u32 %v4552_v27, 16 }
 0x11d   : > { %v1672_v61 = vunpack.c.l.b16 %v1634_v54  ;;  %v2457_v53 = vsel %vm3992_vm5, %v2455_v49, %v2456_v6  ;;  %v1637_v32 = vrot.slane %v4279_v52, 5  ;;  %v2254_v10 = vpack.c.b16 %v2245_v11, %v2244_v17 }
 0x11e   : > { %1772 = vmatmul.bf16.gmra.mxu1 %v1680_v30  ;;  %1967 = vmatmul.bf16.gmra.mxu2 %v3523_v38  ;;  %v4549_v35 = vadd.f32 %v1520_v16, %v1169_v14  ;;  %v2195_v16 = vshll.u32 %v3337_v44, 16  ;;  %v2205_v30 = vshrl.u32 %v4552_v27, 16  ;;  %v1671_v38 = vunpack.c.l.b16 %v1631_v55 }
 0x11f   : > { %v2203_v13 = vrot.slane %v2201_v59, 5  ;;  %v2495_v36 = vunpack.c.l.b16 %v2457_v53 }
 0x120   : > { %2345 = vmatmul.bf16.gmra.mxu3 %v2253_v51  ;;  %v2197_v22 = vrot.slane %v2195_v16, 5  ;;  %v2207_v14 = vrot.slane %v2205_v30, 4  ;;  %v1681_v24 = vpack.c.b16 %v1672_v61, %v1671_v38  ;;  %v3395_v16 = vld [vmem:[%s3778_s7 + $0x6c] sm:$0xe] }
 0x121   : > { %v950_v28 = vpop.f32.mrf.mxu2  ;;  %v2504_v54 = vpack.c.b16 %v2495_v36, %v2494_v37  ;;  %v3403_v17 = vrot.slane %v3395_v16, 9 }
 0x122   : > { %v1523_v57 = vpop.f32.mrf.mxu0  ;;  %v975_v56 = vadd.f32 %v950_v28, %v722_v21  ;;  %v2208_v28 = vor.u32 %v2207_v14, %v2203_v13 }
 0x123   : > { %v723_v58 = vpop.f32.mrf.mxu1  ;;  %v1145_v26 = vpop.f32.mrf.mxu3 }
 0x124   : > { %v1170_v5 = vadd.f32 %v1145_v26, %v975_v56  ;;  %v724_v33 = vadd.f32 %v723_v58, %v4363_v29  ;;  %v3339_v29 = vld [vmem:[%s3778_s7 + $0x74] sm:$0x1]  ;;  %v1639_v56 = vrot.slane %v1637_v32, 4  ;;  %v1640_v58 = vrot.slane %v4298_v45, 5 }
 0x125   : > { %2595 = vmatmul.bf16.gmra.mxu0 %v2503_v41  ;;  %v2198_v41 = vor.u32 %v2197_v22, %v2194_v63  ;;  %v2211_v44 = vshll.u32 %v3339_v29, 16  ;;  %v2209_v26 = vrot.slane %v2208_v28, 4  ;;  %v2460_v45 = vrot.slane %v4552_v27, 5 }
 0x126   : > { %v4564_v46 = vadd.f32 %v1523_v57, %v1170_v5  ;;  %v3171_v57 = vrot.slane %v3163_v19, 9  ;;  %v1641_v5 = vsel %vm3992_vm5, %v1639_v56, %v1640_v58  ;;  %v2463_v53 = vrot.slane %v3339_v29, 5 }
 0x127   : > { %v2199_v62 = vrot.slane %v2198_v41, 4  ;;  %v2213_v23 = vrot.slane %v2211_v44, 5  ;;  %v1674_v61 = vunpack.c.l.b16 %v1641_v5  ;;  %v2462_v15 = vrot.slane %v2460_v45, 4 }
 0x128   : > { %v1638_v25 = vsel %vm3992_vm5, %v3171_v57, %v1637_v32  ;;  %v2461_v32 = vsel %vm3992_vm5, %v3403_v17, %v2460_v45 }
 0x129   : > { %v952_v48 = vpop.f32.mrf.mxu2  ;;  %v1673_v38 = vunpack.c.l.b16 %v1638_v25  ;;  %v2214_v11 = vsel %vm3807_vm2, %v2209_v26, %v2213_v23  ;;  %v2464_v31 = vsel %vm3992_vm5, %v2462_v15, %v2463_v53 }
 0x12a   : > { %v1525_v51 = vpop.f32.mrf.mxu0  ;;  %v976_v20 = vadd.f32 %v952_v48, %v724_v33  ;;  %v2204_v33 = vsel %vm3807_vm2, %v2199_v62, %v2203_v13  ;;  %v2247_v14 = vunpack.c.l.b16 %v2214_v11 }
 0x12b   : > { %v726_v34 = vpop.f32.mrf.mxu1  ;;  %v1147_v21 = vpop.f32.mrf.mxu3  ;;  %v2246_v22 = vunpack.c.l.b16 %v2204_v33 }
 0x12c   : > { %v1171_v39 = vadd.f32 %v1147_v21, %v976_v20  ;;  %v727_v52 = vadd.f32 %v726_v34, %v4308_v50  ;;  %v2496_v21 = vunpack.c.l.b16 %v2461_v32 }
 0x12d   : > { %v2255_v19 = vpack.c.b16 %v2247_v14, %v2246_v22 }
 0x12e   : > { %1777 = vmatmul.bf16.gmra.mxu1 %v1681_v24  ;;  %1972 = vmatmul.bf16.gmra.mxu2 %v3524_v12  ;;  %v4576_v55 = vadd.f32 %v1525_v51, %v1171_v39  ;;  %v1682_v24 = vpack.c.b16 %v1674_v61, %v1673_v38  ;;  %v3525_v12 = vld [vmem:[%s3778_s7 + $0x6c] sm:$0xff]  ;;  %s2816_s7 = sshll.u32 %s3688_s12, 3  ;;  %s2818_s12 = sshll.u32 %s4691_s13, 5 }
 0x12f   : > { %p202_p7 = scmp.lt.s32.totalorder %s2816_s7, 15 }
 0x130   : > { %2350 = vmatmul.bf16.gmra.mxu3 %v2254_v10  ;;  %v2497_v10 = vunpack.c.l.b16 %v2464_v31 }
 0x131   : > { %v955_v60 = vpop.f32.mrf.mxu2  ;;  %s4693_s7 = smov (!%p202_p7, %s2816_s7), 15 }
 0x132   : > { %v1528_v49 = vpop.f32.mrf.mxu0  ;;  %v977_v6 = vadd.f32 %v955_v60, %v727_v52  ;;  %v2505_v36 = vpack.c.b16 %v2497_v10, %v2496_v21  ;;  %s2817_s11 = sshll.u32 %s4693_s7, 1 }
 0x133   : > { %v728_v59 = vpop.f32.mrf.mxu1  ;;  %v1150_v30 = vpop.f32.mrf.mxu3  ;;  %s206_s21 = sadd.s32 %s2818_s12, %s2817_s11 }
 0x134   : > { %v1172_v50 = vadd.f32 %v1150_v30, %v977_v6  ;;  %v729_v27 = vadd.f32 %v728_v59, %v4324_v18  ;;  %s2819_s22 = sshll.u32 %s206_s21, 2 }
 0x135   : > { %2600 = vmatmul.bf16.gmra.mxu0 %v2504_v54  ;;  %s4620_s24 = scalar_lea.vmem %s4675_s3, %s2819_s22 }
 0x136   : > { %v4589_v48 = vadd.f32 %v1528_v49, %v1172_v50 }
 0x139   : > { %v957_v63 = vpop.f32.mrf.mxu2 }
 0x13a   : > { %v1530_v51 = vpop.f32.mrf.mxu0  ;;  %v978_v20 = vadd.f32 %v957_v63, %v729_v27 }
 0x13b   : > { %v731_v13 = vpop.f32.mrf.mxu1  ;;  %v1152_v34 = vpop.f32.mrf.mxu3 }
 0x13c   : > { %v1173_v29 = vadd.f32 %v1152_v34, %v978_v20  ;;  %v732_v37 = vadd.f32 %v731_v13, %v4353_v1 }
 0x13e   : > { %1782 = vmatmul.bf16.gmra.mxu1 %v1682_v24  ;;  %1977 = vmatmul.bf16.gmra.mxu2 %v3525_v12  ;;  %v4597_v18 = vadd.f32 %v1530_v51, %v1173_v29 }
 0x140   : > { %2355 = vmatmul.bf16.gmra.mxu3 %v2255_v19 }
 0x141   : > { %v960_v39 = vpop.f32.mrf.mxu2 }
 0x142   : > { %v1533_v41 = vpop.f32.mrf.mxu0  ;;  %v979_v28 = vadd.f32 %v960_v39, %v732_v37 }
 0x143   : > { %v733_v43 = vpop.f32.mrf.mxu1  ;;  %v1155_v44 = vpop.f32.mrf.mxu3 }
 0x144   : > { %v1174_v57 = vadd.f32 %v1155_v44, %v979_v28  ;;  %v734_v58 = vadd.f32 %v733_v43, %v4373_v7 }
 0x145   : > { %2605 = vmatmul.bf16.gmra.mxu0 %v2505_v36 }
 0x146   : > { %v4600_v56 = vadd.f32 %v1533_v41, %v1174_v57 }
 0x149   : > { %v962_v52 = vpop.f32.mrf.mxu2 }
 0x14a   : > { %v1535_v54 = vpop.f32.mrf.mxu0  ;;  %v980_v60 = vadd.f32 %v962_v52, %v734_v58 }
 0x14b   : > { %v1748_v62 = vpop.f32.mrf.mxu1  ;;  %v1157_v26 = vpop.f32.mrf.mxu3 }
 0x14c   : > { %v1175_v1 = vadd.f32 %v1157_v26, %v980_v60  ;;  %v1788_v49 = vadd.f32 %v1748_v62, %v4394_v2  ;;  %v4612_v2 = vld [vmem:[%s4674_s2] ss:$0 sm:$0xff] }
 0x14e   : > { %v4604_v23 = vadd.f32 %v1535_v54, %v1175_v1 }
 0x151   : > { %v1943_v6 = vpop.f32.mrf.mxu2 }
 0x152   : > { %v2571_v25 = vpop.f32.mrf.mxu0  ;;  %v1983_v5 = vadd.f32 %v1943_v6, %v1788_v49 }
 0x153   : > { %v1750_v16 = vpop.f32.mrf.mxu1  ;;  %v2321_v45 = vpop.f32.mrf.mxu3 }
 0x154   : > { %v2361_v7 = vadd.f32 %v2321_v45, %v1983_v5  ;;  %v1789_v59 = vadd.f32 %v1750_v16, %v4412_v0 }
 0x156   : > { %v2611_v61 = vadd.f32 %v2571_v25, %v2361_v7 }
 0x158   : > { %v2647_v15 = vmul.f32 %v4612_v2, %v2611_v61  ;;  %vm2628_vm6 = vcmp.gt.f32.partialorder %v2611_v61, 0.0 }
 0x159   : > { %v1945_v30 = vpop.f32.mrf.mxu2 }
 0x15a   : > { %v2573_v50 = vpop.f32.mrf.mxu0  ;;  %v1984_v38 = vadd.f32 %v1945_v30, %v1789_v59  ;;  %v2663_v14 = vsel %vm2628_vm6, %v2611_v61, %v2647_v15 }
 0x15b   : > { %v1753_v17 = vpop.f32.mrf.mxu1  ;;  %v2323_v33 = vpop.f32.mrf.mxu3 }
 0x15c   : > { %v2362_v11 = vadd.f32 %v2323_v33, %v1984_v38  ;;  %v1790_v27 = vadd.f32 %v1753_v17, %v4429_v40 }
 0x15e   : > { %v2612_v53 = vadd.f32 %v2573_v50, %v2362_v11 }
 0x160   : > { %vm2629_vm7 = vcmp.gt.f32.partialorder %v2612_v53, 0.0  ;;  %v2648_v0 = vmul.f32 %v4612_v2, %v2612_v53 }
 0x161   : > { %v1948_v63 = vpop.f32.mrf.mxu2 }
 0x162   : > { %v2576_v22 = vpop.f32.mrf.mxu0  ;;  %v2664_v51 = vsel %vm2629_vm7, %v2612_v53, %v2648_v0  ;;  %v1985_v20 = vadd.f32 %v1948_v63, %v1790_v27 }
 0x163   : > { %v1755_v24 = vpop.f32.mrf.mxu1  ;;  %v3553_v12 = vpack.c.bf16 %v2664_v51, %v2663_v14  ;;  %v2326_v32 = vpop.f32.mrf.mxu3 }
 0x164   : > { %v2363_v31 = vadd.f32 %v2326_v32, %v1985_v20  ;;  %v1791_v13 = vadd.f32 %v1755_v24, %v4451_v9 }
 0x165   : > { %3554 = vst [vmem:[%s4620_s24] sm:$0xff] %v3553_v12  }
 0x166   : > { %v2613_v19 = vadd.f32 %v2576_v22, %v2363_v31 }
 0x168   : > { %v2649_v36 = vmul.f32 %v4612_v2, %v2613_v19  ;;  %vm2630_vm8 = vcmp.gt.f32.partialorder %v2613_v19, 0.0 }
 0x169   : > { %v1950_v34 = vpop.f32.mrf.mxu2 }
 0x16a   : > { %v2578_v40 = vpop.f32.mrf.mxu0  ;;  %v1986_v29 = vadd.f32 %v1950_v34, %v1791_v13  ;;  %v2665_v9 = vsel %vm2630_vm8, %v2613_v19, %v2649_v36 }
 0x16b   : > { %v1758_v21 = vpop.f32.mrf.mxu1  ;;  %v2328_v10 = vpop.f32.mrf.mxu3 }
 0x16c   : > { %v2364_v37 = vadd.f32 %v2328_v10, %v1986_v29  ;;  %v1792_v28 = vadd.f32 %v1758_v21, %v4464_v4 }
 0x16e   : > { %v2614_v39 = vadd.f32 %v2578_v40, %v2364_v37 }
 0x170   : > { %vm2631_vm9 = vcmp.gt.f32.partialorder %v2614_v39, 0.0  ;;  %v2650_v41 = vmul.f32 %v4612_v2, %v2614_v39 }
 0x171   : > { %v1953_v43 = vpop.f32.mrf.mxu2 }
 0x172   : > { %v2581_v44 = vpop.f32.mrf.mxu0  ;;  %v2666_v57 = vsel %vm2631_vm9, %v2614_v39, %v2650_v41  ;;  %v1987_v58 = vadd.f32 %v1953_v43, %v1792_v28 }
 0x173   : > { %v1760_v52 = vpop.f32.mrf.mxu1  ;;  %v3558_v54 = vpack.c.bf16 %v2666_v57, %v2665_v9  ;;  %v2331_v60 = vpop.f32.mrf.mxu3 }
 0x174   : > { %v2365_v62 = vadd.f32 %v2331_v60, %v1987_v58  ;;  %v1793_v26 = vadd.f32 %v1760_v52, %v4482_v3 }
 0x175   : > { %3590 = vst [vmem:[%s4620_s24 + $0x8] sm:$0xff] %v3558_v54  }
 0x176   : > { %v2615_v25 = vadd.f32 %v2581_v44, %v2365_v62 }
 0x178   : > { %v2651_v45 = vmul.f32 %v4612_v2, %v2615_v25  ;;  %vm2632_vm10 = vcmp.gt.f32.partialorder %v2615_v25, 0.0 }
 0x179   : > { %v1955_v1 = vpop.f32.mrf.mxu2 }
 0x17a   : > { %v2583_v49 = vpop.f32.mrf.mxu0  ;;  %v1988_v6 = vadd.f32 %v1955_v1, %v1793_v26  ;;  %v2667_v3 = vsel %vm2632_vm10, %v2615_v25, %v2651_v45 }
 0x17b   : > { %v1763_v5 = vpop.f32.mrf.mxu1  ;;  %v2333_v16 = vpop.f32.mrf.mxu3 }
 0x17c   : > { %v2366_v4 = vadd.f32 %v2333_v16, %v1988_v6  ;;  %v1794_v30 = vadd.f32 %v1763_v5, %v4499_v47 }
 0x17e   : > { %v2616_v7 = vadd.f32 %v2583_v49, %v2366_v4 }
 0x180   : > { %vm2633_vm11 = vcmp.gt.f32.partialorder %v2616_v7, 0.0  ;;  %v2652_v59 = vmul.f32 %v4612_v2, %v2616_v7 }
 0x181   : > { %v1958_v50 = vpop.f32.mrf.mxu2 }
 0x182   : > { %v2586_v38 = vpop.f32.mrf.mxu0  ;;  %v2668_v61 = vsel %vm2633_vm11, %v2616_v7, %v2652_v59  ;;  %v1989_v17 = vadd.f32 %v1958_v50, %v1794_v30 }
 0x183   : > { %v1765_v33 = vpop.f32.mrf.mxu1  ;;  %v3563_v11 = vpack.c.bf16 %v2668_v61, %v2667_v3  ;;  %v2336_v15 = vpop.f32.mrf.mxu3 }
 0x184   : > { %v2367_v53 = vadd.f32 %v2336_v15, %v1989_v17  ;;  %v1795_v0 = vadd.f32 %v1765_v33, %v4518_v8 }
 0x185   : > { %3591 = vst [vmem:[%s4620_s24 + $0x10] sm:$0xff] %v3563_v11  }
 0x186   : > { %v2617_v14 = vadd.f32 %v2586_v38, %v2367_v53 }
 0x188   : > { %v2653_v24 = vmul.f32 %v4612_v2, %v2617_v14  ;;  %vm2634_vm12 = vcmp.gt.f32.partialorder %v2617_v14, 0.0 }
 0x189   : > { %v1960_v27 = vpop.f32.mrf.mxu2 }
 0x18a   : > { %v2588_v63 = vpop.f32.mrf.mxu0  ;;  %v1990_v22 = vadd.f32 %v1960_v27, %v1795_v0  ;;  %v2669_v8 = vsel %vm2634_vm12, %v2617_v14, %v2653_v24 }
 0x18b   : > { %v1768_v51 = vpop.f32.mrf.mxu1  ;;  %v2338_v20 = vpop.f32.mrf.mxu3 }
 0x18c   : > { %v2368_v47 = vadd.f32 %v2338_v20, %v1990_v22  ;;  %v1796_v31 = vadd.f32 %v1768_v51, %v4533_v42 }
 0x18e   : > { %v2618_v12 = vadd.f32 %v2588_v63, %v2368_v47 }
 0x190   : > { %vm2635_vm13 = vcmp.gt.f32.partialorder %v2618_v12, 0.0  ;;  %v2654_v32 = vmul.f32 %v4612_v2, %v2618_v12 }
 0x191   : > { %v1963_v13 = vpop.f32.mrf.mxu2 }
 0x192   : > { %v2591_v34 = vpop.f32.mrf.mxu0  ;;  %v2670_v40 = vsel %vm2635_vm13, %v2618_v12, %v2654_v32  ;;  %v1991_v29 = vadd.f32 %v1963_v13, %v1796_v31 }
 0x193   : > { %v1770_v19 = vpop.f32.mrf.mxu1  ;;  %v3568_v21 = vpack.c.bf16 %v2670_v40, %v2669_v8  ;;  %v2341_v10 = vpop.f32.mrf.mxu3 }
 0x194   : > { %v2369_v37 = vadd.f32 %v2341_v10, %v1991_v29  ;;  %v1797_v36 = vadd.f32 %v1770_v19, %v4549_v35 }
 0x195   : > { %3592 = vst [vmem:[%s4620_s24 + $0x18] sm:$0xff] %v3568_v21  }
 0x196   : > { %v2619_v43 = vadd.f32 %v2591_v34, %v2369_v37 }
 0x198   : > { %v2655_v57 = vmul.f32 %v4612_v2, %v2619_v43  ;;  %vm2636_vm14 = vcmp.gt.f32.partialorder %v2619_v43, 0.0 }
 0x199   : > { %v1965_v39 = vpop.f32.mrf.mxu2 }
 0x19a   : > { %v2593_v41 = vpop.f32.mrf.mxu0  ;;  %v1992_v28 = vadd.f32 %v1965_v39, %v1797_v36  ;;  %v2671_v35 = vsel %vm2636_vm14, %v2619_v43, %v2655_v57 }
 0x19b   : > { %v1773_v44 = vpop.f32.mrf.mxu1  ;;  %v2343_v9 = vpop.f32.mrf.mxu3 }
 0x19c   : > { %v2370_v42 = vadd.f32 %v2343_v9, %v1992_v28  ;;  %v1798_v54 = vadd.f32 %v1773_v44, %v4564_v46 }
 0x19e   : > { %v2620_v58 = vadd.f32 %v2593_v41, %v2370_v42 }
 0x1a0   : > { %vm2637_vm15 = vcmp.gt.f32.partialorder %v2620_v58, 0.0  ;;  %v2656_v52 = vmul.f32 %v4612_v2, %v2620_v58 }
 0x1a1   : > { %v1968_v60 = vpop.f32.mrf.mxu2 }
 0x1a2   : > { %v2596_v62 = vpop.f32.mrf.mxu0  ;;  %v2672_v26 = vsel %vm2637_vm15, %v2620_v58, %v2656_v52  ;;  %v1993_v1 = vadd.f32 %v1968_v60, %v1798_v54 }
 0x1a3   : > { %v1775_v49 = vpop.f32.mrf.mxu1  ;;  %v3573_v6 = vpack.c.bf16 %v2672_v26, %v2671_v35  ;;  %v2346_v25 = vpop.f32.mrf.mxu3 }
 0x1a4   : > { %v2371_v5 = vadd.f32 %v2346_v25, %v1993_v1  ;;  %v1799_v16 = vadd.f32 %v1775_v49, %v4576_v55 }
 0x1a5   : > { %3593 = vst [vmem:[%s4620_s24 + $0x20] sm:$0xff] %v3573_v6  }
 0x1a6   : > { %v2621_v59 = vadd.f32 %v2596_v62, %v2371_v5 }
 0x1a8   : > { %v2657_v38 = vmul.f32 %v4612_v2, %v2621_v59  ;;  %vm2638_vm0 = vcmp.gt.f32.partialorder %v2621_v59, 0.0 }
 0x1a9   : > { %v1970_v4 = vpop.f32.mrf.mxu2 }
 0x1aa   : > { %v2598_v45 = vpop.f32.mrf.mxu0  ;;  %v1994_v7 = vadd.f32 %v1970_v4, %v1799_v16  ;;  %v2673_v55 = vsel %vm2638_vm0, %v2621_v59, %v2657_v38 }
 0x1ab   : > { %v1778_v30 = vpop.f32.mrf.mxu1  ;;  %v2348_v50 = vpop.f32.mrf.mxu3 }
 0x1ac   : > { %v2372_v46 = vadd.f32 %v2348_v50, %v1994_v7  ;;  %v1800_v17 = vadd.f32 %v1778_v30, %v4589_v48 }
 0x1ae   : > { %v2622_v3 = vadd.f32 %v2598_v45, %v2372_v46 }
 0x1b0   : > { %vm2639_vm1 = vcmp.gt.f32.partialorder %v2622_v3, 0.0  ;;  %v2658_v61 = vmul.f32 %v4612_v2, %v2622_v3 }
 0x1b1   : > { %v1973_v33 = vpop.f32.mrf.mxu2 }
 0x1b2   : > { %v2601_v11 = vpop.f32.mrf.mxu0  ;;  %v2674_v15 = vsel %vm2639_vm1, %v2622_v3, %v2658_v61  ;;  %v1995_v53 = vadd.f32 %v1973_v33, %v1800_v17 }
 0x1b3   : > { %v1780_v0 = vpop.f32.mrf.mxu1  ;;  %v3578_v27 = vpack.c.bf16 %v2674_v15, %v2673_v55  ;;  %v2351_v63 = vpop.f32.mrf.mxu3 }
 0x1b4   : > { %v2373_v22 = vadd.f32 %v2351_v63, %v1995_v53  ;;  %v1801_v14 = vadd.f32 %v1780_v0, %v4597_v18 }
 0x1b5   : > { %3594 = vst [vmem:[%s4620_s24 + $0x28] sm:$0xff] %v3578_v27  }
 0x1b6   : > { %v2623_v24 = vadd.f32 %v2601_v11, %v2373_v22 }
 0x1b8   : > { %v2659_v31 = vmul.f32 %v4612_v2, %v2623_v24  ;;  %vm2640_vm2 = vcmp.gt.f32.partialorder %v2623_v24, 0.0 }
 0x1b9   : > { %v1975_v51 = vpop.f32.mrf.mxu2 }
 0x1ba   : > { %v2603_v20 = vpop.f32.mrf.mxu0  ;;  %v1996_v47 = vadd.f32 %v1975_v51, %v1801_v14  ;;  %v2675_v29 = vsel %vm2640_vm2, %v2623_v24, %v2659_v31 }
 0x1bb   : > { %v1783_v12 = vpop.f32.mrf.mxu1  ;;  %v2353_v32 = vpop.f32.mrf.mxu3 }
 0x1bc   : > { %v2374_v48 = vadd.f32 %v2353_v32, %v1996_v47  ;;  %v1802_v8 = vadd.f32 %v1783_v12, %v4600_v56 }
 0x1be   : > { %v2624_v13 = vadd.f32 %v2603_v20, %v2374_v48 }
 0x1c0   : > { %vm2641_vm3 = vcmp.gt.f32.partialorder %v2624_v13, 0.0  ;;  %v2660_v34 = vmul.f32 %v4612_v2, %v2624_v13 }
 0x1c1   : > { %v1978_v40 = vpop.f32.mrf.mxu2 }
 0x1c2   : > { %v2676_v18 = vsel %vm2641_vm3, %v2624_v13, %v2660_v34  ;;  %v1997_v19 = vadd.f32 %v1978_v40, %v1802_v8  ;;  %v2606_v10 = vpop.f32.mrf.mxu0 }
 0x1c3   : > { %v3583_v21 = vpack.c.bf16 %v2676_v18, %v2675_v29  ;;  %v2356_v37 = vpop.f32.mrf.mxu3  ;;  %v1785_v36 = vpop.f32.mrf.mxu1 }
 0x1c4   : > { %v2375_v39 = vadd.f32 %v2356_v37, %v1997_v19  ;;  %v1803_v41 = vadd.f32 %v1785_v36, %v4604_v23 }
 0x1c5   : > { %3595 = vst [vmem:[%s4620_s24 + $0x30] sm:$0xff] %v3583_v21  }
 0x1c6   : > { %v2625_v44 = vadd.f32 %v2606_v10, %v2375_v39 }
 0x1c8   : > { %v2661_v56 = vmul.f32 %v4612_v2, %v2625_v44  ;;  %vm2642_vm4 = vcmp.gt.f32.partialorder %v2625_v44, 0.0 }
 0x1c9   : > { %v1980_v28 = vpop.f32.mrf.mxu2 }
 0x1ca   : > { %v1998_v43 = vadd.f32 %v1980_v28, %v1803_v41  ;;  %v2608_v57 = vpop.f32.mrf.mxu0  ;;  %v2677_v54 = vsel %vm2642_vm4, %v2625_v44, %v2661_v56 }
 0x1cb   : > { %v2358_v9 = vpop.f32.mrf.mxu3 }
 0x1cc   : > { %v2376_v42 = vadd.f32 %v2358_v9, %v1998_v43 }
 0x1ce   : > { %v2626_v58 = vadd.f32 %v2608_v57, %v2376_v42 }
 0x1d0   : > { %vm2643_vm5 = vcmp.gt.f32.partialorder %v2626_v58, 0.0  ;;  %v2662_v52 = vmul.f32 %v4612_v2, %v2626_v58 }
 0x1d2   : > { %v2678_v60 = vsel %vm2643_vm5, %v2626_v58, %v2662_v52 }
 0x1d3   : > { %v3588_v62 = vpack.c.bf16 %v2678_v60, %v2677_v54 }
 0x1d5   : > { %3596 = vst [vmem:[%s4620_s24 + $0x38] sm:$0xff] %v3588_v62  }
 0x1d6 PF: > { %s13_s16 = sadd.s32 1, %s3704_s16   ;;  %s4680_s12 = smov %s3696_s14 }
 0x1d7   : > { %p10_p8 = scmp.ge.s32.totalorder %s13_s16, 6   ;;  %s4681_s13 = smov %s3700_s15 }
 0x1d8   : > { %s4682_s14 = smov %s4685_s17  ;;  %s4683_s15 = smov %s4689_s18 }
 0x1d9   :  { %12 = sbr.rel (!%p10_p8) target bundleno = 3 (0x3), region = 72 }

// kernel: encoder_block.3
= control target key start
LH: loop header
LB: loop body
LE: loop exit
PB: predicated region body
PF: predicated region fallthrough
CT: control target
= control target key end

     0   :  { %s4112_s18 = smov 0   ;;  %s4114_s19 = smov 0   ;;  %s5076_s0 = inlined_call_operand.vmem [shape: bf16[2,1,9,9,512], index: 0, kind: input, shape index: {}]   ;;  %s5077_s1 = inlined_call_operand.vmem [shape: bf16[4,512,128], index: 1, kind: input, shape index: {}]   ;;  %s5078_s2 = inlined_call_operand.vmem [shape: f32[1,128], index: 2, kind: input, shape index: {}]   ;;  %s5079_s3 = inlined_call_operand.vmem [shape: bf16[2,8,8,128], index: 3, kind: input, shape index: {}]   ;;  %s5080_s4 = inlined_call_operand.vmem [shape: bf16[128,128], index: 4, kind: input, shape index: {}]   ;;  %s5081_s5 = inlined_call_operand.vmem [shape: f32[2,8,8,128], index: 5, kind: output, shape index: {}]  }
   0x1   :  { %s4116_s20 = smov 0  }
   0x2 LB: > { %s27_s21 = sadd.s32 1, %s4076_s19  ;;  %p2906_p0 = scmp.ge.s32.totalorder %s4080_s20, 1  ;;  %s4080_s20 = sphi %s4116_s20, %s15_s20   ;;  %s4076_s19 = sphi %s4114_s19, %s5085_s19   ;;  %s4072_s18 = sphi %s4112_s18, %s5084_s18  }
   0x3   : > { %p29_p1 = scmp.ge.s32.totalorder %s27_s21, 2  ;;  %p224_p2 = scmp.lt.s32.totalorder %s4080_s20, 3 }
   0x5   : > { %s5087_s21 = smov (%p29_p1, %s27_s21), 0  ;;  %p225_p3 = pnand %p2906_p0, %p224_p2 }
   0x6   : > { %p269_p4 = scmp.lt.s32.totalorder (!%p225_p3), %s4072_s18, 1 }
   0x7   : > { %228 = sbr.rel (%p225_p3) target bundleno = 464 (0x1d0), region = 40 }
   0xc   : > { %v3899_v0 = vld [vmem:[%s5077_s1 + $0x138] sm:$0xff]  ;;  %v3898_v2 = vld [vmem:[%s5077_s1 + $0x130] sm:$0xff]  ;;  %s5089_s18 = smov (!%p269_p4, %s4072_s18), 1  ;;  %v3897_v6 = vld [vmem:[%s5077_s1 + $0x128] sm:$0xff]  ;;  %vm394_vm0 = vsmask.f32 3328 }
   0xd   : > { %v3915_v1 = vld [vmem:[%s5077_s1 + $0x1b8] sm:$0xff]  ;;  %4016 = vmatpush.bf16.msra.mxu1 %v3899_v0  ;;  %942 = vmatpush.bf16.msra.mxu0 %v3899_v0  ;;  %v3914_v3 = vld [vmem:[%s5077_s1 + $0x1b0] sm:$0xff]  ;;  %s4032_s7 = smul.u32 288, %s5089_s18  ;;  %v3913_v7 = vld [vmem:[%s5077_s1 + $0x1a8] sm:$0xff]  ;;  %vm395_vm1 = vsmask.f32 7440 }
   0xe   : > { %1000 = vmatpush.bf16.msra.mxu2 %v3915_v1  ;;  %v3923_v4 = vld [vmem:[%s5077_s1 + $0x1f8] sm:$0xff]  ;;  %v3922_v5 = vld [vmem:[%s5077_s1 + $0x1f0] sm:$0xff]  ;;  %v3921_v8 = vld [vmem:[%s5077_s1 + $0x1e8] sm:$0xff]  ;;  %s3842_s12 = sshll.u32 %s5089_s18, 5  ;;  %s3843_s22 = sshll.u32 %s5089_s18, 6 }
   0xf   : > { %1029 = vmatpush.bf16.msra.mxu3 %v3923_v4  ;;  %s4160_s16 = scalar_lea.vmem %s5076_s0, %s4032_s7  ;;  %v3896_v12 = vld [vmem:[%s5077_s1 + $0x120] sm:$0xff]  ;;  %v3895_v42 = vld [vmem:[%s5077_s1 + $0x118] sm:$0xff]  ;;  %vm4187_vm2 = vmor %vm394_vm0, %vm395_vm1  ;;  %s4921_s15 = scalar_lea.vmem %s5079_s3, %s3842_s12 }
  0x10   : > { %v306_v9 = vld [vmem:[%s4160_s16 + $0x80] sm:$0xff]  ;;  %v386_v11 = vld [vmem:[%s4160_s16 + $0x90] sm:$0x11]  ;;  %v299_v47 = vld [vmem:[%s4160_s16 + $0x8] sm:$0xff]  ;;  %s5037_s25 = scalar_lea.vmem %s5081_s5, %s3843_s22 }
  0x11   : > { %4017 = vmatpush.bf16.msra.mxu1 %v3898_v2  ;;  %943 = vmatpush.bf16.msra.mxu0 %v3898_v2  ;;  %v308_v10 = vld [vmem:[%s4160_s16 + $0xa0] sm:$0xff]  ;;  %v388_v13 = vld [vmem:[%s4160_s16 + $0xb0] sm:$0x11]  ;;  %v510_v14 = vshrl.u32 %v306_v9, 16  ;;  %v513_v15 = vshll.u32 %v306_v9, 16  ;;  %v519_v16 = vshll.u32 %v386_v11, 16 }
  0x12   : > { %1001 = vmatpush.bf16.msra.mxu2 %v3914_v3  ;;  %v538_v17 = vshrl.u32 %v308_v10, 16  ;;  %v541_v18 = vshll.u32 %v308_v10, 16  ;;  %v547_v19 = vshll.u32 %v388_v13, 16  ;;  %v298_v20 = vld [vmem:[%s4160_s16] sm:$0xff]  ;;  %v378_v22 = vld [vmem:[%s4160_s16 + $0x10] sm:$0x11] }
  0x13   : > { %1030 = vmatpush.bf16.msra.mxu3 %v3922_v5  ;;  %v300_v21 = vld [vmem:[%s4160_s16 + $0x20] sm:$0xff]  ;;  %v512_v23 = vrot.slane %v510_v14, 4  ;;  %v515_v24 = vrot.slane %v513_v15, 5  ;;  %v521_v25 = vrot.slane %v519_v16, 5  ;;  %v380_v27 = vld [vmem:[%s4160_s16 + $0x30] sm:$0x11] }
  0x14   : > { %v540_v26 = vrot.slane %v538_v17, 4  ;;  %v3912_v28 = vld [vmem:[%s5077_s1 + $0x1a0] sm:$0xff]  ;;  %v543_v29 = vrot.slane %v541_v18, 5  ;;  %v549_v30 = vrot.slane %v547_v19, 5  ;;  %v398_v31 = vshrl.u32 %v298_v20, 16  ;;  %v3911_v48 = vld [vmem:[%s5077_s1 + $0x198] sm:$0xff] }
  0x15   : > { %4018 = vmatpush.bf16.msra.mxu1 %v3897_v6  ;;  %944 = vmatpush.bf16.msra.mxu0 %v3897_v6  ;;  %v401_v32 = vshll.u32 %v298_v20, 16  ;;  %v516_v33 = vor.u32 %v515_v24, %v512_v23  ;;  %v407_v34 = vshll.u32 %v378_v22, 16  ;;  %v426_v35 = vshrl.u32 %v300_v21, 16  ;;  %v3920_v38 = vld [vmem:[%s5077_s1 + $0x1e0] sm:$0xff]  ;;  %v379_v52 = vld [vmem:[%s4160_s16 + $0x18] sm:$0x11] }
  0x16   : > { %1002 = vmatpush.bf16.msra.mxu2 %v3913_v7  ;;  %v429_v36 = vshll.u32 %v300_v21, 16  ;;  %v544_v37 = vor.u32 %v543_v29, %v540_v26  ;;  %v400_v39 = vrot.slane %v398_v31, 4  ;;  %v435_v41 = vshll.u32 %v380_v27, 16  ;;  %v301_v55 = vld [vmem:[%s4160_s16 + $0x28] sm:$0xff]  ;;  %v3919_v61 = vld [vmem:[%s5077_s1 + $0x1d8] sm:$0xff]  ;;  %v3894_v63 = vld [vmem:[%s5077_s1 + $0x110] sm:$0xff] }
  0x17   : > { %1031 = vmatpush.bf16.msra.mxu3 %v3921_v8  ;;  %v403_v40 = vrot.slane %v401_v32, 5  ;;  %v517_v44 = vrot.slane %v516_v33, 4  ;;  %v428_v45 = vrot.slane %v426_v35, 4  ;;  %v409_v51 = vrot.slane %v407_v34, 5  ;;  %v3910_v3 = vld [vmem:[%s5077_s1 + $0x190] sm:$0xff]  ;;  %v310_v8 = vld [vmem:[%s4160_s16 + $0xc0] sm:$0xff] }
  0x18   : > { %v431_v46 = vrot.slane %v429_v36, 5  ;;  %v545_v49 = vrot.slane %v544_v37, 4  ;;  %v437_v54 = vrot.slane %v435_v41, 5  ;;  %v412_v56 = vshrl.u32 %v299_v47, 16  ;;  %v381_v5 = vld [vmem:[%s4160_s16 + $0x38] sm:$0x11] }
  0x19   : > { %4019 = vmatpush.bf16.msra.mxu1 %v3896_v12  ;;  %945 = vmatpush.bf16.msra.mxu0 %v3896_v12  ;;  %v404_v50 = vor.u32 %v403_v40, %v400_v39  ;;  %v415_v57 = vshll.u32 %v299_v47, 16  ;;  %v4199_v58 = vsel %vm4187_vm2, %v517_v44, %v521_v25  ;;  %v421_v62 = vshll.u32 %v379_v52, 16  ;;  %v312_v12 = vld [vmem:[%s4160_s16 + $0xe0] sm:$0xff]  ;;  %v390_v13 = vld [vmem:[%s4160_s16 + $0xd0] sm:$0x11]  ;;  %v3893_v19 = vld [vmem:[%s5077_s1 + $0x108] sm:$0xff] }
  0x1a   : > { %1003 = vmatpush.bf16.msra.mxu2 %v3912_v28  ;;  %v432_v53 = vor.u32 %v431_v46, %v428_v45  ;;  %v4203_v59 = vsel %vm4187_vm2, %v545_v49, %v549_v30  ;;  %v414_v1 = vrot.slane %v412_v56, 4  ;;  %v440_v6 = vshrl.u32 %v301_v55, 16  ;;  %v3918_v15 = vld [vmem:[%s5077_s1 + $0x1d0] sm:$0xff]  ;;  %v3909_v25 = vld [vmem:[%s5077_s1 + $0x188] sm:$0xff]  ;;  %v302_v34 = vld [vmem:[%s4160_s16 + $0x40] sm:$0xff] }
  0x1b   : > { %1032 = vmatpush.bf16.msra.mxu3 %v3920_v38  ;;  %v405_v60 = vrot.slane %v404_v50, 4  ;;  %v417_v2 = vrot.slane %v415_v57, 5  ;;  %v443_v7 = vshll.u32 %v301_v55, 16  ;;  %v702_v9 = vunpack.c.l.b16 %v4199_v58  ;;  %v392_v27 = vld [vmem:[%s4160_s16 + $0xf0] sm:$0x11]  ;;  %v3917_v38 = vld [vmem:[%s5077_s1 + $0x1c8] sm:$0xff] }
  0x1c   : > { %v433_v0 = vrot.slane %v432_v53, 4  ;;  %v706_v10 = vunpack.c.l.b16 %v4203_v59  ;;  %v423_v17 = vrot.slane %v421_v62, 5  ;;  %v442_v18 = vrot.slane %v440_v6, 4  ;;  %v382_v35 = vld [vmem:[%s4160_s16 + $0x50] sm:$0x11]  ;;  %v304_v41 = vld [vmem:[%s4160_s16 + $0x60] sm:$0xff] }
  0x1d   : > { %4020 = vmatpush.bf16.msra.mxu1 %v3895_v42  ;;  %946 = vmatpush.bf16.msra.mxu0 %v3895_v42  ;;  %v4216_v4 = vsel %vm4187_vm2, %v405_v60, %v409_v51  ;;  %v418_v16 = vor.u32 %v417_v2, %v414_v1  ;;  %v445_v20 = vrot.slane %v443_v7, 5  ;;  %v449_v21 = vshll.u32 %v381_v5, 16  ;;  %v3892_v42 = vld [vmem:[%s5077_s1 + $0x100] sm:$0xff]  ;;  %v3867_v49 = vld [vmem:[%s5077_s1 + $0x38] sm:$0xff] }
  0x1e   : > { %1004 = vmatpush.bf16.msra.mxu2 %v3911_v48  ;;  %v4224_v11 = vsel %vm4187_vm2, %v433_v0, %v437_v54  ;;  %v686_v14 = vunpack.c.l.b16 %v4216_v4  ;;  %v566_v22 = vshrl.u32 %v310_v8, 16  ;;  %v569_v23 = vshll.u32 %v310_v8, 16  ;;  %v3907_v48 = vld [vmem:[%s5077_s1 + $0x178] sm:$0xff]  ;;  %v3908_v55 = vld [vmem:[%s5077_s1 + $0x180] sm:$0xff]  ;;  %v384_v0 = vld [vmem:[%s4160_s16 + $0x70] sm:$0x11] }
  0x1f   : > { %1033 = vmatpush.bf16.msra.mxu3 %v3919_v61  ;;  %v690_v24 = vunpack.c.l.b16 %v4224_v11  ;;  %v419_v26 = vrot.slane %v418_v16, 4  ;;  %v575_v28 = vshll.u32 %v390_v13, 16  ;;  %v594_v29 = vshrl.u32 %v312_v12, 16  ;;  %v3883_v6 = vld [vmem:[%s5077_s1 + $0xb8] sm:$0xff] }
  0x20   : > { %v446_v30 = vor.u32 %v445_v20, %v442_v18  ;;  %v451_v31 = vrot.slane %v449_v21, 5  ;;  %v568_v32 = vrot.slane %v566_v22, 4  ;;  %v571_v33 = vrot.slane %v569_v23, 5  ;;  %v383_v21 = vld [vmem:[%s4160_s16 + $0x58] sm:$0x11] }
  0x21   : > { %4021 = vmatpush.bf16.msra.mxu1 %v3894_v63  ;;  %947 = vmatpush.bf16.msra.mxu0 %v3894_v63  ;;  %v726_v36 = vpack.c.b16 %v706_v10, %v702_v9  ;;  %v4244_v37 = vsel %vm4187_vm2, %v419_v26, %v423_v17  ;;  %v596_v39 = vrot.slane %v594_v29, 4  ;;  %v597_v40 = vshll.u32 %v312_v12, 16  ;;  %v3916_v63 = vld [vmem:[%s5077_s1 + $0x1c0] sm:$0xff]  ;;  %v303_v9 = vld [vmem:[%s4160_s16 + $0x48] sm:$0xff]  ;;  %v3906_v10 = vld [vmem:[%s5077_s1 + $0x170] sm:$0xff] }
  0x22   : > { %1005 = vmatpush.bf16.msra.mxu2 %v3910_v3  ;;  %v447_v44 = vrot.slane %v446_v30, 4  ;;  %v688_v45 = vunpack.c.l.b16 %v4244_v37  ;;  %v572_v46 = vor.u32 %v571_v33, %v568_v32  ;;  %v603_v47 = vshll.u32 %v392_v27, 16  ;;  %v3866_v12 = vld [vmem:[%s5077_s1 + $0x30] sm:$0xff]  ;;  %v3891_v22 = vld [vmem:[%s5077_s1 + $0xf8] sm:$0xff]  ;;  %v3905_v32 = vld [vmem:[%s5077_s1 + $0x168] sm:$0xff] }
  0x23   : > { %1034 = vmatpush.bf16.msra.mxu3 %v3918_v15  ;;  %v599_v50 = vrot.slane %v597_v40, 5  ;;  %v454_v51 = vshrl.u32 %v302_v34, 16  ;;  %v457_v52 = vshll.u32 %v302_v34, 16  ;;  %v463_v53 = vshll.u32 %v382_v35, 16  ;;  %v385_v30 = vld [vmem:[%s4160_s16 + $0x78] sm:$0x11] }
  0x24   : > { %v718_v54 = vpack.c.b16 %v690_v24, %v686_v14  ;;  %v452_v56 = vsel %vm4187_vm2, %v447_v44, %v451_v31  ;;  %v577_v57 = vrot.slane %v575_v28, 5  ;;  %v482_v60 = vshrl.u32 %v304_v41, 16  ;;  %v305_v24 = vld [vmem:[%s4160_s16 + $0x68] sm:$0xff]  ;;  %v3882_v31 = vld [vmem:[%s5077_s1 + $0xb0] sm:$0xff] }
  0x25   : > { %4022 = vmatpush.bf16.msra.mxu1 %v3893_v19  ;;  %948 = vmatpush.bf16.msra.mxu0 %v3893_v19  ;;  %v692_v61 = vunpack.c.l.b16 %v452_v56  ;;  %v600_v62 = vor.u32 %v599_v50, %v596_v39  ;;  %v456_v1 = vrot.slane %v454_v51, 4  ;;  %v459_v2 = vrot.slane %v457_v52, 5  ;;  %v3865_v33 = vld [vmem:[%s5077_s1 + $0x28] sm:$0xff] }
  0x26   : > { %1006 = vmatpush.bf16.msra.mxu2 %v3909_v25  ;;  %v573_v3 = vrot.slane %v572_v46, 4  ;;  %v605_v5 = vrot.slane %v603_v47, 5  ;;  %v484_v7 = vrot.slane %v482_v60, 4  ;;  %v485_v8 = vshll.u32 %v304_v41, 16 }
  0x27   : > { %1035 = vmatpush.bf16.msra.mxu3 %v3917_v38  ;;  %v720_v13 = vpack.c.b16 %v692_v61, %v688_v45  ;;  %v601_v14 = vrot.slane %v600_v62, 4  ;;  %v460_v15 = vor.u32 %v459_v2, %v456_v1  ;;  %v465_v16 = vrot.slane %v463_v53, 5  ;;  %v3881_v53 = vld [vmem:[%s5077_s1 + $0xa8] sm:$0xff] }
  0x28   : > { %v487_v17 = vrot.slane %v485_v8, 5  ;;  %v491_v18 = vshll.u32 %v384_v0, 16  ;;  %v689_v19 = vunpack.c.h.b16 %v4244_v37  ;;  %v693_v20 = vunpack.c.h.b16 %v452_v56  ;;  %v3864_v56 = vld [vmem:[%s5077_s1 + $0x20] sm:$0xff]  ;;  %v3889_v2 = vld [vmem:[%s5077_s1 + $0xe8] sm:$0xff] }
  0x29   : > { %4023 = vmatpush.bf16.msra.mxu1 %v3892_v42  ;;  %949 = vmatpush.bf16.msra.mxu0 %v3892_v42  ;;  %v461_v23 = vrot.slane %v460_v15, 4  ;;  %v468_v25 = vshrl.u32 %v303_v9, 16  ;;  %v471_v26 = vshll.u32 %v303_v9, 16  ;;  %v4297_v34 = vsel %vm4187_vm2, %v573_v3, %v577_v57  ;;  %v3890_v42 = vld [vmem:[%s5077_s1 + $0xf0] sm:$0xff]  ;;  %v3880_v8 = vld [vmem:[%s5077_s1 + $0xa0] sm:$0xff]  ;;  %v3903_v9 = vld [vmem:[%s5077_s1 + $0x158] sm:$0xff] }
  0x2a   : > { %1007 = vmatpush.bf16.msra.mxu2 %v3908_v55  ;;  %v488_v27 = vor.u32 %v487_v17, %v484_v7  ;;  %v493_v28 = vrot.slane %v491_v18, 5  ;;  %v721_v29 = vpack.c.b16 %v693_v20, %v689_v19  ;;  %v477_v37 = vshll.u32 %v383_v21, 16 }
  0x2b   : > { %1036 = vmatpush.bf16.msra.mxu3 %v3916_v63  ;;  %v470_v35 = vrot.slane %v468_v25, 4  ;;  %v4301_v38 = vsel %vm4187_vm2, %v601_v14, %v605_v5  ;;  %v4305_v39 = vsel %vm4187_vm2, %v461_v23, %v465_v16  ;;  %v496_v41 = vshrl.u32 %v305_v24, 16  ;;  %v387_v14 = vld [vmem:[%s4160_s16 + $0x98] sm:$0x11] }
  0x2c   : > { %960 = vmatmul.bf16.vlgmr.msra.gmra.mxu1 %v726_v36  ;;  %950 = vmatmul.bf16.vlgmr.msra.gmra.mxu0 %v718_v54  ;;  %v473_v36 = vrot.slane %v471_v26, 5  ;;  %v489_v40 = vrot.slane %v488_v27, 4  ;;  %v479_v45 = vrot.slane %v477_v37, 5  ;;  %v499_v46 = vshll.u32 %v305_v24, 16  ;;  %v3904_v54 = vld [vmem:[%s5077_s1 + $0x160] sm:$0xff]  ;;  %v3902_v26 = vld [vmem:[%s5077_s1 + $0x150] sm:$0xff] }
  0x2d   : > { %971 = vmatpush.bf16.msrb.mxu1 %v3907_v48  ;;  %1330 = vmatpush.bf16.msrb.mxu0 %v3867_v49  ;;  %v505_v47 = vshll.u32 %v385_v30, 16  ;;  %v307_v48 = vld [vmem:[%s4160_s16 + $0x88] sm:$0xff]  ;;  %v710_v50 = vunpack.c.l.b16 %v4297_v34  ;;  %v498_v52 = vrot.slane %v496_v41, 4  ;;  %v714_v55 = vunpack.c.l.b16 %v4301_v38  ;;  %v389_v23 = vld [vmem:[%s4160_s16 + $0xb8] sm:$0x11]  ;;  %v3862_v27 = vld [vmem:[%s5077_s1 + $0x10] sm:$0xff] }
  0x2e   : > { %1388 = vmatpush.bf16.msrb.mxu2 %v3883_v6  ;;  %1037 = vmatmul.bf16.vlgmr.msra.gmra.mxu3 %v721_v29  ;;  %v474_v44 = vor.u32 %v473_v36, %v470_v35  ;;  %v309_v49 = vld [vmem:[%s4160_s16 + $0xa8] sm:$0xff]  ;;  %v4315_v51 = vsel %vm4187_vm2, %v489_v40, %v493_v28  ;;  %v694_v57 = vunpack.c.l.b16 %v4305_v39  ;;  %v501_v61 = vrot.slane %v499_v46, 5  ;;  %v3879_v35 = vld [vmem:[%s5077_s1 + $0x98] sm:$0xff]  ;;  %v3888_v36 = vld [vmem:[%s5077_s1 + $0xe0] sm:$0xff] }
  0x2f   : > { %1008 = vmatmul.bf16.vlgmr.msra.gmra.mxu2 %v720_v13  ;;  %1417 = vmatpush.bf16.msrb.mxu3 %v3891_v22  ;;  %v698_v62 = vunpack.c.l.b16 %v4315_v51  ;;  %v524_v63 = vshrl.u32 %v307_v48, 16  ;;  %v527_v0 = vshll.u32 %v307_v48, 16  ;;  %v552_v1 = vshrl.u32 %v309_v49, 16  ;;  %v3901_v37 = vld [vmem:[%s5077_s1 + $0x148] sm:$0xff]  ;;  %v3887_v46 = vld [vmem:[%s5077_s1 + $0xd8] sm:$0xff] }
  0x30   : > { %v475_v60 = vrot.slane %v474_v44, 4  ;;  %v502_v5 = vor.u32 %v501_v61, %v498_v52  ;;  %v507_v6 = vrot.slane %v505_v47, 5  ;;  %v555_v7 = vshll.u32 %v309_v49, 16  ;;  %v3861_v40 = vld [vmem:[%s5077_s1 + $0x8] sm:$0xff]  ;;  %v3878_v47 = vld [vmem:[%s5077_s1 + $0x90] sm:$0xff] }
  0x31   : > { %972 = vmatpush.bf16.msrb.mxu1 %v3906_v10  ;;  %1331 = vmatpush.bf16.msrb.mxu0 %v3866_v12  ;;  %v3863_v10 = vld [vmem:[%s5077_s1 + $0x18] sm:$0xff]  ;;  %v526_v15 = vrot.slane %v524_v63, 4  ;;  %v529_v16 = vrot.slane %v527_v0, 5  ;;  %v554_v17 = vrot.slane %v552_v1, 4  ;;  %v730_v19 = vpack.c.b16 %v714_v55, %v710_v50  ;;  %v311_v49 = vld [vmem:[%s4160_s16 + $0xc8] sm:$0xff]  ;;  %v3900_v55 = vld [vmem:[%s5077_s1 + $0x140] sm:$0xff] }
  0x32   : > { %1389 = vmatpush.bf16.msrb.mxu2 %v3882_v31  ;;  %v480_v3 = vsel %vm4187_vm2, %v475_v60, %v479_v45  ;;  %v503_v12 = vrot.slane %v502_v5, 4  ;;  %v557_v18 = vrot.slane %v555_v7, 5  ;;  %v722_v20 = vpack.c.b16 %v698_v62, %v694_v57  ;;  %v313_v50 = vld [vmem:[%s4160_s16 + $0xe8] sm:$0xff]  ;;  %v3106_v57 = vld [vmem:[%s4160_s16] sm:$0xf]  ;;  %v3947_v60 = vld [vmem:[%s5077_s1 + $0x238] sm:$0xff] }
  0x33   : > { %1418 = vmatpush.bf16.msrb.mxu3 %v3890_v42  ;;  %v696_v13 = vunpack.c.l.b16 %v480_v3  ;;  %v697_v22 = vunpack.c.h.b16 %v480_v3  ;;  %v533_v28 = vshll.u32 %v387_v14, 16  ;;  %v530_v30 = vor.u32 %v529_v16, %v526_v15  ;;  %v3874_v5 = vld [vmem:[%s5077_s1 + $0x70] sm:$0xff]  ;;  %v391_v15 = vld [vmem:[%s4160_s16 + $0xd8] sm:$0x11] }
  0x34   : > { %v508_v21 = vsel %vm4187_vm2, %v503_v12, %v507_v6  ;;  %v558_v31 = vor.u32 %v557_v18, %v554_v17  ;;  %v703_v48 = vunpack.c.h.b16 %v4199_v58  ;;  %v707_v52 = vunpack.c.h.b16 %v4203_v59  ;;  %v3860_v58 = vld [vmem:[%s5077_s1] sm:$0xff]  ;;  %v393_v16 = vld [vmem:[%s4160_s16 + $0xf8] sm:$0x11]  ;;  %v3873_v18 = vld [vmem:[%s5077_s1 + $0x68] sm:$0xff] }
  0x35   : > { %973 = vmatpush.bf16.msrb.mxu1 %v3905_v32  ;;  %1332 = vmatpush.bf16.msrb.mxu0 %v3865_v33  ;;  %v700_v24 = vunpack.c.l.b16 %v508_v21  ;;  %v701_v25 = vunpack.c.h.b16 %v508_v21  ;;  %v561_v32 = vshll.u32 %v389_v23, 16  ;;  %v531_v41 = vrot.slane %v530_v30, 4  ;;  %v3846_v59 = vld [vmem:[%s4160_s16 + $0x1c] sm:$0xf0] }
  0x36   : > { %1390 = vmatpush.bf16.msrb.mxu2 %v3881_v53  ;;  %v535_v42 = vrot.slane %v533_v28, 5  ;;  %v559_v44 = vrot.slane %v558_v31, 4  ;;  %v687_v53 = vunpack.c.h.b16 %v4216_v4  ;;  %v4395_v61 = vpack.c.b16 %v707_v52, %v703_v48  ;;  %v3945_v28 = vld [vmem:[%s5077_s1 + $0x228] sm:$0xff] }
  0x37   : > { %1419 = vmatpush.bf16.msrb.mxu3 %v3889_v2  ;;  %v724_v29 = vpack.c.b16 %v700_v24, %v696_v13  ;;  %v725_v33 = vpack.c.b16 %v701_v25, %v697_v22  ;;  %v563_v45 = vrot.slane %v561_v32, 5  ;;  %v580_v62 = vshrl.u32 %v311_v49, 16  ;;  %v3946_v24 = vld [vmem:[%s5077_s1 + $0x230] sm:$0xff]  ;;  %v3877_v25 = vld [vmem:[%s5077_s1 + $0x88] sm:$0xff] }
  0x38   : > { %v536_v4 = vsel %vm4187_vm2, %v531_v41, %v535_v42  ;;  %v583_v63 = vshll.u32 %v311_v49, 16  ;;  %v608_v0 = vshrl.u32 %v313_v50, 16  ;;  %v611_v1 = vshll.u32 %v313_v50, 16  ;;  %v3870_v49 = vld [vmem:[%s5077_s1 + $0x50] sm:$0xff] }
  0x39   : > { %974 = vmatpush.bf16.msrb.mxu1 %v3904_v54  ;;  %1333 = vmatpush.bf16.msrb.mxu0 %v3864_v56  ;;  %v691_v54 = vunpack.c.h.b16 %v4224_v11  ;;  %v3875_v56 = vld [vmem:[%s5077_s1 + $0x78] sm:$0xff]  ;;  %v564_v11 = vsel %vm4187_vm2, %v559_v44, %v563_v45  ;;  %v3107_v3 = vor.u32 %v3846_v59, %v3106_v57  ;;  %v704_v6 = vunpack.c.l.b16 %v536_v4  ;;  %v3122_v45 = vld [vmem:[%s4160_s16 + $0x40] sm:$0xf] }
  0x3a   : > { %1391 = vmatpush.bf16.msrb.mxu2 %v3880_v8  ;;  %v708_v7 = vunpack.c.l.b16 %v564_v11  ;;  %v705_v8 = vunpack.c.h.b16 %v536_v4  ;;  %v585_v12 = vrot.slane %v583_v63, 5  ;;  %v610_v13 = vrot.slane %v608_v0, 4  ;;  %v3963_v57 = vld [vmem:[%s5077_s1 + $0x2b8] sm:$0xff]  ;;  %v3868_v59 = vld [vmem:[%s5077_s1 + $0x40] sm:$0xff] }
  0x3b   : > { %1420 = vmatpush.bf16.msrb.mxu3 %v3888_v36  ;;  %v719_v2 = vpack.c.b16 %v691_v54, %v687_v53  ;;  %v613_v14 = vrot.slane %v611_v1, 5  ;;  %v589_v21 = vshll.u32 %v391_v15, 16  ;;  %v617_v23 = vshll.u32 %v393_v16, 16  ;;  %v3943_v4 = vld [vmem:[%s5077_s1 + $0x218] sm:$0xff]  ;;  %v3854_v63 = vld [vmem:[%s4160_s16 + $0x9c] sm:$0xf0] }
  0x3c   : > { %965 = vmatmul.bf16.gmra.mxu1 %v730_v19  ;;  %955 = vmatmul.bf16.gmra.mxu0 %v722_v20  ;;  %v728_v17 = vpack.c.b16 %v708_v7, %v704_v6  ;;  %v711_v30 = vunpack.c.h.b16 %v4297_v34  ;;  %v715_v31 = vunpack.c.h.b16 %v4301_v38  ;;  %v3871_v34 = vld [vmem:[%s5077_s1 + $0x58] sm:$0xff]  ;;  %v695_v38 = vunpack.c.h.b16 %v4305_v39  ;;  %v3114_v1 = vld [vmem:[%s4160_s16 + $0x8] sm:$0xf]  ;;  %v3942_v6 = vld [vmem:[%s5077_s1 + $0x210] sm:$0xff] }
  0x3d   : > { %975 = vmatpush.bf16.msrb.mxu1 %v3903_v9  ;;  %1334 = vmatpush.bf16.msrb.mxu0 %v3863_v10  ;;  %v709_v9 = vunpack.c.h.b16 %v564_v11  ;;  %v582_v10 = vrot.slane %v580_v62, 4  ;;  %v614_v22 = vor.u32 %v613_v14, %v610_v13  ;;  %v619_v36 = vrot.slane %v617_v23, 5  ;;  %v3962_v11 = vld [vmem:[%s5077_s1 + $0x2b0] sm:$0xff]  ;;  %v3138_v62 = vld [vmem:[%s4160_s16 + $0x80] sm:$0xf]  ;;  %v3969_v15 = vld [vmem:[%s5077_s1 + $0x2e8] sm:$0xff] }
  0x3e   : > { %1042 = vmatmul.bf16.gmra.mxu3 %v725_v33  ;;  %1392 = vmatpush.bf16.msrb.mxu2 %v3879_v35  ;;  %v591_v33 = vrot.slane %v589_v21, 5  ;;  %v699_v41 = vunpack.c.h.b16 %v4315_v51  ;;  %v3139_v0 = vor.u32 %v3854_v63, %v3138_v62  ;;  %v3954_v13 = vld [vmem:[%s5077_s1 + $0x270] sm:$0xff]  ;;  %v3960_v14 = vld [vmem:[%s5077_s1 + $0x2a0] sm:$0xff]  ;;  %v3851_v21 = vld [vmem:[%s4160_s16 + $0x64] sm:$0xf0] }
  0x3f   : > { %1013 = vmatmul.bf16.gmra.mxu2 %v724_v29  ;;  %1421 = vmatpush.bf16.msrb.mxu3 %v3887_v46  ;;  %v729_v19 = vpack.c.b16 %v709_v9, %v705_v8  ;;  %v586_v20 = vor.u32 %v585_v12, %v582_v10  ;;  %v3872_v29 = vld [vmem:[%s5077_s1 + $0x60] sm:$0xff]  ;;  %v615_v35 = vrot.slane %v614_v22, 4  ;;  %v3955_v9 = vld [vmem:[%s5077_s1 + $0x278] sm:$0xff]  ;;  %v3961_v10 = vld [vmem:[%s5077_s1 + $0x2a8] sm:$0xff] }
  0x40   : > { %v3850_v46 = vld [vmem:[%s4160_s16 + $0x5c] sm:$0xf0]  ;;  %v723_v50 = vpack.c.b16 %v699_v41, %v695_v38  ;;  %v3941_v12 = vld [vmem:[%s5077_s1 + $0x208] sm:$0xff] }
  0x41   : > { %976 = vmatpush.bf16.msrb.mxu1 %v3902_v26  ;;  %1335 = vmatpush.bf16.msrb.mxu0 %v3862_v27  ;;  %v3886_v26 = vld [vmem:[%s5077_s1 + $0xd0] sm:$0xff]  ;;  %v3876_v27 = vld [vmem:[%s5077_s1 + $0x80] sm:$0xff]  ;;  %v587_v32 = vrot.slane %v586_v20, 4  ;;  %v620_v44 = vsel %vm4187_vm2, %v615_v35, %v619_v36  ;;  %v3123_v39 = vor.u32 %v3850_v46, %v3122_v45  ;;  %v3130_v20 = vld [vmem:[%s4160_s16 + $0x48] sm:$0xf] }
  0x42   : > { %1393 = vmatpush.bf16.msrb.mxu2 %v3878_v47  ;;  %v716_v48 = vunpack.c.l.b16 %v620_v44  ;;  %v717_v51 = vunpack.c.h.b16 %v620_v44  ;;  %v3940_v16 = vld [vmem:[%s5077_s1 + $0x200] sm:$0xff]  ;;  %v3849_v22 = vld [vmem:[%s4160_s16 + $0x4c] sm:$0xf]  ;;  %v3967_v44 = vld [vmem:[%s5077_s1 + $0x2d8] sm:$0xff] }
  0x43   : > { %1422 = vmatpush.bf16.msrb.mxu3 %v3886_v26  ;;  %v592_v42 = vsel %vm4187_vm2, %v587_v32, %v591_v33  ;;  %v3132_v23 = vld [vmem:[%s4160_s16 + $0x68] sm:$0xf0]  ;;  %v3108_v32 = vld [vmem:[%s4160_s16 + $0x20] sm:$0xf0]  ;;  %v3378_v33 = vld [vmem:[%s4160_s16 + $0x20] sm:$0xf] }
  0x44   : > { %v712_v47 = vunpack.c.l.b16 %v592_v42  ;;  %v713_v52 = vunpack.c.h.b16 %v592_v42  ;;  %v3953_v26 = vld [vmem:[%s5077_s1 + $0x268] sm:$0xff]  ;;  %v3926_v35 = vld [vmem:[%s4160_s16 + $0x3c] sm:$0xf0]  ;;  %v3958_v42 = vld [vmem:[%s5077_s1 + $0x290] sm:$0xff] }
  0x45   : > { %977 = vmatpush.bf16.msrb.mxu1 %v3901_v37  ;;  %1336 = vmatpush.bf16.msrb.mxu0 %v3861_v40  ;;  %v3885_v37 = vld [vmem:[%s5077_s1 + $0xc8] sm:$0xff]  ;;  %v4428_v40 = vpack.c.b16 %v715_v31, %v711_v30  ;;  %v3979_v30 = vld [vmem:[%s5077_s1 + $0x338] sm:$0xff]  ;;  %v3844_v31 = vld [vmem:[%s4160_s16 + $0x4] sm:$0xf] }
  0x46   : > { %1394 = vmatpush.bf16.msrb.mxu2 %v3877_v25  ;;  %v732_v53 = vpack.c.b16 %v716_v48, %v712_v47  ;;  %v733_v54 = vpack.c.b16 %v717_v51, %v713_v52  ;;  %v3135_v25 = vor.u32 %v3849_v22, %v3132_v23  ;;  %v3111_v36 = vor.u32 %v3844_v31, %v3108_v32  ;;  %v3853_v38 = vld [vmem:[%s4160_s16 + $0x8c] sm:$0xf]  ;;  %v3951_v47 = vld [vmem:[%s5077_s1 + $0x258] sm:$0xff]  ;;  %v3978_v48 = vld [vmem:[%s5077_s1 + $0x330] sm:$0xff] }
  0x47   : > { %1423 = vmatpush.bf16.msrb.mxu3 %v3885_v37  ;;  %v3379_v37 = vor.u32 %v3926_v35, %v3378_v33  ;;  %v3148_v41 = vld [vmem:[%s4160_s16 + $0xa8] sm:$0xf0]  ;;  %v3956_v52 = vld [vmem:[%s5077_s1 + $0x280] sm:$0xff]  ;;  %v3994_v23 = vld [vmem:[%s5077_s1 + $0x3b0] sm:$0xff] }
  0x48   : > { %v3151_v46 = vor.u32 %v3853_v38, %v3148_v41  ;;  %v3977_v51 = vld [vmem:[%s5077_s1 + $0x328] sm:$0xff]  ;;  %v3426_v41 = vld [vmem:[%s4160_s16 + $0xe0] sm:$0xf] }
  0x49   : > { %978 = vmatpush.bf16.msrb.mxu1 %v3900_v55  ;;  %1337 = vmatpush.bf16.msrb.mxu0 %v3860_v58  ;;  %v3869_v55 = vld [vmem:[%s5077_s1 + $0x48] sm:$0xff]  ;;  %v3944_v58 = vld [vmem:[%s5077_s1 + $0x220] sm:$0xff] }
  0x4a   : > { %1395 = vmatpush.bf16.msrb.mxu2 %v3876_v27  ;;  %v3959_v27 = vld [vmem:[%s5077_s1 + $0x298] sm:$0xff]  ;;  %v3965_v62 = vld [vmem:[%s5077_s1 + $0x2c8] sm:$0xff] }
  0x4c   : > { %979 = vmatmul.bf16.vlgmr.msrb.gmra.mxu1 %v719_v2  ;;  %1338 = vmatmul.bf16.vlgmr.msrb.gmra.mxu0 %v3107_v3  ;;  %v3847_v2 = vld [vmem:[%s4160_s16 + $0x24] sm:$0xf0]  ;;  %v3845_v3 = vld [vmem:[%s4160_s16 + $0xc] sm:$0xf] }
  0x4d   : > { %1359 = vmatpush.bf16.msra.mxu1 %v3875_v56  ;;  %1800 = vmatpush.bf16.msra.mxu0 %v3947_v60  ;;  %v3884_v56 = vld [vmem:[%s5077_s1 + $0xc0] sm:$0xff]  ;;  %v3971_v60 = vld [vmem:[%s5077_s1 + $0x2f8] sm:$0xff]  ;;  %v3115_v7 = vor.u32 %v3847_v2, %v3114_v1  ;;  %v3949_v1 = vld [vmem:[%s5077_s1 + $0x248] sm:$0xff] }
  0x4e   : > { %1047 = vmatmul.bf16.gmra.mxu3 %v729_v19  ;;  %1858 = vmatpush.bf16.msra.mxu2 %v3963_v57  ;;  %v3964_v2 = vld [vmem:[%s5077_s1 + $0x2c0] sm:$0xff] }
  0x4f   : > { %1018 = vmatmul.bf16.gmra.mxu2 %v728_v17  ;;  %1424 = vmatpush.bf16.msrb.mxu3 %v3884_v56  ;;  %v3154_v17 = vld [vmem:[%s4160_s16 + $0xc0] sm:$0xf] }
  0x50   : > { %v3930_v56 = vld [vmem:[%s4160_s16 + $0x7c] sm:$0xf0] }
  0x51   : > { %1360 = vmatpush.bf16.msra.mxu1 %v3874_v5  ;;  %1801 = vmatpush.bf16.msra.mxu0 %v3946_v24  ;;  %v3116_v5 = vld [vmem:[%s4160_s16 + $0x28] sm:$0xf0]  ;;  %v3131_v24 = vor.u32 %v3851_v21, %v3130_v20  ;;  %v3974_v20 = vld [vmem:[%s5077_s1 + $0x310] sm:$0xff] }
  0x52   : > { %1859 = vmatpush.bf16.msra.mxu2 %v3962_v11  ;;  %v3119_v8 = vor.u32 %v3845_v3, %v3116_v5  ;;  %v3857_v11 = vld [vmem:[%s4160_s16 + $0xcc] sm:$0xf]  ;;  %v3976_v3 = vld [vmem:[%s5077_s1 + $0x320] sm:$0xff]  ;;  %v3995_v5 = vld [vmem:[%s5077_s1 + $0x3b8] sm:$0xff] }
  0x53   : > { %1887 = vmatpush.bf16.msra.mxu3 %v3971_v60  ;;  %v3164_v60 = vld [vmem:[%s4160_s16 + $0xe8] sm:$0xf0] }
  0x55   : > { %1361 = vmatpush.bf16.msra.mxu1 %v3873_v18  ;;  %1802 = vmatpush.bf16.msra.mxu0 %v3945_v28  ;;  %v3858_v18 = vld [vmem:[%s4160_s16 + $0xdc] sm:$0xf0] }
  0x56   : > { %1860 = vmatpush.bf16.msra.mxu2 %v3961_v10  ;;  %v3155_v19 = vor.u32 %v3858_v18, %v3154_v17  ;;  %v3968_v28 = vld [vmem:[%s5077_s1 + $0x2e0] sm:$0xff]  ;;  %v3925_v18 = vld [vmem:[%s4160_s16 + $0x2c] sm:$0xf] }
  0x57   : > { %v3410_v10 = vld [vmem:[%s4160_s16 + $0xa0] sm:$0xf] }
  0x59   : > { %1362 = vmatpush.bf16.msra.mxu1 %v3872_v29  ;;  %1803 = vmatpush.bf16.msra.mxu0 %v3944_v58  ;;  %v3952_v29 = vld [vmem:[%s5077_s1 + $0x260] sm:$0xff] }
  0x5a   : > { %1861 = vmatpush.bf16.msra.mxu2 %v3960_v14  ;;  %v3386_v14 = vld [vmem:[%s4160_s16 + $0x28] sm:$0xf] }
  0x5c   : > { %984 = vmatmul.bf16.gmra.mxu1 %v723_v50  ;;  %1343 = vmatmul.bf16.gmra.mxu0 %v3123_v39  ;;  %v3966_v50 = vld [vmem:[%s5077_s1 + $0x2d0] sm:$0xff] }
  0x5d   : > { %1363 = vmatpush.bf16.msra.mxu1 %v3871_v34  ;;  %1804 = vmatpush.bf16.msra.mxu0 %v3943_v4  ;;  %v3855_v34 = vld [vmem:[%s4160_s16 + $0xa4] sm:$0xf0]  ;;  %v3950_v39 = vld [vmem:[%s5077_s1 + $0x250] sm:$0xff] }
  0x5e   : > { %1052 = vmatmul.bf16.gmra.mxu3 %v733_v54  ;;  %1862 = vmatpush.bf16.msra.mxu2 %v3959_v27  ;;  %v3124_v54 = vld [vmem:[%s4160_s16 + $0x60] sm:$0xf0]  ;;  %v3859_v4 = vld [vmem:[%s4160_s16 + $0xe4] sm:$0xf0] }
  0x5f   : > { %1023 = vmatmul.bf16.gmra.mxu2 %v732_v53  ;;  %v3848_v53 = vld [vmem:[%s4160_s16 + $0x44] sm:$0xf] }
  0x60   : > { %v3127_v58 = vor.u32 %v3848_v53, %v3124_v54  ;;  %v3568_v27 = vld [vmem:[%s4160_s16 + $0x20] sm:$0xff]  ;;  %v3402_v54 = vld [vmem:[%s4160_s16 + $0x68] sm:$0xf] }
  0x61   : > { %1364 = vmatpush.bf16.msra.mxu1 %v3870_v49  ;;  %1805 = vmatpush.bf16.msra.mxu0 %v3942_v6  ;;  %v3957_v49 = vld [vmem:[%s5077_s1 + $0x288] sm:$0xff]  ;;  %v3948_v6 = vld [vmem:[%s5077_s1 + $0x240] sm:$0xff]  ;;  %v1957_v31 = vshrl.u32 %v3568_v27, 16  ;;  %v1960_v32 = vshll.u32 %v3568_v27, 16 }
  0x62   : > { %1863 = vmatpush.bf16.msra.mxu2 %v3958_v42  ;;  %v3993_v42 = vld [vmem:[%s5077_s1 + $0x3a8] sm:$0xff] }
  0x65   : > { %1365 = vmatpush.bf16.msra.mxu1 %v3869_v55  ;;  %1806 = vmatpush.bf16.msra.mxu0 %v3941_v12  ;;  %v3394_v55 = vld [vmem:[%s4160_s16 + $0x60] sm:$0xf] }
  0x66   : > { %1864 = vmatpush.bf16.msra.mxu2 %v3957_v49  ;;  %v3395_v57 = vor.u32 %v3930_v56, %v3394_v55  ;;  %v3934_v12 = vld [vmem:[%s4160_s16 + $0xbc] sm:$0xf0]  ;;  %v3931_v55 = vld [vmem:[%s4160_s16 + $0x84] sm:$0xf0] }
  0x69   : > { %1366 = vmatpush.bf16.msra.mxu1 %v3868_v59  ;;  %1807 = vmatpush.bf16.msra.mxu0 %v3940_v16  ;;  %v3162_v59 = vld [vmem:[%s4160_s16 + $0xc8] sm:$0xf] }
  0x6a   : > { %1865 = vmatpush.bf16.msra.mxu2 %v3956_v52  ;;  %v3163_v63 = vor.u32 %v3859_v4, %v3162_v59  ;;  %v3574_v52 = vld [vmem:[%s4160_s16 + $0x50] sm:$0x11]  ;;  %v3404_v59 = vld [vmem:[%s4160_s16 + $0x88] sm:$0xf0] }
  0x6c   : > { %989 = vmatmul.bf16.gmra.mxu1 %v4395_v61  ;;  %1348 = vmatmul.bf16.gmra.mxu0 %v3139_v0  ;;  %v3970_v61 = vld [vmem:[%s5077_s1 + $0x2f0] sm:$0xff]  ;;  %v3167_v0 = vor.u32 %v3857_v11, %v3164_v60 }
  0x6d   : > { %1829 = vmatpush.bf16.msrb.mxu1 %v3955_v9  ;;  %1888 = vmatpush.bf16.msra.mxu3 %v3970_v61  ;;  %v3140_v9 = vld [vmem:[%s4160_s16 + $0xa0] sm:$0xf0] }
  0x6e   : > { %1425 = vmatmul.bf16.vlgmr.msrb.gmra.mxu3 %v3119_v8  ;;  %2501 = vmatpush.bf16.msrb.mxu0 %v3979_v30  ;;  %v3852_v8 = vld [vmem:[%s4160_s16 + $0x84] sm:$0xf] }
  0x6f   : > { %1396 = vmatmul.bf16.vlgmr.msrb.gmra.mxu2 %v3115_v7  ;;  %v3975_v7 = vld [vmem:[%s5077_s1 + $0x318] sm:$0xff]  ;;  %v3143_v61 = vor.u32 %v3852_v8, %v3140_v9 }
  0x70   : > { %2559 = vmatpush.bf16.msrb.mxu2 %v3995_v5  ;;  %v3992_v5 = vld [vmem:[%s5077_s1 + $0x3a0] sm:$0xff] }
  0x71   : > { %1830 = vmatpush.bf16.msrb.mxu1 %v3954_v13  ;;  %1889 = vmatpush.bf16.msra.mxu3 %v3969_v15  ;;  %v3411_v13 = vor.u32 %v3934_v12, %v3410_v10  ;;  %v3927_v15 = vld [vmem:[%s4160_s16 + $0x44] sm:$0xf0] }
  0x72   : > { %2502 = vmatpush.bf16.msrb.mxu0 %v3978_v48  ;;  %v3387_v21 = vor.u32 %v3927_v15, %v3386_v14  ;;  %v1962_v48 = vrot.slane %v1960_v32, 5  ;;  %v3991_v32 = vld [vmem:[%s5077_s1 + $0x398] sm:$0xff] }
  0x74   : > { %2560 = vmatpush.bf16.msrb.mxu2 %v3994_v23 }
  0x75   : > { %1831 = vmatpush.bf16.msrb.mxu1 %v3953_v26  ;;  %1890 = vmatpush.bf16.msra.mxu3 %v3968_v28  ;;  %v3973_v26 = vld [vmem:[%s5077_s1 + $0x308] sm:$0xff]  ;;  %v3572_v28 = vld [vmem:[%s4160_s16 + $0x40] sm:$0xff] }
  0x76   : > { %2503 = vmatpush.bf16.msrb.mxu0 %v3977_v51  ;;  %v1985_v33 = vshrl.u32 %v3572_v28, 16  ;;  %v1988_v35 = vshll.u32 %v3572_v28, 16 }
  0x78   : > { %v1987_v49 = vrot.slane %v1985_v33, 4  ;;  %2561 = vmatpush.bf16.msrb.mxu2 %v3993_v42  ;;  %v4000_v33 = vld [vmem:[%s5077_s1 + $0x3e0] sm:$0xff]  ;;  %v3582_v42 = vld [vmem:[%s4160_s16 + $0x90] sm:$0x11] }
  0x79   : > { %1832 = vmatpush.bf16.msrb.mxu1 %v3952_v29  ;;  %1891 = vmatpush.bf16.msra.mxu3 %v3967_v44  ;;  %v4002_v44 = vld [vmem:[%s5077_s1 + $0x3f0] sm:$0xff] }
  0x7a   : > { %2504 = vmatpush.bf16.msrb.mxu0 %v3976_v3 }
  0x7c   : > { %994 = vmatmul.bf16.gmra.mxu1 %v4428_v40  ;;  %1353 = vmatmul.bf16.gmra.mxu0 %v3155_v19  ;;  %v3146_v40 = vld [vmem:[%s4160_s16 + $0x88] sm:$0xf]  ;;  %v3388_v19 = vld [vmem:[%s4160_s16 + $0x48] sm:$0xf0] }
  0x7d   : > { %v3147_v45 = vor.u32 %v3855_v34, %v3146_v40  ;;  %1833 = vmatpush.bf16.msrb.mxu1 %v3951_v47  ;;  %1892 = vmatpush.bf16.msra.mxu3 %v3966_v50  ;;  %v3391_v22 = vor.u32 %v3925_v18, %v3388_v19  ;;  %v3856_v40 = vld [vmem:[%s4160_s16 + $0xc4] sm:$0xf]  ;;  %v1959_v47 = vrot.slane %v1957_v31, 4  ;;  %v1990_v50 = vrot.slane %v1988_v35, 5 }
  0x7e   : > { %1430 = vmatmul.bf16.gmra.mxu3 %v3135_v25  ;;  %2505 = vmatpush.bf16.msrb.mxu0 %v3975_v7  ;;  %v3987_v25 = vld [vmem:[%s5077_s1 + $0x378] sm:$0xff]  ;;  %v3156_v34 = vld [vmem:[%s4160_s16 + $0xe0] sm:$0xf0]  ;;  %v3985_v7 = vld [vmem:[%s5077_s1 + $0x368] sm:$0xff] }
  0x7f   : > { %1401 = vmatmul.bf16.gmra.mxu2 %v3131_v24  ;;  %v4003_v24 = vld [vmem:[%s5077_s1 + $0x3f8] sm:$0xff]  ;;  %v3159_v51 = vor.u32 %v3856_v40, %v3156_v34  ;;  %v1963_v4 = vor.u32 %v1962_v48, %v1959_v47  ;;  %v1991_v60 = vor.u32 %v1990_v50, %v1987_v49  ;;  %v3984_v35 = vld [vmem:[%s5077_s1 + $0x360] sm:$0xff]  ;;  %v3933_v50 = vld [vmem:[%s4160_s16 + $0xac] sm:$0xf] }
  0x80   : > { %2562 = vmatpush.bf16.msrb.mxu2 %v3992_v5  ;;  %v3924_v34 = vld [vmem:[%s4160_s16 + $0x24] sm:$0xf] }
  0x81   : > { %1834 = vmatpush.bf16.msrb.mxu1 %v3950_v39  ;;  %1893 = vmatpush.bf16.msra.mxu3 %v3965_v62  ;;  %v3570_v39 = vld [vmem:[%s4160_s16 + $0x30] sm:$0x11]  ;;  %v1994_v62 = vshll.u32 %v3574_v52, 16  ;;  %v1964_v8 = vrot.slane %v1963_v4, 4  ;;  %v1992_v10 = vrot.slane %v1991_v60, 4  ;;  %v3584_v4 = vld [vmem:[%s4160_s16 + $0xa0] sm:$0xff] }
  0x82   : > { %2506 = vmatpush.bf16.msrb.mxu0 %v3974_v20  ;;  %v1966_v11 = vshll.u32 %v3570_v39, 16  ;;  %v3420_v39 = vld [vmem:[%s4160_s16 + $0xc8] sm:$0xf0] }
  0x83   : > { %v1996_v12 = vrot.slane %v1994_v62, 5 }
  0x84   : > { %v1968_v9 = vrot.slane %v1966_v11, 5  ;;  %2563 = vmatpush.bf16.msrb.mxu2 %v3991_v32  ;;  %v3588_v11 = vld [vmem:[%s4160_s16 + $0xc0] sm:$0xff] }
  0x85   : > { %1835 = vmatpush.bf16.msrb.mxu1 %v3949_v1  ;;  %1894 = vmatpush.bf16.msra.mxu3 %v3964_v2  ;;  %v3576_v2 = vld [vmem:[%s4160_s16 + $0x60] sm:$0xff] }
  0x86   : > { %2507 = vmatpush.bf16.msrb.mxu0 %v3973_v26  ;;  %v2016_v14 = vshll.u32 %v3576_v2, 16 }
  0x88   : > { %v2018_v27 = vrot.slane %v2016_v14, 5  ;;  %v3569_v14 = vld [vmem:[%s4160_s16 + $0x28] sm:$0xff] }
  0x89   : > { %1836 = vmatpush.bf16.msrb.mxu1 %v3948_v6  ;;  %2588 = vmatpush.bf16.msrb.mxu3 %v4003_v24  ;;  %v4001_v6 = vld [vmem:[%s5077_s1 + $0x3e8] sm:$0xff] }
  0x8c   : > { %1367 = vmatmul.bf16.vlgmr.msra.gmra.mxu1 %v3111_v36  ;;  %1808 = vmatmul.bf16.vlgmr.msra.gmra.mxu0 %v3379_v37  ;;  %v3972_v37 = vld [vmem:[%s5077_s1 + $0x300] sm:$0xff] }
  0x8d   : > { %2530 = vmatpush.bf16.msra.mxu1 %v3987_v25  ;;  %2508 = vmatpush.bf16.msrb.mxu0 %v3972_v37  ;;  %v3578_v25 = vld [vmem:[%s4160_s16 + $0x70] sm:$0x11] }
  0x8e   : > { %1435 = vmatmul.bf16.gmra.mxu3 %v3151_v46  ;;  %v3938_v46 = vld [vmem:[%s4160_s16 + $0xfc] sm:$0xf0]  ;;  %v2022_v47 = vshll.u32 %v3578_v25, 16 }
  0x8f   : > { %1406 = vmatmul.bf16.gmra.mxu2 %v3147_v45  ;;  %v3986_v45 = vld [vmem:[%s5077_s1 + $0x370] sm:$0xff]  ;;  %2589 = vmatpush.bf16.msrb.mxu3 %v4002_v44  ;;  %v3427_v53 = vor.u32 %v3938_v46, %v3426_v41  ;;  %v3380_v41 = vld [vmem:[%s4160_s16 + $0x40] sm:$0xf0]  ;;  %v3418_v44 = vld [vmem:[%s4160_s16 + $0xa8] sm:$0xf] }
  0x90   : > { %v3383_v48 = vor.u32 %v3924_v34, %v3380_v41  ;;  %v2024_v5 = vrot.slane %v2022_v47, 5  ;;  %v3586_v41 = vld [vmem:[%s4160_s16 + $0xb0] sm:$0x11] }
  0x91   : > { %2531 = vmatpush.bf16.msra.mxu1 %v3986_v45  ;;  %v3935_v45 = vld [vmem:[%s4160_s16 + $0xc4] sm:$0xf0] }
  0x92   : > { %v3419_v60 = vor.u32 %v3935_v45, %v3418_v44  ;;  %v1974_v44 = vshll.u32 %v3569_v14, 16 }
  0x93   : > { %2590 = vmatpush.bf16.msrb.mxu3 %v4001_v6 }
  0x95   : > { %2532 = vmatpush.bf16.msra.mxu1 %v3985_v7 }
  0x97   : > { %2591 = vmatpush.bf16.msrb.mxu3 %v4000_v33 }
  0x99   : > { %2533 = vmatpush.bf16.msra.mxu1 %v3984_v35 }
  0x9c   : > { %1372 = vmatmul.bf16.gmra.mxu1 %v3127_v58  ;;  %1813 = vmatmul.bf16.gmra.mxu0 %v3395_v57  ;;  %v3929_v57 = vld [vmem:[%s4160_s16 + $0x6c] sm:$0xf] }
  0x9d   : > { %v3407_v3 = vor.u32 %v3929_v57, %v3404_v59 }
  0x9e   : > { %1440 = vmatmul.bf16.gmra.mxu3 %v3167_v0  ;;  %v3403_v0 = vor.u32 %v3931_v55, %v3402_v54 }
  0x9f   : > { %1411 = vmatmul.bf16.gmra.mxu2 %v3163_v63 }
  0xa9   : > { %v4594_v16 = vpop.f32.mrf.mxu1  ;;  %v4596_v17 = vpop.f32.mrf.mxu0 }
  0xac   : > { %1377 = vmatmul.bf16.gmra.mxu1 %v3143_v61  ;;  %1818 = vmatmul.bf16.gmra.mxu0 %v3411_v13  ;;  %v3580_v61 = vld [vmem:[%s4160_s16 + $0x80] sm:$0xff]  ;;  %v2013_v13 = vshrl.u32 %v3576_v2, 16 }
  0xad   : > { %v2041_v15 = vshrl.u32 %v3580_v61, 16  ;;  %v2044_v18 = vshll.u32 %v3580_v61, 16  ;;  %v2100_v61 = vshll.u32 %v3588_v11, 16 }
  0xae   : > { %1895 = vmatmul.bf16.vlgmr.msra.gmra.mxu3 %v3391_v22  ;;  %v4676_v22 = vsel %vm4187_vm2, %v1992_v10, %v1996_v12  ;;  %v2015_v26 = vrot.slane %v2013_v13, 4  ;;  %v2069_v10 = vshrl.u32 %v3584_v4, 16  ;;  %v2097_v12 = vshrl.u32 %v3588_v11, 16 }
  0xaf   : > { %1866 = vmatmul.bf16.vlgmr.msra.gmra.mxu2 %v3387_v21  ;;  %v4672_v21 = vsel %vm4187_vm2, %v1964_v8, %v1968_v9  ;;  %v2249_v31 = vunpack.c.l.b16 %v4676_v22  ;;  %v2043_v37 = vrot.slane %v2041_v15, 4  ;;  %v2046_v40 = vrot.slane %v2044_v18, 5  ;;  %v3999_v8 = vld [vmem:[%s5077_s1 + $0x3d8] sm:$0xff] }
  0xb0   : > { %v2245_v28 = vunpack.c.l.b16 %v4672_v21  ;;  %v2019_v46 = vor.u32 %v2018_v27, %v2015_v26  ;;  %v3983_v9 = vld [vmem:[%s5077_s1 + $0x358] sm:$0xff]  ;;  %2592 = vmatpush.bf16.msrb.mxu3 %v3999_v8  ;;  %v3989_v26 = vld [vmem:[%s5077_s1 + $0x388] sm:$0xff]  ;;  %v2071_v32 = vrot.slane %v2069_v10, 4  ;;  %v2099_v35 = vrot.slane %v2097_v12, 4 }
  0xb1   : > { %v4617_v29 = vpop.f32.mrf.mxu1  ;;  %v4619_v30 = vpop.f32.mrf.mxu0  ;;  %v2047_v52 = vor.u32 %v2046_v40, %v2043_v37  ;;  %2534 = vmatpush.bf16.msra.mxu1 %v3983_v9  ;;  %v3573_v27 = vld [vmem:[%s4160_s16 + $0x48] sm:$0xff]  ;;  %v2102_v37 = vrot.slane %v2100_v61, 5  ;;  %v3575_v12 = vld [vmem:[%s4160_s16 + $0x58] sm:$0x11] }
  0xb2   : > { %v4621_v36 = vpop.f32.mrf.mxu2  ;;  %v4628_v38 = vpop.f32.mrf.mxu3  ;;  %v2277_v49 = vpack.c.b16 %v2249_v31, %v2245_v28  ;;  %v2020_v2 = vrot.slane %v2019_v46, 4  ;;  %v3590_v46 = vld [vmem:[%s4160_s16 + $0xd0] sm:$0x11]  ;;  %v1999_v47 = vshrl.u32 %v3573_v27, 16 }
  0xb3   : > { %v2048_v6 = vrot.slane %v2047_v52, 4  ;;  %v3982_v52 = vld [vmem:[%s5077_s1 + $0x350] sm:$0xff] }
  0xb4   : > { %v4730_v18 = vsel %vm4187_vm2, %v2020_v2, %v2024_v5  ;;  %v3939_v5 = vld [vmem:[%s4160_s16 + $0x104] sm:$0xf0] }
  0xb5   : > { %2535 = vmatpush.bf16.msra.mxu1 %v3982_v52 }
  0xb9   : > { %v4645_v56 = vpop.f32.mrf.mxu1  ;;  %v4647_v58 = vpop.f32.mrf.mxu0 }
  0xba   : > { %v4651_v63 = vpop.f32.mrf.mxu2  ;;  %v4653_v1 = vpop.f32.mrf.mxu3 }
  0xbc   : > { %1382 = vmatmul.bf16.gmra.mxu1 %v3159_v51  ;;  %1823 = vmatmul.bf16.gmra.mxu0 %v3427_v53  ;;  %v2050_v51 = vshll.u32 %v3582_v42, 16  ;;  %v4704_v53 = vld [vmem:[%s5080_s4 + $0x38] sm:$0xff]  ;;  %v1971_v42 = vshrl.u32 %v3569_v14, 16  ;;  %v3436_v14 = vld [vmem:[%s4160_s16 + $0x108] sm:$0xf0] }
  0xbd   : > { %2749 = vmatpush.bf16.msra.mxu0 %v4704_v53 }
  0xbe   : > { %1900 = vmatmul.bf16.gmra.mxu3 %v3407_v3  ;;  %v2052_v7 = vrot.slane %v2050_v51, 5  ;;  %v3988_v51 = vld [vmem:[%s5077_s1 + $0x380] sm:$0xff]  ;;  %v1973_v2 = vrot.slane %v1971_v42, 4 }
  0xbf   : > { %1871 = vmatmul.bf16.gmra.mxu2 %v3403_v0  ;;  %v3423_v0 = vor.u32 %v3933_v50, %v3420_v39  ;;  %v3998_v39 = vld [vmem:[%s5077_s1 + $0x3d0] sm:$0xff] }
  0xc0   : > { %v4734_v25 = vsel %vm4187_vm2, %v2048_v6, %v2052_v7  ;;  %2593 = vmatpush.bf16.msrb.mxu3 %v3998_v39  ;;  %v3571_v6 = vld [vmem:[%s4160_s16 + $0x38] sm:$0x11]  ;;  %v2001_v7 = vrot.slane %v1999_v47, 4 }
  0xc1   : > { %v4666_v19 = vpop.f32.mrf.mxu1  ;;  %v4668_v20 = vpop.f32.mrf.mxu0  ;;  %v2257_v50 = vunpack.c.l.b16 %v4734_v25 }
  0xc2   : > { %v4678_v23 = vpop.f32.mrf.mxu2  ;;  %v4680_v24 = vpop.f32.mrf.mxu3 }
  0xc9   : > { %v980_v54 = vpop.f32.mrf.mxu1  ;;  %v1339_v55 = vpop.f32.mrf.mxu0 }
  0xca   : > { %v981_v57 = vadd.f32 %v980_v54, %v4596_v17  ;;  %v4707_v59 = vpop.f32.mrf.mxu2  ;;  %v4712_v62 = vpop.f32.mrf.mxu3  ;;  %v3990_v17 = vld [vmem:[%s5077_s1 + $0x390] sm:$0xff]  ;;  %v3928_v54 = vld [vmem:[%s4160_s16 + $0x64] sm:$0xf] }
  0xcb   : > { %2564 = vmatpush.bf16.msrb.mxu2 %v3990_v17 }
  0xcc   : > { %v1010_v3 = vadd.f32 %v4621_v36, %v981_v57  ;;  %1837 = vmatmul.bf16.vlgmr.msrb.gmra.mxu1 %v3383_v48  ;;  %2509 = vmatmul.bf16.vlgmr.msrb.gmra.mxu0 %v2277_v49  ;;  %v2072_v36 = vshll.u32 %v3584_v4, 16  ;;  %v2002_v48 = vshll.u32 %v3573_v27, 16  ;;  %v2078_v57 = vshll.u32 %v3586_v41, 16 }
  0xcd   : > { %v2103_v4 = vor.u32 %v2102_v37, %v2099_v35 }
  0xce   : > { %v1039_v13 = vadd.f32 %v4628_v38, %v1010_v3  ;;  %1905 = vmatmul.bf16.gmra.mxu3 %v3423_v0  ;;  %v4739_v38 = vld [vmem:[%s5080_s4 + $0x30] sm:$0xff]  ;;  %v2074_v33 = vrot.slane %v2072_v36, 5  ;;  %v2106_v0 = vshll.u32 %v3590_v46, 16  ;;  %v1976_v3 = vrot.slane %v1974_v44, 5  ;;  %v3937_v36 = vld [vmem:[%s4160_s16 + $0xec] sm:$0xf] }
  0xcf   : > { %1876 = vmatmul.bf16.gmra.mxu2 %v3419_v60  ;;  %2750 = vmatpush.bf16.msra.mxu0 %v4739_v38  ;;  %v3434_v60 = vld [vmem:[%s4160_s16 + $0xe8] sm:$0xf]  ;;  %v2004_v17 = vrot.slane %v2002_v48, 5  ;;  %v2080_v27 = vrot.slane %v2078_v57, 5  ;;  %v2008_v44 = vshll.u32 %v3575_v12, 16  ;;  %v3439_v47 = vor.u32 %v3937_v36, %v3436_v14  ;;  %v3592_v48 = vld [vmem:[%s4160_s16 + $0xe0] sm:$0xff] }
  0xd0   : > { %v4726_v15 = vadd.f32 %v1339_v55, %v1039_v13  ;;  %2565 = vmatpush.bf16.msrb.mxu2 %v3989_v26  ;;  %v2075_v55 = vor.u32 %v2074_v33, %v2071_v32  ;;  %v2108_v35 = vrot.slane %v2106_v0, 5  ;;  %v1977_v37 = vor.u32 %v1976_v3, %v1973_v2  ;;  %v3932_v36 = vld [vmem:[%s4160_s16 + $0xa4] sm:$0xf] }
  0xd1   : > { %v982_v28 = vpop.f32.mrf.mxu1  ;;  %v1341_v31 = vpop.f32.mrf.mxu0  ;;  %v2005_v42 = vor.u32 %v2004_v17, %v2001_v7  ;;  %v2128_v57 = vshll.u32 %v3592_v48, 16  ;;  %v2246_v7 = vunpack.c.h.b16 %v4672_v21  ;;  %v2250_v17 = vunpack.c.h.b16 %v4676_v22  ;;  %v3412_v12 = vld [vmem:[%s4160_s16 + $0xc0] sm:$0xf0] }
  0xd2   : > { %v983_v40 = vadd.f32 %v982_v28, %v4619_v30  ;;  %v4746_v34 = vpop.f32.mrf.mxu2  ;;  %v4750_v45 = vpop.f32.mrf.mxu3  ;;  %v2253_v30 = vunpack.c.l.b16 %v4730_v18  ;;  %v2076_v26 = vrot.slane %v2075_v55, 4  ;;  %v2104_v28 = vrot.slane %v2103_v4, 4 }
  0xd3   : > { %v1978_v39 = vrot.slane %v1977_v37, 4  ;;  %v2125_v55 = vshrl.u32 %v3592_v48, 16 }
  0xd4   : > { %v1012_v49 = vadd.f32 %v4651_v63, %v983_v40  ;;  %v3396_v63 = vld [vmem:[%s4160_s16 + $0x80] sm:$0xf0]  ;;  %2566 = vmatpush.bf16.msrb.mxu2 %v3988_v51  ;;  %v2281_v10 = vpack.c.b16 %v2257_v50, %v2253_v30  ;;  %v1980_v40 = vshll.u32 %v3571_v6, 16  ;;  %v4804_v50 = vsel %vm4187_vm2, %v2104_v28, %v2108_v35  ;;  %v3581_v6 = vld [vmem:[%s4160_s16 + $0x88] sm:$0xff] }
  0xd5   : > { %v3399_v9 = vor.u32 %v3928_v54, %v3396_v63  ;;  %v3996_v30 = vld [vmem:[%s5077_s1 + $0x3c0] sm:$0xff]  ;;  %v2006_v54 = vrot.slane %v2005_v42, 4  ;;  %v2010_v63 = vrot.slane %v2008_v44, 5  ;;  %v2265_v2 = vunpack.c.l.b16 %v4804_v50 }
  0xd6   : > { %v1041_v11 = vadd.f32 %v4653_v1, %v1012_v49  ;;  %v4013_v1 = vld [vmem:[%s5080_s4 + $0x28] sm:$0xff]  ;;  %v4795_v49 = vsel %vm4187_vm2, %v2076_v26, %v2080_v27  ;;  %v1982_v52 = vrot.slane %v1980_v40, 5  ;;  %v3596_v51 = vld [vmem:[%s4160_s16 + $0x100] sm:$0xff]  ;;  %v2127_v14 = vrot.slane %v2125_v55, 4  ;;  %v3594_v27 = vld [vmem:[%s4160_s16 + $0xf0] sm:$0x11] }
  0xd7   : > { %2751 = vmatpush.bf16.msra.mxu0 %v4013_v1  ;;  %v2261_v0 = vunpack.c.l.b16 %v4795_v49  ;;  %v2153_v3 = vshrl.u32 %v3596_v51, 16  ;;  %v2130_v26 = vrot.slane %v2128_v57, 5  ;;  %v3415_v35 = vor.u32 %v3932_v36, %v3412_v12 }
  0xd8   : > { %v4771_v8 = vadd.f32 %v1341_v31, %v1041_v11  ;;  %4024 = vmatpush.bf16.msra.mxu2 %v4704_v53  ;;  %v3997_v31 = vld [vmem:[%s5077_s1 + $0x3c8] sm:$0xff]  ;;  %v3435_v53 = vor.u32 %v3939_v5, %v3434_v60  ;;  %v2156_v5 = vshll.u32 %v3596_v51, 16  ;;  %v3579_v51 = vld [vmem:[%s4160_s16 + $0x78] sm:$0x11] }
  0xd9   : > { %v985_v61 = vpop.f32.mrf.mxu1  ;;  %v1344_v13 = vpop.f32.mrf.mxu0  ;;  %2594 = vmatpush.bf16.msrb.mxu3 %v3997_v31  ;;  %v2055_v31 = vshrl.u32 %v3581_v6, 16  ;;  %v2285_v37 = vpack.c.b16 %v2265_v2, %v2261_v0  ;;  %v2155_v40 = vrot.slane %v2153_v3, 4 }
  0xda   : > { %v986_v32 = vadd.f32 %v985_v61, %v4647_v58  ;;  %v4784_v33 = vpop.f32.mrf.mxu2  ;;  %v4786_v41 = vpop.f32.mrf.mxu3  ;;  %v3981_v58 = vld [vmem:[%s5077_s1 + $0x348] sm:$0xff]  ;;  %v1983_v61 = vsel %vm4187_vm2, %v1978_v39, %v1982_v52 }
  0xdb   : > { %2536 = vmatpush.bf16.msra.mxu1 %v3981_v58  ;;  %v2247_v44 = vunpack.c.l.b16 %v1983_v61  ;;  %v4011_v58 = vld [vmem:[%s5080_s4 + $0x18] sm:$0xff] }
  0xdc   : > { %v1015_v46 = vadd.f32 %v4678_v23, %v986_v32  ;;  %1842 = vmatmul.bf16.gmra.mxu1 %v3399_v9  ;;  %2514 = vmatmul.bf16.gmra.mxu0 %v2281_v10  ;;  %v2058_v32 = vshll.u32 %v3581_v6, 16 }
  0xdd   : > { %4025 = vmatpush.bf16.msra.mxu2 %v4739_v38  ;;  %2595 = vmatpush.bf16.msrb.mxu3 %v3996_v30  ;;  %v3577_v38 = vld [vmem:[%s4160_s16 + $0x68] sm:$0xff]  ;;  %v2131_v30 = vor.u32 %v2130_v26, %v2127_v14 }
  0xde   : > { %v1044_v23 = vadd.f32 %v4680_v24, %v1015_v46  ;;  %1910 = vmatmul.bf16.gmra.mxu3 %v3439_v47  ;;  %v4012_v24 = vld [vmem:[%s5080_s4 + $0x20] sm:$0xff]  ;;  %v2027_v21 = vshrl.u32 %v3577_v38, 16  ;;  %v2030_v28 = vshll.u32 %v3577_v38, 16  ;;  %v3598_v47 = vld [vmem:[%s4160_s16 + $0x110] sm:$0x11] }
  0xdf   : > { %1881 = vmatmul.bf16.gmra.mxu2 %v3435_v53  ;;  %2752 = vmatpush.bf16.msra.mxu0 %v4012_v24  ;;  %v2158_v53 = vrot.slane %v2156_v5, 5  ;;  %v2162_v38 = vshll.u32 %v3598_v47, 16  ;;  %v4846_v5 = vpack.c.b16 %v2250_v17, %v2246_v7  ;;  %v2132_v36 = vrot.slane %v2131_v30, 4 }
  0xe0   : > { %v4807_v4 = vadd.f32 %v1344_v13, %v1044_v23  ;;  %v2134_v23 = vshll.u32 %v3594_v27, 16  ;;  %v2029_v39 = vrot.slane %v2027_v21, 4  ;;  %v3585_v27 = vld [vmem:[%s4160_s16 + $0xa8] sm:$0xff] }
  0xe1   : > { %v987_v11 = vpop.f32.mrf.mxu1  ;;  %v1346_v60 = vpop.f32.mrf.mxu0  ;;  %4026 = vmatpush.bf16.msra.mxu2 %v4013_v1  ;;  %v2011_v1 = vsel %vm4187_vm2, %v2006_v54, %v2010_v63  ;;  %v2032_v54 = vrot.slane %v2030_v28, 5  ;;  %v2060_v63 = vrot.slane %v2058_v32, 5  ;;  %v2164_v17 = vrot.slane %v2162_v38, 5 }
  0xe2   : > { %v988_v9 = vadd.f32 %v987_v11, %v4668_v20  ;;  %v4819_v10 = vpop.f32.mrf.mxu2  ;;  %v4825_v13 = vpop.f32.mrf.mxu3  ;;  %v3980_v20 = vld [vmem:[%s5077_s1 + $0x340] sm:$0xff]  ;;  %v2251_v46 = vunpack.c.l.b16 %v2011_v1  ;;  %v2252_v48 = vunpack.c.h.b16 %v2011_v1  ;;  %v3583_v11 = vld [vmem:[%s4160_s16 + $0x98] sm:$0x11]  ;;  %v2136_v12 = vrot.slane %v2134_v23, 5 }
  0xe3   : > { %2537 = vmatpush.bf16.msra.mxu1 %v3980_v20  ;;  %2753 = vmatpush.bf16.msra.mxu0 %v4011_v58  ;;  %v2064_v26 = vshll.u32 %v3583_v11, 16  ;;  %v2086_v47 = vshll.u32 %v3585_v27, 16 }
  0xe4   : > { %v1017_v22 = vadd.f32 %v4707_v59, %v988_v9  ;;  %v2248_v59 = vunpack.c.h.b16 %v1983_v61  ;;  %v2279_v3 = vpack.c.b16 %v2251_v46, %v2247_v44  ;;  %v2036_v61 = vshll.u32 %v3579_v51, 16  ;;  %v4008_v46 = vld [vmem:[%s5080_s4] sm:$0xff] }
  0xe5   : > { %4027 = vmatpush.bf16.msra.mxu2 %v4012_v24  ;;  %v2159_v24 = vor.u32 %v2158_v53, %v2155_v40 }
  0xe6   : > { %v1046_v42 = vadd.f32 %v4712_v62, %v1017_v22  ;;  %v2057_v62 = vrot.slane %v2055_v31, 4  ;;  %v2280_v9 = vpack.c.b16 %v2252_v48, %v2248_v59  ;;  %v4009_v22 = vld [vmem:[%s5080_s4 + $0x8] sm:$0xff]  ;;  %v2038_v20 = vrot.slane %v2036_v61, 5  ;;  %v3428_v48 = vld [vmem:[%s4160_s16 + $0x100] sm:$0xf0] }
  0xe7   : > { %v2160_v7 = vrot.slane %v2159_v24, 4  ;;  %v2083_v59 = vshrl.u32 %v3585_v27, 16 }
  0xe8   : > { %v4839_v52 = vadd.f32 %v1346_v60, %v1046_v42  ;;  %v4010_v60 = vld [vmem:[%s5080_s4 + $0x10] sm:$0xff]  ;;  %v2061_v14 = vor.u32 %v2060_v63, %v2057_v62 }
  0xe9   : > { %v990_v55 = vpop.f32.mrf.mxu1  ;;  %v1349_v57 = vpop.f32.mrf.mxu0  ;;  %4028 = vmatpush.bf16.msra.mxu2 %v4011_v58  ;;  %2754 = vmatpush.bf16.msra.mxu0 %v4010_v60  ;;  %v4868_v53 = vsel %vm4187_vm2, %v2160_v7, %v2164_v17  ;;  %v3936_v58 = vld [vmem:[%s4160_s16 + $0xe4] sm:$0xf]  ;;  %v2085_v11 = vrot.slane %v2083_v59, 4  ;;  %v3593_v59 = vld [vmem:[%s4160_s16 + $0xe8] sm:$0xff] }
  0xea   : > { %v991_v0 = vadd.f32 %v990_v55, %v4594_v16  ;;  %v4844_v2 = vpop.f32.mrf.mxu2  ;;  %v4851_v6 = vpop.f32.mrf.mxu3  ;;  %v2033_v16 = vor.u32 %v2032_v54, %v2029_v39  ;;  %v2062_v32 = vrot.slane %v2061_v14, 4  ;;  %v2254_v55 = vunpack.c.h.b16 %v4730_v18 }
  0xeb   : > { %v3431_v38 = vor.u32 %v3936_v58, %v3428_v48 }
  0xec   : > { %v1020_v1 = vadd.f32 %v4746_v34, %v991_v0  ;;  %1847 = vmatmul.bf16.gmra.mxu1 %v3415_v35  ;;  %2519 = vmatmul.bf16.gmra.mxu0 %v2285_v37  ;;  %v4860_v34 = vsel %vm4187_vm2, %v2132_v36, %v2136_v12  ;;  %v2034_v31 = vrot.slane %v2033_v16, 4  ;;  %v2066_v35 = vrot.slane %v2064_v26, 5  ;;  %v3591_v16 = vld [vmem:[%s4160_s16 + $0xd8] sm:$0x11] }
  0xed   : > { %4029 = vmatpush.bf16.msra.mxu2 %v4010_v60  ;;  %2755 = vmatpush.bf16.msra.mxu0 %v4009_v22  ;;  %v2269_v23 = vunpack.c.l.b16 %v4860_v34  ;;  %v3587_v60 = vld [vmem:[%s4160_s16 + $0xb8] sm:$0x11] }
  0xee   : > { %v1049_v21 = vadd.f32 %v4750_v45, %v1020_v1  ;;  %2596 = vmatmul.bf16.vlgmr.msrb.gmra.mxu3 %v2280_v9  ;;  %v3589_v45 = vld [vmem:[%s4160_s16 + $0xc8] sm:$0xff]  ;;  %v2039_v62 = vsel %vm4187_vm2, %v2034_v31, %v2038_v20  ;;  %v2067_v63 = vsel %vm4187_vm2, %v2062_v32, %v2066_v35  ;;  %v2092_v17 = vshll.u32 %v3587_v60, 16 }
  0xef   : > { %2567 = vmatmul.bf16.vlgmr.msrb.gmra.mxu2 %v2279_v3  ;;  %v2111_v39 = vshrl.u32 %v3589_v45, 16  ;;  %v2114_v51 = vshll.u32 %v3589_v45, 16  ;;  %v2255_v0 = vunpack.c.l.b16 %v2039_v62  ;;  %v2259_v3 = vunpack.c.l.b16 %v2067_v63 }
  0xf0   : > { %v4863_v28 = vadd.f32 %v1349_v57, %v1049_v21  ;;  %v2258_v57 = vunpack.c.h.b16 %v4734_v25  ;;  %v2256_v1 = vunpack.c.h.b16 %v2039_v62  ;;  %v2260_v18 = vunpack.c.h.b16 %v2067_v63 }
  0xf1   : > { %v992_v37 = vpop.f32.mrf.mxu1  ;;  %v1351_v40 = vpop.f32.mrf.mxu0  ;;  %4030 = vmatpush.bf16.msra.mxu2 %v4009_v22  ;;  %2756 = vmatpush.bf16.msra.mxu0 %v4008_v46  ;;  %v2113_v9 = vrot.slane %v2111_v39, 4  ;;  %v2116_v36 = vrot.slane %v2114_v51, 5  ;;  %v2283_v22 = vpack.c.b16 %v2259_v3, %v2255_v0  ;;  %v2120_v31 = vshll.u32 %v3591_v16, 16 }
  0xf2   : > { %v993_v42 = vadd.f32 %v992_v37, %v4617_v29  ;;  %v4871_v44 = vpop.f32.mrf.mxu2  ;;  %v4878_v30 = vpop.f32.mrf.mxu3  ;;  %v2273_v29 = vunpack.c.l.b16 %v4868_v53  ;;  %v4897_v21 = vpack.c.b16 %v2258_v57, %v2254_v55  ;;  %v2284_v35 = vpack.c.b16 %v2260_v18, %v2256_v1 }
  0xf3   : > { %v2117_v27 = vor.u32 %v2116_v36, %v2113_v9  ;;  %v2094_v37 = vrot.slane %v2092_v17, 5  ;;  %v3595_v9 = vld [vmem:[%s4160_s16 + $0xf8] sm:$0x11]  ;;  %v2266_v1 = vunpack.c.h.b16 %v4804_v50 }
  0xf4   : > { %v1022_v54 = vadd.f32 %v4784_v33, %v993_v42  ;;  %v2088_v33 = vrot.slane %v2086_v47, 5  ;;  %v2289_v61 = vpack.c.b16 %v2273_v29, %v2269_v23  ;;  %v2122_v42 = vrot.slane %v2120_v31, 5  ;;  %v3597_v47 = vld [vmem:[%s4160_s16 + $0x108] sm:$0xff] }
  0xf5   : > { %4031 = vmatpush.bf16.msra.mxu2 %v4008_v46  ;;  %v2142_v29 = vshll.u32 %v3593_v59, 16  ;;  %v2167_v62 = vshrl.u32 %v3597_v47, 16  ;;  %v2170_v55 = vshll.u32 %v3597_v47, 16 }
  0xf6   : > { %v1051_v24 = vadd.f32 %v4786_v41, %v1022_v54  ;;  %v2089_v41 = vor.u32 %v2088_v33, %v2085_v11  ;;  %v2139_v54 = vshrl.u32 %v3593_v59, 16 }
  0xf7   : > { %v2144_v0 = vrot.slane %v2142_v29, 5  ;;  %v2169_v3 = vrot.slane %v2167_v62, 4  ;;  %v2172_v36 = vrot.slane %v2170_v55, 5  ;;  %v2274_v62 = vunpack.c.h.b16 %v4868_v53 }
  0xf8   : > { %v4891_v12 = vadd.f32 %v1351_v40, %v1051_v24  ;;  %v2090_v45 = vrot.slane %v2089_v41, 4  ;;  %v2118_v40 = vrot.slane %v2117_v27, 4  ;;  %v2141_v33 = vrot.slane %v2139_v54, 4 }
  0xf9   : > { %v995_v25 = vpop.f32.mrf.mxu1  ;;  %v1354_v14 = vpop.f32.mrf.mxu0  ;;  %v2148_v27 = vshll.u32 %v3595_v9, 16  ;;  %v2173_v50 = vor.u32 %v2172_v36, %v2169_v3 }
  0xfa   : > { %v996_v26 = vadd.f32 %v995_v25, %v4645_v56  ;;  %v4895_v7 = vpop.f32.mrf.mxu2  ;;  %v4899_v20 = vpop.f32.mrf.mxu3  ;;  %v2123_v51 = vsel %vm4187_vm2, %v2118_v40, %v2122_v42 }
  0xfb   : > { %v2267_v24 = vunpack.c.l.b16 %v2123_v51  ;;  %v2268_v11 = vunpack.c.h.b16 %v2123_v51  ;;  %v4005_v51 = vld [vmem:[%s4921_s15 + $0x8] sm:$0xff] }
  0xfc   : > { %v1025_v32 = vadd.f32 %v4819_v10, %v996_v26  ;;  %1852 = vmatmul.bf16.gmra.mxu1 %v3431_v38  ;;  %2524 = vmatmul.bf16.gmra.mxu0 %v2289_v61  ;;  %v2262_v61 = vunpack.c.h.b16 %v4795_v49  ;;  %v2145_v49 = vor.u32 %v2144_v0, %v2141_v33 }
  0xfe   : > { %v1054_v56 = vadd.f32 %v4825_v13, %v1025_v32  ;;  %2601 = vmatmul.bf16.gmra.mxu3 %v2284_v35  ;;  %v2095_v13 = vsel %vm4187_vm2, %v2090_v45, %v2094_v37  ;;  %v4934_v26 = vpack.c.b16 %v2266_v1, %v2262_v61  ;;  %v2174_v45 = vrot.slane %v2173_v50, 4  ;;  %v4007_v61 = vld [vmem:[%s4921_s15 + $0x18] sm:$0xff] }
  0xff   : > { %2572 = vmatmul.bf16.gmra.mxu2 %v2283_v22  ;;  %v2263_v57 = vunpack.c.l.b16 %v2095_v13  ;;  %v2264_v38 = vunpack.c.h.b16 %v2095_v13 }
 0x100   : > { %v4903_v46 = vadd.f32 %v1354_v14, %v1054_v56  ;;  %v2150_v56 = vrot.slane %v2148_v27, 5 }
 0x101   : > { %v997_v58 = vpop.f32.mrf.mxu1  ;;  %v1356_v48 = vpop.f32.mrf.mxu0  ;;  %v2287_v41 = vpack.c.b16 %v2267_v24, %v2263_v57  ;;  %v2288_v22 = vpack.c.b16 %v2268_v11, %v2264_v38 }
 0x102   : > { %v998_v10 = vadd.f32 %v997_v58, %v4666_v19  ;;  %v4908_v23 = vpop.f32.mrf.mxu2  ;;  %v4913_v39 = vpop.f32.mrf.mxu3 }
 0x104   : > { %v1027_v63 = vadd.f32 %v4844_v2, %v998_v10  ;;  %v4004_v2 = vld [vmem:[%s4921_s15] sm:$0xff] }
 0x106   : > { %v1056_v19 = vadd.f32 %v4851_v6, %v1027_v63  ;;  %v3599_v6 = vld [vmem:[%s4160_s16 + $0x118] sm:$0x11] }
 0x107   : > { %v2176_v32 = vshll.u32 %v3599_v6, 16 }
 0x108   : > { %v4924_v60 = vadd.f32 %v1356_v48, %v1056_v19 }
 0x109   : > { %v1368_v18 = vpop.f32.mrf.mxu1  ;;  %v4930_v16 = vpop.f32.mrf.mxu0  ;;  %v2178_v37 = vrot.slane %v2176_v32, 5 }
 0x10a   : > { %v1369_v25 = vadd.f32 %v1368_v18, %v4726_v15  ;;  %v1404_v14 = vpop.f32.mrf.mxu2  ;;  %v1433_v17 = vpop.f32.mrf.mxu3  ;;  %v2146_v15 = vrot.slane %v2145_v49, 4 }
 0x10b   : > { %v2179_v58 = vsel %vm4187_vm2, %v2174_v45, %v2178_v37 }
 0x10c   : > { %v1398_v31 = vadd.f32 %v4871_v44, %v1369_v25  ;;  %2538 = vmatmul.bf16.vlgmr.msra.gmra.mxu1 %v4846_v5  ;;  %2757 = vmatmul.bf16.vlgmr.msra.gmra.mxu0 %v4004_v2  ;;  %v2275_v13 = vunpack.c.l.b16 %v2179_v58  ;;  %v2276_v29 = vunpack.c.h.b16 %v2179_v58 }
 0x10e   : > { %v4939_v35 = vadd.f32 %v4878_v30, %v1398_v31  ;;  %2606 = vmatmul.bf16.gmra.mxu3 %v2288_v22  ;;  %v2151_v30 = vsel %vm4187_vm2, %v2146_v15, %v2150_v56 }
 0x10f   : > { %2577 = vmatmul.bf16.gmra.mxu2 %v2287_v41  ;;  %v2271_v10 = vunpack.c.l.b16 %v2151_v30  ;;  %v2272_v54 = vunpack.c.h.b16 %v2151_v30 }
 0x111   : > { %v1370_v40 = vpop.f32.mrf.mxu1  ;;  %v4941_v42 = vpop.f32.mrf.mxu0  ;;  %v2291_v57 = vpack.c.b16 %v2275_v13, %v2271_v10  ;;  %v2292_v38 = vpack.c.b16 %v2276_v29, %v2272_v54 }
 0x112   : > { %v1371_v44 = vadd.f32 %v1370_v40, %v4771_v8  ;;  %v1407_v5 = vpop.f32.mrf.mxu2  ;;  %v1436_v59 = vpop.f32.mrf.mxu3  ;;  %v2270_v8 = vunpack.c.h.b16 %v4860_v34 }
 0x114   : > { %v1400_v47 = vadd.f32 %v4895_v7, %v1371_v44  ;;  %v2290_v43 = vpack.c.b16 %v2274_v62, %v2270_v8 }
 0x116   : > { %v4950_v48 = vadd.f32 %v4899_v20, %v1400_v47 }
 0x119   : > { %v1373_v63 = vpop.f32.mrf.mxu1  ;;  %v4955_v7 = vpop.f32.mrf.mxu0 }
 0x11a   : > { %v1374_v55 = vadd.f32 %v1373_v63, %v4807_v4  ;;  %v1409_v19 = vpop.f32.mrf.mxu2  ;;  %v1438_v20 = vpop.f32.mrf.mxu3 }
 0x11c   : > { %v1403_v24 = vadd.f32 %v4908_v23, %v1374_v55  ;;  %2543 = vmatmul.bf16.gmra.mxu1 %v4897_v21  ;;  %2762 = vmatmul.bf16.gmra.mxu0 %v4005_v51  ;;  %v4006_v23 = vld [vmem:[%s4921_s15 + $0x10] sm:$0xff] }
 0x11e   : > { %v4961_v34 = vadd.f32 %v4913_v39, %v1403_v24  ;;  %2611 = vmatmul.bf16.gmra.mxu3 %v2292_v38 }
 0x11f   : > { %2582 = vmatmul.bf16.gmra.mxu2 %v2291_v57 }
 0x121   : > { %v1375_v53 = vpop.f32.mrf.mxu1  ;;  %v4963_v11 = vpop.f32.mrf.mxu0 }
 0x122   : > { %v1376_v4 = vadd.f32 %v1375_v53, %v4839_v52  ;;  %v1412_v33 = vpop.f32.mrf.mxu2  ;;  %v1441_v0 = vpop.f32.mrf.mxu3 }
 0x124   : > { %v1405_v3 = vadd.f32 %v1404_v14, %v1376_v4 }
 0x126   : > { %v4966_v2 = vadd.f32 %v1433_v17, %v1405_v3 }
 0x129   : > { %v1378_v21 = vpop.f32.mrf.mxu1  ;;  %v4969_v9 = vpop.f32.mrf.mxu0 }
 0x12a   : > { %v1379_v36 = vadd.f32 %v1378_v21, %v4863_v28  ;;  %v1414_v39 = vpop.f32.mrf.mxu2  ;;  %v1443_v1 = vpop.f32.mrf.mxu3 }
 0x12c   : > { %v1408_v18 = vadd.f32 %v1407_v5, %v1379_v36  ;;  %2548 = vmatmul.bf16.gmra.mxu1 %v4934_v26  ;;  %2767 = vmatmul.bf16.gmra.mxu0 %v4006_v23 }
 0x12e   : > { %v1437_v6 = vadd.f32 %v1436_v59, %v1408_v18 }
 0x12f   : > { %2772 = vmatmul.bf16.vlgmr.msra.gmra.mxu2 %v4007_v61 }
 0x131   : > { %v1380_v52 = vpop.f32.mrf.mxu1  ;;  %v1821_v25 = vpop.f32.mrf.mxu0 }
 0x132   : > { %v1381_v14 = vadd.f32 %v1380_v52, %v4891_v12  ;;  %v1867_v41 = vpop.f32.mrf.mxu2  ;;  %v1896_v17 = vpop.f32.mrf.mxu3 }
 0x134   : > { %v1410_v22 = vadd.f32 %v1409_v19, %v1381_v14 }
 0x136   : > { %v1439_v27 = vadd.f32 %v1438_v20, %v1410_v22 }
 0x139   : > { %v1383_v31 = vpop.f32.mrf.mxu1  ;;  %v4975_v49 = vpop.f32.mrf.mxu0 }
 0x13a   : > { %v1384_v28 = vadd.f32 %v1383_v31, %v4903_v46  ;;  %v1869_v50 = vpop.f32.mrf.mxu2  ;;  %v1898_v32 = vpop.f32.mrf.mxu3 }
 0x13c   : > { %v1413_v15 = vadd.f32 %v1412_v33, %v1384_v28  ;;  %2553 = vmatmul.bf16.gmra.mxu1 %v2290_v43 }
 0x13e   : > { %v1442_v26 = vadd.f32 %v1441_v0, %v1413_v15 }
 0x141   : > { %v1385_v56 = vpop.f32.mrf.mxu1  ;;  %v4978_v45 = vpop.f32.mrf.mxu0 }
 0x142   : > { %v1386_v37 = vadd.f32 %v1385_v56, %v4924_v60  ;;  %v1872_v12 = vpop.f32.mrf.mxu2  ;;  %v1901_v40 = vpop.f32.mrf.mxu3 }
 0x144   : > { %v1415_v44 = vadd.f32 %v1414_v39, %v1386_v37 }
 0x146   : > { %v1444_v5 = vadd.f32 %v1443_v1, %v1415_v44 }
 0x149   : > { %v1838_v59 = vpop.f32.mrf.mxu1  ;;  %v4981_v47 = vpop.f32.mrf.mxu0 }
 0x14a   : > { %v1839_v30 = vadd.f32 %v1838_v59, %v4930_v16  ;;  %v1874_v46 = vpop.f32.mrf.mxu2  ;;  %v1903_v10 = vpop.f32.mrf.mxu3 }
 0x14c   : > { %v1868_v58 = vadd.f32 %v1867_v41, %v1839_v30 }
 0x14e   : > { %v1897_v13 = vadd.f32 %v1896_v17, %v1868_v58 }
 0x150   : > { %v4985_v51 = vadd.f32 %v1897_v13, %v4939_v35 }
 0x151   : > { %v1840_v54 = vpop.f32.mrf.mxu1  ;;  %v4987_v29 = vpop.f32.mrf.mxu0 }
 0x152   : > { %v1841_v60 = vadd.f32 %v1840_v54, %v4941_v42  ;;  %v1877_v8 = vpop.f32.mrf.mxu2  ;;  %v1906_v55 = vpop.f32.mrf.mxu3 }
 0x154   : > { %v1870_v62 = vadd.f32 %v1869_v50, %v1841_v60 }
 0x156   : > { %v1899_v63 = vadd.f32 %v1898_v32, %v1870_v62 }
 0x158   : > { %v4991_v19 = vadd.f32 %v1899_v63, %v4950_v48 }
 0x159   : > { %v1843_v16 = vpop.f32.mrf.mxu1  ;;  %v4993_v43 = vpop.f32.mrf.mxu0 }
 0x15a   : > { %v1844_v57 = vadd.f32 %v1843_v16, %v4955_v7  ;;  %v1879_v20 = vpop.f32.mrf.mxu2  ;;  %v1908_v53 = vpop.f32.mrf.mxu3 }
 0x15c   : > { %v1873_v35 = vadd.f32 %v1872_v12, %v1844_v57 }
 0x15e   : > { %v1902_v24 = vadd.f32 %v1901_v40, %v1873_v35 }
 0x160   : > { %v4997_v38 = vadd.f32 %v1902_v24, %v4961_v34 }
 0x161   : > { %v1845_v42 = vpop.f32.mrf.mxu1  ;;  %v4999_v4 = vpop.f32.mrf.mxu0 }
 0x162   : > { %v1846_v33 = vadd.f32 %v1845_v42, %v4963_v11  ;;  %v1882_v0 = vpop.f32.mrf.mxu2  ;;  %v1911_v34 = vpop.f32.mrf.mxu3 }
 0x164   : > { %v1875_v48 = vadd.f32 %v1874_v46, %v1846_v33 }
 0x166   : > { %v1904_v3 = vadd.f32 %v1903_v10, %v1875_v48 }
 0x168   : > { %v5003_v23 = vadd.f32 %v1904_v3, %v4966_v2 }
 0x169   : > { %v1848_v21 = vpop.f32.mrf.mxu1  ;;  %v5005_v7 = vpop.f32.mrf.mxu0 }
 0x16a   : > { %v1849_v36 = vadd.f32 %v1848_v21, %v4969_v9  ;;  %v1884_v39 = vpop.f32.mrf.mxu2  ;;  %v1913_v22 = vpop.f32.mrf.mxu3 }
 0x16c   : > { %v1878_v61 = vadd.f32 %v1877_v8, %v1849_v36 }
 0x16e   : > { %v1907_v1 = vadd.f32 %v1906_v55, %v1878_v61 }
 0x170   : > { %v5008_v18 = vadd.f32 %v1907_v1, %v1437_v6 }
 0x171   : > { %v1850_v52 = vpop.f32.mrf.mxu1  ;;  %v5010_v14 = vpop.f32.mrf.mxu0 }
 0x172   : > { %v1851_v11 = vadd.f32 %v1850_v52, %v1821_v25  ;;  %v2568_v41 = vpop.f32.mrf.mxu2  ;;  %v2597_v6 = vpop.f32.mrf.mxu3 }
 0x174   : > { %v1880_v17 = vadd.f32 %v1879_v20, %v1851_v11 }
 0x176   : > { %v1909_v2 = vadd.f32 %v1908_v53, %v1880_v17 }
 0x178   : > { %v5012_v31 = vadd.f32 %v1909_v2, %v1439_v27 }
 0x179   : > { %v1853_v28 = vpop.f32.mrf.mxu1  ;;  %v5014_v50 = vpop.f32.mrf.mxu0 }
 0x17a   : > { %v1854_v9 = vadd.f32 %v1853_v28, %v4975_v49  ;;  %v2570_v15 = vpop.f32.mrf.mxu2  ;;  %v2599_v46 = vpop.f32.mrf.mxu3 }
 0x17c   : > { %v1883_v32 = vadd.f32 %v1882_v0, %v1854_v9 }
 0x17e   : > { %v1912_v56 = vadd.f32 %v1911_v34, %v1883_v32 }
 0x180   : > { %v5017_v37 = vadd.f32 %v1912_v56, %v1442_v26  ;;  %v5028_v26 = vld [vmem:[%s5078_s2] ss:$0 sm:$0xff] }
 0x181   : > { %v1855_v12 = vpop.f32.mrf.mxu1  ;;  %v5019_v40 = vpop.f32.mrf.mxu0 }
 0x182   : > { %v1856_v25 = vadd.f32 %v1855_v12, %v4978_v45  ;;  %v2573_v59 = vpop.f32.mrf.mxu2  ;;  %v2602_v55 = vpop.f32.mrf.mxu3 }
 0x184   : > { %v1885_v44 = vadd.f32 %v1884_v39, %v1856_v25 }
 0x186   : > { %v1914_v27 = vadd.f32 %v1913_v22, %v1885_v44 }
 0x188   : > { %v5022_v30 = vadd.f32 %v1914_v27, %v1444_v5 }
 0x189   : > { %v2539_v58 = vpop.f32.mrf.mxu1  ;;  %v2758_v49 = vpop.f32.mrf.mxu0 }
 0x18a   : > { %v2540_v10 = vadd.f32 %v2539_v58, %v4981_v47  ;;  %v2575_v60 = vpop.f32.mrf.mxu2  ;;  %v2604_v3 = vpop.f32.mrf.mxu3 }
 0x18c   : > { %v2569_v13 = vadd.f32 %v2568_v41, %v2540_v10 }
 0x18e   : > { %v2598_v54 = vadd.f32 %v2597_v6, %v2569_v13 }
 0x190   : > { %v2617_v45 = vadd.f32 %v2598_v54, %v4985_v51 }
 0x191   : > { %v2541_v8 = vpop.f32.mrf.mxu1  ;;  %v2760_v63 = vpop.f32.mrf.mxu0 }
 0x192   : > { %v2542_v5 = vadd.f32 %v2541_v8, %v4987_v29  ;;  %vm2626_vm3 = vcmp.gt.f32.partialorder %v2617_v45, 0.0  ;;  %v2637_v62 = vmul.f32 %v5028_v26, %v2617_v45  ;;  %v2578_v24 = vpop.f32.mrf.mxu2  ;;  %v2607_v17 = vpop.f32.mrf.mxu3 }
 0x194   : > { %v2571_v47 = vadd.f32 %v2570_v15, %v2542_v5  ;;  %v2645_v16 = vsel %vm2626_vm3, %v2617_v45, %v2637_v62 }
 0x195   : > { %v2778_v57 = vadd.f32 %v2758_v49, %v2645_v16 }
 0x196   : > { %v2600_v51 = vadd.f32 %v2599_v46, %v2571_v47 }
 0x197   : > { %2786 = vst [vmem:[%s5037_s25] sm:$0xff] %v2778_v57 }
 0x198   : > { %v2618_v20 = vadd.f32 %v2600_v51, %v4991_v19 }
 0x199   : > { %v2544_v29 = vpop.f32.mrf.mxu1  ;;  %v2763_v0 = vpop.f32.mrf.mxu0 }
 0x19a   : > { %v2545_v35 = vadd.f32 %v2544_v29, %v4993_v43  ;;  %vm2627_vm4 = vcmp.gt.f32.partialorder %v2618_v20, 0.0  ;;  %v2638_v53 = vmul.f32 %v5028_v26, %v2618_v20  ;;  %v2580_v61 = vpop.f32.mrf.mxu2  ;;  %v2609_v25 = vpop.f32.mrf.mxu3 }
 0x19c   : > { %v2574_v42 = vadd.f32 %v2573_v59, %v2545_v35  ;;  %v2646_v33 = vsel %vm2627_vm4, %v2618_v20, %v2638_v53 }
 0x19d   : > { %v2779_v48 = vadd.f32 %v2760_v63, %v2646_v33 }
 0x19e   : > { %v2603_v21 = vadd.f32 %v2602_v55, %v2574_v42 }
 0x19f   : > { %2787 = vst [vmem:[%s5037_s25 + $0x8] sm:$0xff] %v2779_v48 }
 0x1a0   : > { %v2619_v36 = vadd.f32 %v2603_v21, %v4997_v38 }
 0x1a1   : > { %v2546_v39 = vpop.f32.mrf.mxu1  ;;  %v2765_v41 = vpop.f32.mrf.mxu0 }
 0x1a2   : > { %v2547_v19 = vadd.f32 %v2546_v39, %v4999_v4  ;;  %vm2628_vm5 = vcmp.gt.f32.partialorder %v2619_v36, 0.0  ;;  %v2639_v43 = vmul.f32 %v5028_v26, %v2619_v36  ;;  %v2583_v56 = vpop.f32.mrf.mxu2 }
 0x1a4   : > { %v2576_v34 = vadd.f32 %v2575_v60, %v2547_v19  ;;  %v2647_v1 = vsel %vm2628_vm5, %v2619_v36, %v2639_v43 }
 0x1a5   : > { %v2780_v52 = vadd.f32 %v2763_v0, %v2647_v1 }
 0x1a6   : > { %v2605_v11 = vadd.f32 %v2604_v3, %v2576_v34 }
 0x1a7   : > { %2788 = vst [vmem:[%s5037_s25 + $0x10] sm:$0xff] %v2780_v52 }
 0x1a8   : > { %v2620_v22 = vadd.f32 %v2605_v11, %v5003_v23 }
 0x1a9   : > { %v2549_v2 = vpop.f32.mrf.mxu1  ;;  %v2768_v12 = vpop.f32.mrf.mxu0 }
 0x1aa   : > { %v2550_v38 = vadd.f32 %v2549_v2, %v5005_v7  ;;  %vm2629_vm6 = vcmp.gt.f32.partialorder %v2620_v22, 0.0  ;;  %v2640_v4 = vmul.f32 %v5028_v26, %v2620_v22  ;;  %v2585_v49 = vpop.f32.mrf.mxu2 }
 0x1ac   : > { %v2579_v28 = vadd.f32 %v2578_v24, %v2550_v38  ;;  %v2648_v9 = vsel %vm2629_vm6, %v2620_v22, %v2640_v4 }
 0x1ad   : > { %v2781_v32 = vadd.f32 %v2765_v41, %v2648_v9 }
 0x1ae   : > { %v2608_v15 = vadd.f32 %v2607_v17, %v2579_v28 }
 0x1af   : > { %2789 = vst [vmem:[%s5037_s25 + $0x18] sm:$0xff] %v2781_v32 }
 0x1b0   : > { %v2621_v6 = vadd.f32 %v2608_v15, %v5008_v18 }
 0x1b1   : > { %v2551_v44 = vpop.f32.mrf.mxu1  ;;  %v2770_v60 = vpop.f32.mrf.mxu0 }
 0x1b2   : > { %v2552_v23 = vadd.f32 %v2551_v44, %v5010_v14  ;;  %vm2630_vm7 = vcmp.gt.f32.partialorder %v2621_v6, 0.0  ;;  %v2641_v7 = vmul.f32 %v5028_v26, %v2621_v6  ;;  %v2612_v14 = vpop.f32.mrf.mxu3  ;;  %v2773_v47 = vpop.f32.mrf.mxu2 }
 0x1b4   : > { %v2581_v27 = vadd.f32 %v2580_v61, %v2552_v23  ;;  %v2649_v59 = vsel %vm2630_vm7, %v2621_v6, %v2641_v7 }
 0x1b5   : > { %v2782_v46 = vadd.f32 %v2768_v12, %v2649_v59 }
 0x1b6   : > { %v2610_v58 = vadd.f32 %v2609_v25, %v2581_v27 }
 0x1b7   : > { %2790 = vst [vmem:[%s5037_s25 + $0x20] sm:$0xff] %v2782_v46 }
 0x1b8   : > { %v2622_v10 = vadd.f32 %v2610_v58, %v5012_v31 }
 0x1b9   : > { %v2554_v13 = vpop.f32.mrf.mxu1 }
 0x1ba   : > { %v2555_v18 = vadd.f32 %v2554_v13, %v5014_v50  ;;  %vm2631_vm8 = vcmp.gt.f32.partialorder %v2622_v10, 0.0  ;;  %v2642_v54 = vmul.f32 %v5028_v26, %v2622_v10  ;;  %v2614_v20 = vpop.f32.mrf.mxu3  ;;  %v2775_v53 = vpop.f32.mrf.mxu2 }
 0x1bc   : > { %v2584_v45 = vadd.f32 %v2583_v56, %v2555_v18  ;;  %v2650_v8 = vsel %vm2631_vm8, %v2622_v10, %v2642_v54 }
 0x1bd   : > { %v2783_v5 = vadd.f32 %v2770_v60, %v2650_v8 }
 0x1be   : > { %v2613_v62 = vadd.f32 %v2612_v14, %v2584_v45 }
 0x1bf   : > { %2791 = vst [vmem:[%s5037_s25 + $0x28] sm:$0xff] %v2783_v5 }
 0x1c0   : > { %v2623_v63 = vadd.f32 %v2613_v62, %v5017_v37 }
 0x1c1   : > { %v2556_v55 = vpop.f32.mrf.mxu1 }
 0x1c2   : > { %vm2632_vm9 = vcmp.gt.f32.partialorder %v2623_v63, 0.0  ;;  %v2643_v31 = vmul.f32 %v5028_v26, %v2623_v63  ;;  %v2557_v50 = vadd.f32 %v2556_v55, %v5019_v40 }
 0x1c4   : > { %v2651_v16 = vsel %vm2632_vm9, %v2623_v63, %v2643_v31  ;;  %v2586_v57 = vadd.f32 %v2585_v49, %v2557_v50 }
 0x1c5   : > { %v2784_v51 = vadd.f32 %v2773_v47, %v2651_v16 }
 0x1c6   : > { %v2615_v29 = vadd.f32 %v2614_v20, %v2586_v57 }
 0x1c7   : > { %2792 = vst [vmem:[%s5037_s25 + $0x30] sm:$0xff] %v2784_v51 }
 0x1c8   : > { %v2624_v35 = vadd.f32 %v2615_v29, %v5022_v30 }
 0x1ca   : > { %vm2633_vm10 = vcmp.gt.f32.partialorder %v2624_v35, 0.0  ;;  %v2644_v24 = vmul.f32 %v5028_v26, %v2624_v35 }
 0x1cc   : > { %v2652_v37 = vsel %vm2633_vm10, %v2624_v35, %v2644_v24 }
 0x1cd   : > { %v2785_v42 = vadd.f32 %v2775_v53, %v2652_v37 }
 0x1cf   : > { %2793 = vst [vmem:[%s5037_s25 + $0x38] sm:$0xff] %v2785_v42 }
 0x1d0 PF: > { %s15_s20 = sadd.s32 1, %s4080_s20   ;;  %s5084_s18 = smov %s4076_s19 }
 0x1d1   : > { %p12_p5 = scmp.ge.s32.totalorder %s15_s20, 4   ;;  %s5085_s19 = smov %s5087_s21 }
 0x1d3   :  { %14 = sbr.rel (!%p12_p5) target bundleno = 2 (0x2), region = 77 }

</bundles_post_ra>
